<compile_context>
chip_gen: v6e
topology: v6e:2x2x1
jax: 0.10.0
libtpu: 0.0.40
codegen_flags: <defaults>
</compile_context>

<pallas_src>
import functools

import jax
import jax.numpy as jnp
from jax.experimental import pallas as pl
from jax.experimental.pallas import tpu as pltpu

# ----------------------------------------------------------------------------- config
RFN = 2          # reference views
QN = 1           # query images
RN = 8           # rays per query
DN = 16          # depth samples per ray
H = W = 16       # image size
FEAT = 32        # feature dim (Attention(32, 0.0))
RES = 8          # volume resolution
VIEW_NUM = 1     # base_cfg['ray_mask_view_num']
POINT_NUM = 8    # base_cfg['ray_mask_point_num']
AGG_IN = 3 + FEAT + FEAT + 3   # rgb + img_feats + residual_feats + view dir = 70

N_RENDER = RN * DN             # 128 render samples
N_VOL = RES ** 3               # 512 volume voxels
SLAB_W = 128                   # lane-dense packed output width

# column layout of the fused render kernel's packed output slab
# [:, 0]        alpha for every sample (render + volume rows)
# [:, 1:4]      sigmoid rgb
# [:128, 4]     per-sample hit probability (render rows)
# [128:, 8:14]  per-voxel VGN head output (qual, rot4, width)
# [:8, 48:53]   per-ray [pixel r, g, b, depth, ray_mask]


def _attn_compute_dtype():
    """bf16 matmuls/softmax on bf16-native chips (v6e / v7x); f32 elsewhere (v5e has no
    bf16 VPU/EUP, so converts would only add cost there)."""
    try:
        kind = jax.devices()[0].device_kind.lower()
    except Exception:
        return jnp.float32
    return jnp.bfloat16 if ('v6' in kind or 'v7' in kind) else jnp.float32


def _fast_sigmoid(x):
    """sigmoid via EUP exp + approximate EUP reciprocal (keeps the divide off the VALU)."""
    return pl.reciprocal(1.0 + jnp.exp(-x), approx=True)


# ----------------------------------------------------------------------------- kernel 1
def _encode_attention_kernel(img_ref, bg_ref, encw_ref, encb_ref,
                             wq_ref, wkv_ref, wo_ref, o_ref, *, compute_dtype):
    """Per reference view: image-encoder stand-in (linear + relu) for imgs AND bgs, plus
    the full Attention(32) block (q = bg feats, k/v = img feats).  bg feats and all
    attention intermediates stay in VMEM; output is the packed [img_feats | residual]."""
    img_tok = img_ref[0]                                                    # (S, 3)
    bg_tok = bg_ref[0]                                                      # (S, 3)
    imf = jnp.maximum(
        jnp.dot(img_tok, encw_ref[...], preferred_element_type=jnp.float32) + encb_ref[...],
        0.0)                                                                # (S, C)
    bgf = jnp.maximum(
        jnp.dot(bg_tok, encw_ref[...], preferred_element_type=jnp.float32) + encb_ref[...],
        0.0)                                                                # (S, C)
    c = imf.shape[-1]
    scale = 1.0 / float(c) ** 0.5
    # scale folded into q; K|V from one merged matmul sharing the img-feature LHS
    q = (jnp.dot(bgf, wq_ref[...], preferred_element_type=jnp.float32) * scale
         ).astype(compute_dtype)
    kv = jnp.dot(imf, wkv_ref[...], preferred_element_type=jnp.float32)     # (S, 2C)
    k = kv[:, :c].astype(compute_dtype)
    v = kv[:, c:].astype(compute_dtype)
    s = jax.lax.dot_general(q, k, (((1,), (1,)), ((), ())),
                            preferred_element_type=jnp.float32)             # (S, S) f32 acc
    m = jnp.max(s, axis=-1, keepdims=True)
    p = jnp.exp(s - m).astype(compute_dtype)                                # narrow probs
    acc = jnp.dot(p, v, preferred_element_type=jnp.float32)                 # (S, C)
    denom = jnp.sum(p.astype(jnp.float32), axis=-1, keepdims=True)
    attn = acc * pl.reciprocal(denom, approx=True)                          # normalize post-PV
    resid = jnp.dot(attn, wo_ref[...], preferred_element_type=jnp.float32)  # (S, C)
    o_ref[0] = jnp.concatenate([imf, resid], axis=-1)                       # (S, 2C)


def encode_and_attend(imgs_nchw, bgs_nchw, params):
    """One launch: image encoding (imgs + bgs) and attention for all views."""
    rfn = imgs_nchw.shape[0]
    s = H * W
    img_tok = imgs_nchw.transpose(0, 2, 3, 1).reshape(rfn, s, 3)
    bg_tok = bgs_nchw.transpose(0, 2, 3, 1).reshape(rfn, s, 3)
    wkv = jnp.concatenate([params['Wk'], params['Wv']], axis=1)             # (C, 2C)
    kern = functools.partial(_encode_attention_kernel,
                             compute_dtype=_attn_compute_dtype())
    tok_spec = pl.BlockSpec((1, s, 3), lambda i: (i, 0, 0))
    out = pl.pallas_call(
        kern,
        grid=(rfn,),
        in_specs=[tok_spec, tok_spec,
                  pl.BlockSpec((3, FEAT), lambda i: (0, 0)),
                  pl.BlockSpec((1, FEAT), lambda i: (0, 0)),
                  pl.BlockSpec((FEAT, FEAT), lambda i: (0, 0)),
                  pl.BlockSpec((FEAT, 2 * FEAT), lambda i: (0, 0)),
                  pl.BlockSpec((FEAT, FEAT), lambda i: (0, 0))],
        out_specs=pl.BlockSpec((1, s, 2 * FEAT), lambda i: (i, 0, 0)),
        out_shape=jax.ShapeDtypeStruct((rfn, s, 2 * FEAT), jnp.float32),
        compiler_params=pltpu.CompilerParams(dimension_semantics=("parallel",)),
    )(img_tok, bg_tok, params['enc_w'], params['enc_b'],
      params['Wq'], wkv, params['Wo'])
    img_feats = out[..., :FEAT].reshape(rfn, H, W, FEAT)
    residual = out[..., FEAT:].reshape(rfn, H, W, FEAT)
    return img_feats, residual


# ----------------------------------------------------------------------------- kernel 2
def _fused_render_kernel(xr_ref, xv_ref, w1_ref, b1_ref, w2_ref, b2_ref,
                         depth_ref, msk_ref, vgnw_ref, vgnb_ref, o_ref,
                         *, n_render, rn, dn, view_num, point_num):
    """Single-block fusion of: 2-layer agg MLP (render rays + volume voxels), the
    density->alpha / sigmoid(rgb) epilogues, the volume-rendering composite (exclusive
    transmittance via a log-space block-triangular matmul, per-ray reductions via a
    grouping matmul, ray mask) and the per-voxel VGN 1x1x1 head.
    Everything is written into one lane-dense (M, 128) output slab."""
    x = jnp.concatenate([xr_ref[...], xv_ref[...]], axis=0)                 # (M, 70) in VMEM
    h = jnp.maximum(
        jnp.dot(x, w1_ref[...], preferred_element_type=jnp.float32) + b1_ref[...], 0.0)
    out = jnp.dot(h, w2_ref[...], preferred_element_type=jnp.float32) + b2_ref[...]  # (M, 4)
    alpha = 1.0 - jnp.exp(-jnp.maximum(out[:, 0:1], 0.0))                   # (M, 1)
    rgb = _fast_sigmoid(out[:, 1:4])                                        # (M, 3)

    o_ref[...] = jnp.zeros_like(o_ref)
    o_ref[:, pl.ds(0, 4)] = jnp.concatenate([alpha, rgb], axis=1)

    # ---- render rays: alpha -> hit prob -> pixel color / depth / ray mask ----
    a_r = alpha[:n_render]                                                  # (128, 1)
    # exclusive cumprod of (1 - alpha) per ray: log-space block-triangular matmul on MXU.
    # (samples with alpha ~ 1 get trans = exp(log(1e-10)) instead of exactly 0.)
    la = jnp.log(jnp.maximum(1.0 - a_r, 1e-10))
    ri = jax.lax.broadcasted_iota(jnp.int32, (n_render, n_render), 0)
    ci = jax.lax.broadcasted_iota(jnp.int32, (n_render, n_render), 1)
    tri = (((ri // dn) == (ci // dn)) & ((ci % dn) < (ri % dn))).astype(jnp.float32)
    trans = jnp.exp(jnp.dot(tri, la, preferred_element_type=jnp.float32))   # (128, 1)
    hit = a_r * trans
    o_ref[pl.ds(0, n_render), pl.ds(4, 1)] = hit

    # per-ray reductions (pixel rgb, depth, in-view sample count) via one grouping matmul
    maskf = (msk_ref[...] > view_num).astype(jnp.float32)                   # (128, 1)
    per_sample = jnp.concatenate(
        [hit * rgb[:n_render], hit * depth_ref[...], maskf], axis=1)        # (128, 5)
    gri = jax.lax.broadcasted_iota(jnp.int32, (rn, n_render), 0)
    gci = jax.lax.broadcasted_iota(jnp.int32, (rn, n_render), 1)
    grp = ((gci // dn) == gri).astype(jnp.float32)                          # (rn, 128)
    per_ray = jnp.dot(grp, per_sample, preferred_element_type=jnp.float32)  # (rn, 5)
    ray_mask = (per_ray[:, 4:5] > float(point_num)).astype(jnp.float32)     # strict '>' as in ref
    o_ref[pl.ds(0, rn), pl.ds(48, 5)] = jnp.concatenate(
        [per_ray[:, 0:4], ray_mask], axis=1)

    # ---- volume voxels: fused VGN 1x1x1 head (per-voxel, order independent) ----
    a_v = alpha[n_render:]                                                  # (Nv, 1)
    vo = a_v * vgnw_ref[...] + vgnb_ref[...]                                # VPU broadcast FMA
    cidx = jax.lax.broadcasted_iota(jnp.int32, vo.shape, 1)
    rot_mask = (cidx >= 1) & (cidx <= 4)
    inv_norm = jax.lax.rsqrt(
        jnp.sum(jnp.where(rot_mask, vo * vo, 0.0), axis=-1, keepdims=True) + 1e-12)
    o_ref[pl.ds(n_render, a_v.shape[0]), pl.ds(8, 6)] = jnp.where(
        cidx == 0, _fast_sigmoid(vo), jnp.where(rot_mask, vo * inv_norm, vo))


def fused_render_and_head(render_in, vol_in, depth_flat, mask_flat, params):
    """One launch: agg MLP + composite + VGN head; single block, no grid steps."""
    m = render_in.shape[0] + vol_in.shape[0]
    kern = functools.partial(_fused_render_kernel, n_render=N_RENDER, rn=RN, dn=DN,
                             view_num=VIEW_NUM, point_num=POINT_NUM)
    return pl.pallas_call(
        kern,
        out_shape=jax.ShapeDtypeStruct((m, SLAB_W), jnp.float32),
    )(render_in, vol_in,
      params['mlp_w1'], params['mlp_b1'], params['mlp_w2'], params['mlp_b2'],
      depth_flat, mask_flat, params['vgn_w'], params['vgn_b'])


# ----------------------------------------------------------------------------- plain-JAX glue
def bilinear_sample(feat_hwc, xy, mask):
    """feat: (H,W,C); xy: (N,2) pixel (x,y); mask: (N,) -> (N, C)."""
    Hh, Ww, _ = feat_hwc.shape
    x = jnp.clip(xy[:, 0], 0.0, Ww - 1.0)
    y = jnp.clip(xy[:, 1], 0.0, Hh - 1.0)
    x0 = jnp.floor(x).astype(jnp.int32)
    y0 = jnp.floor(y).astype(jnp.int32)
    x1 = jnp.minimum(x0 + 1, Ww - 1)
    y1 = jnp.minimum(y0 + 1, Hh - 1)
    wx = (x - x0.astype(jnp.float32))[:, None]
    wy = (y - y0.astype(jnp.float32))[:, None]

    def g(yy, xx):
        return feat_hwc[yy, xx]                                             # (N, C)

    v = (g(y0, x0) * (1 - wx) * (1 - wy) + g(y0, x1) * wx * (1 - wy)
         + g(y1, x0) * (1 - wx) * wy + g(y1, x1) * wx * wy)
    return v * mask[:, None]


def project_points(pts, pose, K):
    """pts (N,3) world; pose (3,4) world->cam; K (3,3)."""
    R, t = pose[:, :3], pose[:, 3]
    cam = pts @ R.T + t
    uv = cam @ K.T
    depth = uv[:, 2]
    xy = uv[:, :2] / jnp.maximum(depth[:, None], 1e-8)
    return xy, depth


def project_and_aggregate(ref_info, pts_flat):
    """project_points_dict + get_img_feats + mask-weighted mean over views.
    TODO(synk): data-dependent bilinear gather -> stays in plain JAX."""
    imgs = ref_info['imgs_hwc']
    img_feats = ref_info['img_feats_hwc']
    resid = ref_info['residual_hwc']
    poses, Ks = ref_info['poses'], ref_info['Ks']
    rfn, h, w, _ = imgs.shape
    feats, masks = [], []
    for v in range(rfn):
        xy, depth = project_points(pts_flat, poses[v], Ks[v])
        m = ((depth > 1e-4) & (xy[:, 0] >= 0) & (xy[:, 0] <= w - 1)
             & (xy[:, 1] >= 0) & (xy[:, 1] <= h - 1)).astype(jnp.float32)
        rgb = bilinear_sample(imgs[v], xy, m)
        f = bilinear_sample(img_feats[v], xy, m)
        r = bilinear_sample(resid[v], xy, m)
        feats.append(jnp.concatenate([rgb, f, r], axis=-1))
        masks.append(m)
    feats = jnp.stack(feats, 0)                                             # (rfn, N, 67)
    mask = jnp.stack(masks, 0)                                              # (rfn, N)
    agg = jnp.sum(feats * mask[..., None], 0) / (jnp.sum(mask[..., None], 0) + 1e-6)
    return agg, jnp.sum(mask.astype(jnp.int32), 0)


def prepare_render(que_info, ref_info):
    coords = que_info['coords'][0].astype(jnp.float32)                      # (rn, 2)
    rn = coords.shape[0]
    near, far = que_info['depth_range'][0]
    que_depth = jnp.broadcast_to(jnp.linspace(near, far, DN), (rn, DN))

    # depth2points (pinhole unprojection)
    Kq, pose_q = que_info['Ks'][0], que_info['poses'][0]
    Kinv = jnp.linalg.inv(Kq)
    dirs_cam = jnp.concatenate([coords, jnp.ones((rn, 1))], -1) @ Kinv.T
    R, t = pose_q[:, :3], pose_q[:, 3]
    cam_center = -R.T @ t
    dirs_world = dirs_cam @ R
    que_pts = cam_center[None, None] + dirs_world[:, None, :] * que_depth[..., None]
    que_dir = dirs_world / jnp.linalg.norm(dirs_world, axis=-1, keepdims=True)

    pts_flat = que_pts.reshape(-1, 3)
    feat, mask_sum = project_and_aggregate(ref_info, pts_flat)
    dirs_rep = jnp.broadcast_to(que_dir[:, None, :], (rn, DN, 3)).reshape(-1, 3)
    mlp_in = jnp.concatenate([feat, dirs_rep], -1)                          # (rn*dn, 70)
    return {'mlp_in': mlp_in,
            'depth_flat': que_depth.reshape(-1, 1),
            'mask_flat': mask_sum.reshape(-1, 1).astype(jnp.int32),
            'que_pts': que_pts, 'coords': coords}


def prepare_volume(ref_info):
    """'alpha'-mode volume sample points (with the flips from the reference code)."""
    bbox = ref_info['bbox3d']
    lin = [jnp.linspace(bbox[0][i], bbox[1][i], RES) for i in range(3)]
    gx, gy, gz = jnp.meshgrid(lin[0], lin[1], lin[2], indexing='ij')
    que_pts = jnp.stack([gx, gy, gz], -1).reshape(1, RES * RES, RES, 3)
    que_pts = jnp.flip(que_pts, axis=2)
    pts_flat = que_pts.reshape(-1, 3)
    feat, _ = project_and_aggregate(ref_info, pts_flat)
    dirs = jnp.broadcast_to(jnp.array([0.0, 0.0, 1.0], jnp.float32), (pts_flat.shape[0], 3))
    return jnp.concatenate([feat, dirs], -1)                                # (res^3, 70)


def finalize_outputs(slab, prep, que_info):
    alpha = slab[:N_RENDER, 0].reshape(RN, DN)
    colors = slab[:N_RENDER, 1:4].reshape(RN, DN, 3)
    hit_prob = slab[:N_RENDER, 4].reshape(RN, DN)
    misc = slab[:RN, 48:53]                                                 # pc3, pd, rm
    pix_col = misc[:, 0:3]
    pix_dep = misc[:, 3:4]
    ray_mask = misc[:, 4] > 0.5

    vol_alpha = slab[N_RENDER:, 0]
    volume = jnp.flip(vol_alpha.reshape(1, 1, RES, RES, RES), axis=-1)
    vgn_rows = slab[N_RENDER:, 8:14]
    # same voxel -> grid mapping (and flip) as the alpha volume, per-voxel head is order-free
    vgn_vol = jnp.flip(vgn_rows.reshape(1, RES, RES, RES, 6), axis=3)

    outputs = {
        'alpha_values': alpha[None],                    # (qn, rn, dn)
        'colors_nr': colors[None],                      # (qn, rn, dn, 3)
        'hit_prob_nr': hit_prob[None],                  # (qn, rn, dn)
        'pixel_colors_nr': pix_col[None],               # (qn, rn, 3)
        'pixel_depths_nr': pix_dep[None],               # (qn, rn, 1)
        'ray_mask': ray_mask[None],                     # (qn, rn) bool
        'render_depth': misc[:, 3][None],               # (qn, rn)
        'que_points': prep['que_pts'][None],            # (qn, rn, dn, 3)
        'volume': volume,                               # (1, 1, r, r, r)
    }
    # TODO(synk): reference uses bilinear interpolate_feats; coords are integer pixel centers here.
    que_hwc = que_info['imgs'][0].transpose(1, 2, 0)
    ix = prep['coords'][:, 0].astype(jnp.int32)
    iy = prep['coords'][:, 1].astype(jnp.int32)
    outputs['pixel_colors_gt'] = que_hwc[iy, ix][None]
    return outputs, vgn_vol


def select(vgn_vol6, index):
    """vgn_vol6: (B, r, r, r, 6) -> (label, rot, width) at the grasp index."""
    b = jnp.arange(vgn_vol6.shape[0])
    sel = vgn_vol6[b, index[:, 0], index[:, 1], index[:, 2]]                # (B, 6)
    return sel[:, 0].squeeze(), sel[:, 1:5], sel[:, 5].squeeze()


def neugrasp_forward(data, params):
    ref = dict(data['ref_imgs_info'])
    que = dict(data['que_imgs_info'])

    # launch 1: image encoder (imgs + bgs) + attention, fully fused per view
    img_feats_hwc, residual_hwc = encode_and_attend(ref['imgs'], ref['bgs'], params)
    # TODO(synk): 3D-UNet feature_volume / residual_volume omitted (stand-in agg net does
    # not consume them).

    ref_int = {
        'imgs_hwc': ref['imgs'].transpose(0, 2, 3, 1),
        'img_feats_hwc': img_feats_hwc,
        'residual_hwc': residual_hwc,
        'poses': ref['poses'], 'Ks': ref['Ks'], 'bbox3d': ref['bbox3d'],
    }

    prep = prepare_render(que, ref_int)
    vol_in = prepare_volume(ref_int)

    # launch 2: agg MLP (render rays + volume voxels) + composite + VGN head
    slab = fused_render_and_head(prep['mlp_in'], vol_in,
                                 prep['depth_flat'], prep['mask_flat'], params)

    outputs, vgn_vol = finalize_outputs(slab, prep, que)
    outputs['img_feats'] = img_feats_hwc.transpose(0, 3, 1, 2)              # NCHW for output
    outputs['vgn_pred'] = select(vgn_vol, data['grasp_info'][0])
    return outputs


# ----------------------------------------------------------------------------- main
def make_params(key):
    ks = jax.random.split(key, 12)
    init = lambda k, s, sc=0.1: (jax.random.normal(k, s) * sc).astype(jnp.float32)
    return {
        'enc_w': init(ks[0], (3, FEAT)), 'enc_b': jnp.zeros((1, FEAT), jnp.float32),
        'Wq': init(ks[1], (FEAT, FEAT)), 'Wk': init(ks[2], (FEAT, FEAT)),
        'Wv': init(ks[3], (FEAT, FEAT)), 'Wo': init(ks[4], (FEAT, FEAT)),
        'mlp_w1': init(ks[5], (AGG_IN, FEAT)), 'mlp_b1': jnp.zeros((1, FEAT), jnp.float32),
        'mlp_w2': init(ks[6], (FEAT, 4)), 'mlp_b2': jnp.zeros((1, 4), jnp.float32),
        'vgn_w': init(ks[7], (1, 6)), 'vgn_b': jnp.zeros((1, 6), jnp.float32),
    }


def make_data(key):
    ks = jax.random.split(key, 6)
    K = jnp.array([[20.0, 0.0, 8.0], [0.0, 20.0, 8.0], [0.0, 0.0, 1.0]], jnp.float32)
    pose0 = jnp.concatenate([jnp.eye(3), jnp.array([[0.0], [0.0], [0.6]])], axis=1)
    pose1 = jnp.concatenate([jnp.eye(3), jnp.array([[0.05], [0.0], [0.6]])], axis=1)
    ref = {
        'imgs': jax.random.uniform(ks[0], (RFN, 3, H, W), jnp.float32),
        'bgs': jax.random.uniform(ks[1], (RFN, 3, H, W), jnp.float32),
        'poses': jnp.stack([pose0, pose1], 0),
        'Ks': jnp.stack([K, K], 0),
        'bbox3d': (jnp.array([-0.12, -0.12, -0.12], jnp.float32),
                   jnp.array([0.12, 0.12, 0.12], jnp.float32)),
    }
    coords = jax.random.randint(ks[2], (QN, RN, 2), 2, 14).astype(jnp.float32)
    que = {
        'imgs': jax.random.uniform(ks[3], (QN, 3, H, W), jnp.float32),
        'coords': coords,
        'depth_range': jnp.array([[0.3, 0.9]], jnp.float32),
        'poses': pose0[None],
        'Ks': K[None],
    }
    grasp_index = jnp.array([[2, 3, 4]], jnp.int32)
    return {'ref_imgs_info': ref, 'que_imgs_info': que, 'grasp_info': [grasp_index],
            'step': 10}


if __name__ == "__main__":
    key = jax.random.PRNGKey(0)
    k_param, k_data = jax.random.split(key)
    params = make_params(k_param)
    data = make_data(k_data)

    outputs = neugrasp_forward(data, params)
    outputs = jax.block_until_ready(outputs)

    # light sanity checks on shapes
    assert outputs['pixel_colors_nr'].shape == (QN, RN, 3)
    assert outputs['hit_prob_nr'].shape == (QN, RN, DN)
    assert outputs['alpha_values'].shape == (QN, RN, DN)
    assert outputs['colors_nr'].shape == (QN, RN, DN, 3)
    assert outputs['ray_mask'].shape == (QN, RN)
    assert outputs['volume'].shape == (1, 1, RES, RES, RES)
    assert outputs['img_feats'].shape == (RFN, FEAT, H, W)
    label, rot, width = outputs['vgn_pred']
    assert rot.shape == (1, 4)
    print("KERNEL_OK")
</pallas_src>

<mosaic_0001>
module attributes {stable_mosaic.version = 11 : i64} {
  func.func @_encode_attention_kernel(%arg0: i32, %arg1: memref<1x256x3xf32, #tpu.memory_space<vmem>>, %arg2: memref<1x256x3xf32, #tpu.memory_space<vmem>>, %arg3: memref<3x32xf32, #tpu.memory_space<vmem>>, %arg4: memref<1x32xf32, #tpu.memory_space<vmem>>, %arg5: memref<32x32xf32, #tpu.memory_space<vmem>>, %arg6: memref<32x64xf32, #tpu.memory_space<vmem>>, %arg7: memref<32x32xf32, #tpu.memory_space<vmem>>, %arg8: memref<1x256x64xf32, #tpu.memory_space<vmem>>) attributes {dimension_semantics = [#tpu.dimension_semantics<parallel>], iteration_bounds = array<i64: 2>, scalar_prefetch = 0 : i64, scratch_operands = 0 : i64, tpu.core_type = #tpu.core_type<tc>, window_params = [{transform_indices = @transform_0, window_bounds = array<i64: 1, 256, 3>}, {transform_indices = @transform_1, window_bounds = array<i64: 1, 256, 3>}, {pipeline_mode = #tpu.pipeline_mode<synchronous>, transform_indices = @transform_2, window_bounds = array<i64: 3, 32>}, {pipeline_mode = #tpu.pipeline_mode<synchronous>, transform_indices = @transform_3, window_bounds = array<i64: 1, 32>}, {pipeline_mode = #tpu.pipeline_mode<synchronous>, transform_indices = @transform_4, window_bounds = array<i64: 32, 32>}, {pipeline_mode = #tpu.pipeline_mode<synchronous>, transform_indices = @transform_5, window_bounds = array<i64: 32, 64>}, {pipeline_mode = #tpu.pipeline_mode<synchronous>, transform_indices = @transform_6, window_bounds = array<i64: 32, 32>}, {transform_indices = @transform_7, window_bounds = array<i64: 1, 256, 64>}]} {
    %c0 = arith.constant 0 : index
    %c0_0 = arith.constant 0 : index
    %c0_1 = arith.constant 0 : index
    %0 = vector.load %arg1[%c0, %c0_0, %c0_1] : memref<1x256x3xf32, #tpu.memory_space<vmem>>, vector<1x256x3xf32>
    %1 = vector.shape_cast %0 : vector<1x256x3xf32> to vector<256x3xf32>
    %c0_2 = arith.constant 0 : index
    %c0_3 = arith.constant 0 : index
    %c0_4 = arith.constant 0 : index
    %2 = vector.load %arg2[%c0_2, %c0_3, %c0_4] : memref<1x256x3xf32, #tpu.memory_space<vmem>>, vector<1x256x3xf32>
    %3 = vector.shape_cast %2 : vector<1x256x3xf32> to vector<256x3xf32>
    %c0_5 = arith.constant 0 : index
    %c0_6 = arith.constant 0 : index
    %4 = vector.load %arg3[%c0_5, %c0_6] : memref<3x32xf32, #tpu.memory_space<vmem>>, vector<3x32xf32>
    %cst = arith.constant dense<0.000000e+00> : vector<256x32xf32>
    %5 = tpu.matmul %1, %4, %cst {dimension_numbers = #tpu.dot_dimension_numbers<[1], [0], [0], [1], [0, 0, 1, 1], [], []>} : vector<256x3xf32>, vector<3x32xf32>, vector<256x32xf32> -> vector<256x32xf32>
    %c0_7 = arith.constant 0 : index
    %c0_8 = arith.constant 0 : index
    %6 = vector.load %arg4[%c0_7, %c0_8] : memref<1x32xf32, #tpu.memory_space<vmem>>, vector<1x32xf32>
    %7 = vector.broadcast %6 : vector<1x32xf32> to vector<256x32xf32>
    %8 = arith.addf %5, %7 : vector<256x32xf32>
    %cst_9 = arith.constant 0.000000e+00 : f32
    %9 = vector.broadcast %cst_9 : f32 to vector<256x32xf32>
    %10 = arith.maximumf %8, %9 : vector<256x32xf32>
    %c0_10 = arith.constant 0 : index
    %c0_11 = arith.constant 0 : index
    %11 = vector.load %arg3[%c0_10, %c0_11] : memref<3x32xf32, #tpu.memory_space<vmem>>, vector<3x32xf32>
    %cst_12 = arith.constant dense<0.000000e+00> : vector<256x32xf32>
    %12 = tpu.matmul %3, %11, %cst_12 {dimension_numbers = #tpu.dot_dimension_numbers<[1], [0], [0], [1], [0, 0, 1, 1], [], []>} : vector<256x3xf32>, vector<3x32xf32>, vector<256x32xf32> -> vector<256x32xf32>
    %c0_13 = arith.constant 0 : index
    %c0_14 = arith.constant 0 : index
    %13 = vector.load %arg4[%c0_13, %c0_14] : memref<1x32xf32, #tpu.memory_space<vmem>>, vector<1x32xf32>
    %14 = vector.broadcast %13 : vector<1x32xf32> to vector<256x32xf32>
    %15 = arith.addf %12, %14 : vector<256x32xf32>
    %cst_15 = arith.constant 0.000000e+00 : f32
    %16 = vector.broadcast %cst_15 : f32 to vector<256x32xf32>
    %17 = arith.maximumf %15, %16 : vector<256x32xf32>
    %c0_16 = arith.constant 0 : index
    %c0_17 = arith.constant 0 : index
    %18 = vector.load %arg5[%c0_16, %c0_17] : memref<32x32xf32, #tpu.memory_space<vmem>>, vector<32x32xf32>
    %cst_18 = arith.constant dense<0.000000e+00> : vector<256x32xf32>
    %19 = tpu.matmul %17, %18, %cst_18 {dimension_numbers = #tpu.dot_dimension_numbers<[1], [0], [0], [1], [0, 0, 1, 1], [], []>} : vector<256x32xf32>, vector<32x32xf32>, vector<256x32xf32> -> vector<256x32xf32>
    %cst_19 = arith.constant 0.176776692 : f32
    %20 = vector.broadcast %cst_19 : f32 to vector<256x32xf32>
    %21 = arith.mulf %19, %20 : vector<256x32xf32>
    %c0_20 = arith.constant 0 : index
    %c0_21 = arith.constant 0 : index
    %22 = vector.load %arg6[%c0_20, %c0_21] : memref<32x64xf32, #tpu.memory_space<vmem>>, vector<32x64xf32>
    %cst_22 = arith.constant dense<0.000000e+00> : vector<256x64xf32>
    %23 = tpu.matmul %10, %22, %cst_22 {dimension_numbers = #tpu.dot_dimension_numbers<[1], [0], [0], [1], [0, 0, 1, 1], [], []>} : vector<256x32xf32>, vector<32x64xf32>, vector<256x64xf32> -> vector<256x64xf32>
    %24 = vector.extract_strided_slice %23 {offsets = [0, 0], sizes = [256, 32], strides = [1, 1]} : vector<256x64xf32> to vector<256x32xf32>
    %25 = vector.extract_strided_slice %23 {offsets = [0, 32], sizes = [256, 32], strides = [1, 1]} : vector<256x64xf32> to vector<256x32xf32>
    %cst_23 = arith.constant dense<0.000000e+00> : vector<256x256xf32>
    %26 = tpu.matmul %21, %24, %cst_23 {dimension_numbers = #tpu.dot_dimension_numbers<[1], [1], [0], [0], [0, 0, 1, 0], [], []>} : vector<256x32xf32>, vector<256x32xf32>, vector<256x256xf32> -> vector<256x256xf32>
    %cst_24 = arith.constant dense<0xFF800000> : vector<256xf32>
    %27 = vector.multi_reduction <maximumf>, %26, %cst_24 [1] : vector<256x256xf32> to vector<256xf32>
    %28 = vector.shape_cast %27 : vector<256xf32> to vector<256x1xf32>
    %29 = vector.broadcast %28 : vector<256x1xf32> to vector<256x256xf32>
    %30 = arith.subf %26, %29 : vector<256x256xf32>
    %31 = math.exp %30 : vector<256x256xf32>
    %cst_25 = arith.constant dense<0.000000e+00> : vector<256x32xf32>
    %32 = tpu.matmul %31, %25, %cst_25 {dimension_numbers = #tpu.dot_dimension_numbers<[1], [0], [0], [1], [0, 0, 1, 1], [], []>} : vector<256x256xf32>, vector<256x32xf32>, vector<256x32xf32> -> vector<256x32xf32>
    %cst_26 = arith.constant dense<0.000000e+00> : vector<256xf32>
    %33 = vector.multi_reduction <add>, %31, %cst_26 [1] : vector<256x256xf32> to vector<256xf32>
    %34 = vector.shape_cast %33 : vector<256xf32> to vector<256x1xf32>
    %35 = tpu.reciprocal %34 {approx = true} : vector<256x1xf32> -> vector<256x1xf32>
    %36 = vector.broadcast %35 : vector<256x1xf32> to vector<256x32xf32>
    %37 = arith.mulf %32, %36 : vector<256x32xf32>
    %c0_27 = arith.constant 0 : index
    %c0_28 = arith.constant 0 : index
    %38 = vector.load %arg7[%c0_27, %c0_28] : memref<32x32xf32, #tpu.memory_space<vmem>>, vector<32x32xf32>
    %cst_29 = arith.constant dense<0.000000e+00> : vector<256x32xf32>
    %39 = tpu.matmul %37, %38, %cst_29 {dimension_numbers = #tpu.dot_dimension_numbers<[1], [0], [0], [1], [0, 0, 1, 1], [], []>} : vector<256x32xf32>, vector<32x32xf32>, vector<256x32xf32> -> vector<256x32xf32>
    %40 = tpu.concatenate %10, %39 in 1 : vector<256x32xf32>, vector<256x32xf32> -> vector<256x64xf32>
    %c0_30 = arith.constant 0 : index
    %c0_31 = arith.constant 0 : index
    %c0_32 = arith.constant 0 : index
    %41 = vector.load %arg8[%c0_30, %c0_31, %c0_32] : memref<1x256x64xf32, #tpu.memory_space<vmem>>, vector<1x256x64xf32>
    %42 = vector.shape_cast %41 : vector<1x256x64xf32> to vector<256x64xf32>
    %43 = vector.shape_cast %40 : vector<256x64xf32> to vector<1x256x64xf32>
    tpu.vector_store %arg8[%c0_30, %c0_31, %c0_32], %43 {strides = array<i32>} : memref<1x256x64xf32, #tpu.memory_space<vmem>>, vector<1x256x64xf32>,
    return
  }
  func.func @transform_0(%arg0: i32) -> (i32, i32, i32) {
    %c0_i32 = arith.constant 0 : i32
    %c0_i32_0 = arith.constant 0 : i32
    %c0_i32_1 = arith.constant 0 : i32
    return %arg0, %c0_i32, %c0_i32_0 : i32, i32, i32
  }
  func.func @transform_1(%arg0: i32) -> (i32, i32, i32) {
    %c0_i32 = arith.constant 0 : i32
    %c0_i32_0 = arith.constant 0 : i32
    %c0_i32_1 = arith.constant 0 : i32
    return %arg0, %c0_i32, %c0_i32_0 : i32, i32, i32
  }
  func.func @transform_2(%arg0: i32) -> (i32, i32) {
    %c0_i32 = arith.constant 0 : i32
    %c0_i32_0 = arith.constant 0 : i32
    %c0_i32_1 = arith.constant 0 : i32
    return %c0_i32, %c0_i32_0 : i32, i32
  }
  func.func @transform_3(%arg0: i32) -> (i32, i32) {
    %c0_i32 = arith.constant 0 : i32
    %c0_i32_0 = arith.constant 0 : i32
    %c0_i32_1 = arith.constant 0 : i32
    return %c0_i32, %c0_i32_0 : i32, i32
  }
  func.func @transform_4(%arg0: i32) -> (i32, i32) {
    %c0_i32 = arith.constant 0 : i32
    %c0_i32_0 = arith.constant 0 : i32
    %c0_i32_1 = arith.constant 0 : i32
    return %c0_i32, %c0_i32_0 : i32, i32
  }
  func.func @transform_5(%arg0: i32) -> (i32, i32) {
    %c0_i32 = arith.constant 0 : i32
    %c0_i32_0 = arith.constant 0 : i32
    %c0_i32_1 = arith.constant 0 : i32
    return %c0_i32, %c0_i32_0 : i32, i32
  }
  func.func @transform_6(%arg0: i32) -> (i32, i32) {
    %c0_i32 = arith.constant 0 : i32
    %c0_i32_0 = arith.constant 0 : i32
    %c0_i32_1 = arith.constant 0 : i32
    return %c0_i32, %c0_i32_0 : i32, i32
  }
  func.func @transform_7(%arg0: i32) -> (i32, i32, i32) {
    %c0_i32 = arith.constant 0 : i32
    %c0_i32_0 = arith.constant 0 : i32
    %c0_i32_1 = arith.constant 0 : i32
    return %arg0, %c0_i32, %c0_i32_0 : i32, i32, i32
  }
}

</mosaic_0001>

<bundles_post_ra>
// kernel: tpu_custom_call.1
= control target key start
LH: loop header
LB: loop body
LE: loop exit
PB: predicated region body
PF: predicated region fallthrough
CT: control target
= control target key end

     0   :  { %s4605_s24 = smov 0   ;;  %s5922_s0 = inlined_call_operand.vmem [shape: f32[2,256,3], index: 0, kind: input, shape index: {}]   ;;  %s5923_s1 = inlined_call_operand.vmem [shape: f32[2,256,3], index: 1, kind: input, shape index: {}]   ;;  %s5924_s2 = inlined_call_operand.vmem [shape: f32[3,32], index: 2, kind: input, shape index: {}]   ;;  %s5925_s3 = inlined_call_operand.vmem [shape: f32[1,32], index: 3, kind: input, shape index: {}]   ;;  %s5926_s4 = inlined_call_operand.vmem [shape: f32[32,32], index: 4, kind: input, shape index: {}]   ;;  %s5927_s5 = inlined_call_operand.vmem [shape: f32[32,64], index: 5, kind: input, shape index: {}]   ;;  %s5928_s6 = inlined_call_operand.vmem [shape: f32[32,32], index: 6, kind: input, shape index: {}]   ;;  %s5929_s7 = inlined_call_operand.vmem [shape: f32[2,256,64], index: 7, kind: output, shape index: {}]  }
   0x1 LB: > { %s3568_s25 = sadd.s32 4294967295, %s4560_s24   ;;  %p3572_p0 = scmp.ge.s32.totalorder %s4560_s24, 1  ;;  %s4560_s24 = sphi %s4605_s24, %s17_s24  }
   0x2   : > { %p247_p1 = scmp.lt.s32.totalorder %s4560_s24, 3 }
   0x4   : > { %p248_p2 = pnand %p3572_p0, %p247_p1 }
   0x6   : > { %251 = sbr.rel (%p248_p2) target bundleno = 1570 (0x622), region = 48 }
   0xb   : > { %v363_v0 = vld [vmem:[%s5924_s2] sm:$0x7]  ;;  %vm468_vm0 = vcmask 1042432   ;;  %p284_p3 = scmp.lt.s32.totalorder %s3568_s25, 1  ;;  %vm371_vm1 = vcmask 23552   ;;  %v1443_v9 = vld [vmem:[%s5927_s5 + $0x18] sm:$0xff] }
   0xc   : > { %4081 = vmatprep.subr.msk.mxu0 %vm468_vm0, %v363_v0  ;;  %4349 = vmatprep.subr.msk.mxu1 %vm468_vm0, %v363_v0  ;;  %v1442_v37 = vld [vmem:[%s5927_s5 + $0x10] sm:$0xff]  ;;  %v1441_v39 = vld [vmem:[%s5927_s5 + $0x8] sm:$0xff]  ;;  %v1440_v41 = vld [vmem:[%s5927_s5] sm:$0xff]  ;;  %vm1086_vm2 = vcmask 261120   ;;  %s4562_s9 = smov 96   ;;  %s4564_s18 = smov 32  }
   0xd   : > { %4082 = vmatpush3.msk.msra.mxu0 %vm468_vm0, %v363_v0  ;;  %s6136_s25 = smov (!%p284_p3, %s3568_s25), 1  ;;  %4350 = vmatpush3.msk.msra.mxu1 %vm468_vm0, %v363_v0  ;;  %vm3468_vm3 = vcmask 523264  }
   0xe   : > { %4131 = vmatprep.subr.msk.mxu1 %vm468_vm0, %v363_v0  ;;  %s4621_s28 = sshll.u32 %s6136_s25, 8 }
   0xf   : > { %s4627_s8 = scalar_lea.vmem %s5922_s0, %s4621_s28  ;;  %s4697_s13 = scalar_lea.vmem %s5923_s1, %s4621_s28 }
  0x10   : > { %v299_v1 = vld [vmem:[%s4627_s8] sm:$0xff]  ;;  %v300_v2 = vld [vmem:[%s4627_s8 + $0x8] sm:$0xff]  ;;  %v301_v3 = vld [vmem:[%s4627_s8 + $0x10] sm:$0xff]  ;;  %s5745_s21 = scalar_lea.vmem %s5929_s7, %s4621_s28 }
  0x11   : > { %4083 = vmatprep.mubr.msk.f32.mxu0 %vm371_vm1, %v299_v1  ;;  %v302_v4 = vld [vmem:[%s4627_s8 + $0x18] sm:$0xff]  ;;  %v303_v5 = vld [vmem:[%s4627_s8 + $0x20] sm:$0xff]  ;;  %v316_v7 = vld [vmem:[%s4627_s8 + $0x88] sm:$0xff] }
  0x12   : > { %4084 = vmatmul.mubr.msk.f32.vlgmr.msra.gmra.mxu0 %vm371_vm1, %v300_v2  ;;  %v315_v6 = vld [vmem:[%s4627_s8 + $0x80] sm:$0xff]  ;;  %v317_v8 = vld [vmem:[%s4627_s8 + $0x90] sm:$0xff]  ;;  %v304_v10 = vld [vmem:[%s4627_s8 + $0x28] sm:$0xff] }
  0x13   : > { %4086 = vmatprep.mubr.msk.f32.mxu0 %vm371_vm1, %v301_v3  ;;  %4107 = vmatprep.mubr.msk.f32.mxu1 %vm371_vm1, %v315_v6  ;;  %v305_v11 = vld [vmem:[%s4627_s8 + $0x30] sm:$0xff]  ;;  %v318_v12 = vld [vmem:[%s4627_s8 + $0x98] sm:$0xff]  ;;  %v319_v13 = vld [vmem:[%s4627_s8 + $0xa0] sm:$0xff] }
  0x14   : > { %4108 = vmatmul.mubr.msk.f32.vlgmr.msra.gmra.mxu1 %vm371_vm1, %v316_v7  ;;  %v306_v14 = vld [vmem:[%s4627_s8 + $0x38] sm:$0xff]  ;;  %v307_v15 = vld [vmem:[%s4627_s8 + $0x40] sm:$0xff]  ;;  %v320_v16 = vld [vmem:[%s4627_s8 + $0xa8] sm:$0xff] }
  0x15   : > { %4110 = vmatprep.mubr.msk.f32.mxu1 %vm371_vm1, %v317_v8  ;;  %4132 = vmatpush3.msk.msra.mxu1 %vm468_vm0, %v363_v0  ;;  %v321_v17 = vld [vmem:[%s4627_s8 + $0xb0] sm:$0xff]  ;;  %v308_v18 = vld [vmem:[%s4627_s8 + $0x48] sm:$0xff]  ;;  %v322_v20 = vld [vmem:[%s4627_s8 + $0xb8] sm:$0xff] }
  0x16   : > { %4087 = vmatmul.mubr.msk.f32.gmra.mxu0 %vm371_vm1, %v302_v4  ;;  %4237 = vmatprep.subr.mxu1 %v1443_v9  ;;  %v309_v19 = vld [vmem:[%s4627_s8 + $0x50] sm:$0xff]  ;;  %v323_v21 = vld [vmem:[%s4627_s8 + $0xc0] sm:$0xff]  ;;  %v310_v22 = vld [vmem:[%s4627_s8 + $0x58] sm:$0xff] }
  0x17   : > { %4089 = vmatprep.mubr.msk.f32.mxu0 %vm371_vm1, %v303_v5  ;;  %v311_v23 = vld [vmem:[%s4627_s8 + $0x60] sm:$0xff]  ;;  %v324_v24 = vld [vmem:[%s4627_s8 + $0xc8] sm:$0xff]  ;;  %v325_v25 = vld [vmem:[%s4627_s8 + $0xd0] sm:$0xff] }
  0x18   : > { %4111 = vmatmul.mubr.msk.f32.gmra.mxu1 %vm371_vm1, %v318_v12  ;;  %v312_v26 = vld [vmem:[%s4627_s8 + $0x68] sm:$0xff]  ;;  %v313_v27 = vld [vmem:[%s4627_s8 + $0x70] sm:$0xff]  ;;  %v326_v28 = vld [vmem:[%s4627_s8 + $0xd8] sm:$0xff] }
  0x19   : > { %4113 = vmatprep.mubr.msk.f32.mxu1 %vm371_vm1, %v319_v13  ;;  %v327_v29 = vld [vmem:[%s4627_s8 + $0xe0] sm:$0xff]  ;;  %v314_v30 = vld [vmem:[%s4627_s8 + $0x78] sm:$0xff]  ;;  %v328_v31 = vld [vmem:[%s4627_s8 + $0xe8] sm:$0xff] }
  0x1a   : > { %4090 = vmatmul.mubr.msk.f32.gmra.mxu0 %vm371_vm1, %v304_v10  ;;  %v329_v32 = vld [vmem:[%s4627_s8 + $0xf0] sm:$0xff]  ;;  %v330_v33 = vld [vmem:[%s4627_s8 + $0xf8] sm:$0xff]  ;;  %v331_v34 = vld [vmem:[%s4697_s13] sm:$0xff] }
  0x1b   : > { %4092 = vmatprep.mubr.msk.f32.mxu0 %vm371_vm1, %v305_v11  ;;  %v332_v35 = vld [vmem:[%s4697_s13 + $0x8] sm:$0xff]  ;;  %v333_v36 = vld [vmem:[%s4697_s13 + $0x10] sm:$0xff]  ;;  %v334_v38 = vld [vmem:[%s4697_s13 + $0x18] sm:$0xff] }
  0x1c   : > { %4114 = vmatmul.mubr.msk.f32.gmra.mxu1 %vm371_vm1, %v320_v16  ;;  %v335_v40 = vld [vmem:[%s4697_s13 + $0x20] sm:$0xff]  ;;  %v336_v42 = vld [vmem:[%s4697_s13 + $0x28] sm:$0xff]  ;;  %v337_v43 = vld [vmem:[%s4697_s13 + $0x30] sm:$0xff] }
  0x1d   : > { %4116 = vmatprep.mubr.msk.f32.mxu1 %vm371_vm1, %v321_v17  ;;  %v338_v44 = vld [vmem:[%s4697_s13 + $0x38] sm:$0xff]  ;;  %v339_v45 = vld [vmem:[%s4697_s13 + $0x40] sm:$0xff]  ;;  %v340_v46 = vld [vmem:[%s4697_s13 + $0x48] sm:$0xff] }
  0x1e   : > { %4093 = vmatmul.mubr.msk.f32.gmra.mxu0 %vm371_vm1, %v306_v14  ;;  %v341_v47 = vld [vmem:[%s4697_s13 + $0x50] sm:$0xff]  ;;  %v342_v48 = vld [vmem:[%s4697_s13 + $0x58] sm:$0xff]  ;;  %v343_v49 = vld [vmem:[%s4697_s13 + $0x60] sm:$0xff] }
  0x1f   : > { %4095 = vmatprep.mubr.msk.f32.mxu0 %vm371_vm1, %v307_v15  ;;  %v344_v50 = vld [vmem:[%s4697_s13 + $0x68] sm:$0xff]  ;;  %v345_v51 = vld [vmem:[%s4697_s13 + $0x70] sm:$0xff]  ;;  %v346_v52 = vld [vmem:[%s4697_s13 + $0x78] sm:$0xff] }
  0x20   : > { %4117 = vmatmul.mubr.msk.f32.gmra.mxu1 %vm371_vm1, %v322_v20  ;;  %v347_v53 = vld [vmem:[%s4697_s13 + $0x80] sm:$0xff]  ;;  %v348_v54 = vld [vmem:[%s4697_s13 + $0x88] sm:$0xff]  ;;  %v349_v55 = vld [vmem:[%s4697_s13 + $0x90] sm:$0xff] }
  0x21   : > { %4119 = vmatprep.mubr.msk.f32.mxu1 %vm371_vm1, %v323_v21  ;;  %v350_v56 = vld [vmem:[%s4697_s13 + $0x98] sm:$0xff]  ;;  %v351_v57 = vld [vmem:[%s4697_s13 + $0xa0] sm:$0xff]  ;;  %v352_v58 = vld [vmem:[%s4697_s13 + $0xa8] sm:$0xff] }
  0x22   : > { %4096 = vmatmul.mubr.msk.f32.gmra.mxu0 %vm371_vm1, %v308_v18  ;;  %v353_v59 = vld [vmem:[%s4697_s13 + $0xb0] sm:$0xff]  ;;  %v354_v60 = vld [vmem:[%s4697_s13 + $0xb8] sm:$0xff]  ;;  %v355_v61 = vld [vmem:[%s4697_s13 + $0xc0] sm:$0xff] }
  0x23   : > { %4098 = vmatprep.mubr.msk.f32.mxu0 %vm371_vm1, %v309_v19  ;;  %v356_v62 = vld [vmem:[%s4697_s13 + $0xc8] sm:$0xff]  ;;  %v357_v63 = vld [vmem:[%s4697_s13 + $0xd0] sm:$0xff]  ;;  %v358_v0 = vld [vmem:[%s4697_s13 + $0xd8] sm:$0xff] }
  0x24   : > { %4120 = vmatmul.mubr.msk.f32.gmra.mxu1 %vm371_vm1, %v324_v24  ;;  %v359_v1 = vld [vmem:[%s4697_s13 + $0xe0] sm:$0xff]  ;;  %v360_v2 = vld [vmem:[%s4697_s13 + $0xe8] sm:$0xff]  ;;  %v361_v3 = vld [vmem:[%s4697_s13 + $0xf0] sm:$0xff] }
  0x25   : > { %4122 = vmatprep.mubr.msk.f32.mxu1 %vm371_vm1, %v325_v25  ;;  %v362_v4 = vld [vmem:[%s4697_s13 + $0xf8] sm:$0xff]  ;;  %v1084_v6 = vld [vmem:[%s5926_s4 + $0x10] sm:$0xff]  ;;  %v1083_v7 = vld [vmem:[%s5926_s4 + $0x8] sm:$0xff] }
  0x26   : > { %4099 = vmatmul.mubr.msk.f32.gmra.mxu0 %vm371_vm1, %v310_v22  ;;  %v1085_v5 = vld [vmem:[%s5926_s4 + $0x18] sm:$0xff]  ;;  %v1082_v8 = vld [vmem:[%s5926_s4] sm:$0xff] }
  0x27   : > { %4101 = vmatprep.mubr.msk.f32.mxu0 %vm371_vm1, %v311_v23  ;;  %4181 = vmatprep.subr.mxu0 %v1085_v5 }
  0x28   : > { %4123 = vmatmul.mubr.msk.f32.gmra.mxu1 %vm371_vm1, %v326_v28  ;;  %4182 = vmatpush3.msra.mxu0 %v1085_v5 }
  0x29   : > { %4125 = vmatprep.mubr.msk.f32.mxu1 %vm371_vm1, %v327_v29  ;;  %4183 = vmatprep.subr.mxu0 %v1084_v6 }
  0x2a   : > { %4102 = vmatmul.mubr.msk.f32.gmra.mxu0 %vm371_vm1, %v312_v26 }
  0x2b   : > { %4104 = vmatprep.mubr.msk.f32.mxu0 %vm371_vm1, %v313_v27  ;;  %4184 = vmatpush3.msra.mxu0 %v1084_v6 }
  0x2c   : > { %4126 = vmatmul.mubr.msk.f32.gmra.mxu1 %vm371_vm1, %v328_v31  ;;  %4185 = vmatprep.subr.mxu0 %v1083_v7 }
  0x2d   : > { %4128 = vmatprep.mubr.msk.f32.mxu1 %vm371_vm1, %v329_v32  ;;  %4186 = vmatpush3.msra.mxu0 %v1083_v7 }
  0x2e   : > { %4105 = vmatmul.mubr.msk.f32.gmra.mxu0 %vm371_vm1, %v314_v30  ;;  %4187 = vmatprep.subr.mxu0 %v1082_v8 }
  0x2f   : > { %4188 = vmatpush3.msra.mxu0 %v1082_v8 }
  0x30   : > { %4129 = vmatmul.mubr.msk.f32.gmra.mxu1 %vm371_vm1, %v330_v33 }
  0x31   : > { %4133 = vmatprep.mubr.msk.f32.mxu1 %vm371_vm1, %v331_v34 }
  0x34   : > { %4134 = vmatmul.mubr.msk.f32.vlgmr.msra.gmra.mxu1 %vm371_vm1, %v332_v35 }
  0x35   : > { %4136 = vmatprep.mubr.msk.f32.mxu1 %vm371_vm1, %v333_v36  ;;  %4238 = vmatpush3.msra.mxu1 %v1443_v9  ;;  %v4791_v9 = vld [vmem:[%s5925_s3] ss:$0 sm:$0xff] }
  0x36   : > { %4239 = vmatprep.subr.mxu1 %v1442_v37 }
  0x37   : > { %4240 = vmatpush3.msra.mxu1 %v1442_v37 }
  0x38   : > { %4137 = vmatmul.mubr.msk.f32.gmra.mxu1 %vm371_vm1, %v334_v38  ;;  %4241 = vmatprep.subr.mxu1 %v1441_v39 }
  0x39   : > { %4139 = vmatprep.mubr.msk.f32.mxu1 %vm371_vm1, %v335_v40  ;;  %4242 = vmatpush3.msra.mxu1 %v1441_v39 }
  0x3a   : > { %4243 = vmatprep.subr.mxu1 %v1440_v41 }
  0x3b   : > { %4244 = vmatpush3.msra.mxu1 %v1440_v41 }
  0x3c   : > { %4140 = vmatmul.mubr.msk.f32.gmra.mxu1 %vm371_vm1, %v336_v42 }
  0x3d   : > { %4142 = vmatprep.mubr.msk.f32.mxu1 %vm371_vm1, %v337_v43 }
  0x40   : > { %4143 = vmatmul.mubr.msk.f32.gmra.mxu1 %vm371_vm1, %v338_v44 }
  0x41   : > { %4145 = vmatprep.mubr.msk.f32.mxu1 %vm371_vm1, %v339_v45 }
  0x44   : > { %4146 = vmatmul.mubr.msk.f32.gmra.mxu1 %vm371_vm1, %v340_v46 }
  0x45   : > { %4148 = vmatprep.mubr.msk.f32.mxu1 %vm371_vm1, %v341_v47 }
  0x48   : > { %4149 = vmatmul.mubr.msk.f32.gmra.mxu1 %vm371_vm1, %v342_v48 }
  0x49   : > { %4151 = vmatprep.mubr.msk.f32.mxu1 %vm371_vm1, %v343_v49 }
  0x4c   : > { %4152 = vmatmul.mubr.msk.f32.gmra.mxu1 %vm371_vm1, %v344_v50 }
  0x4d   : > { %4154 = vmatprep.mubr.msk.f32.mxu1 %vm371_vm1, %v345_v51 }
  0x50   : > { %4155 = vmatmul.mubr.msk.f32.gmra.mxu1 %vm371_vm1, %v346_v52 }
  0x51   : > { %4157 = vmatprep.mubr.msk.f32.mxu1 %vm371_vm1, %v347_v53 }
  0x54   : > { %4158 = vmatmul.mubr.msk.f32.gmra.mxu1 %vm371_vm1, %v348_v54 }
  0x55   : > { %4160 = vmatprep.mubr.msk.f32.mxu1 %vm371_vm1, %v349_v55 }
  0x58   : > { %4161 = vmatmul.mubr.msk.f32.gmra.mxu1 %vm371_vm1, %v350_v56 }
  0x59   : > { %4163 = vmatprep.mubr.msk.f32.mxu1 %vm371_vm1, %v351_v57 }
  0x5c   : > { %4164 = vmatmul.mubr.msk.f32.gmra.mxu1 %vm371_vm1, %v352_v58 }
  0x5d   : > { %4166 = vmatprep.mubr.msk.f32.mxu1 %vm371_vm1, %v353_v59 }
  0x60   : > { %4167 = vmatmul.mubr.msk.f32.gmra.mxu1 %vm371_vm1, %v354_v60 }
  0x61   : > { %4169 = vmatprep.mubr.msk.f32.mxu1 %vm371_vm1, %v355_v61 }
  0x64   : > { %4170 = vmatmul.mubr.msk.f32.gmra.mxu1 %vm371_vm1, %v356_v62 }
  0x65   : > { %4172 = vmatprep.mubr.msk.f32.mxu1 %vm371_vm1, %v357_v63 }
  0x68   : > { %4173 = vmatmul.mubr.msk.f32.gmra.mxu1 %vm371_vm1, %v358_v0 }
  0x69   : > { %4175 = vmatprep.mubr.msk.f32.mxu1 %vm371_vm1, %v359_v1 }
  0x6c   : > { %4176 = vmatmul.mubr.msk.f32.gmra.mxu1 %vm371_vm1, %v360_v2 }
  0x6d   : > { %4178 = vmatprep.mubr.msk.f32.mxu1 %vm371_vm1, %v361_v3 }
  0x70   : > { %4179 = vmatmul.mubr.msk.f32.gmra.mxu1 %vm371_vm1, %v362_v4 }
  0xd2   : > { %v4085_v10 = vpop.f32.mrf.mxu0 }
  0xd3   : > { %v4794_v11 = vadd.f32 %v4085_v10, %v4791_v9 }
  0xd4   : > { %v538_v12 = vpop.f32.mrf.mxu0  ;;  %v4800_v16 = vpop.f32.mrf.mxu1 }
  0xd5   : > { %6010 = vst [vmem:[#allocation2_spill] sm:$0xff] %v4794_v11  ;;  %v4797_v13 = vadd.f32 %v4791_v9, %v538_v12  ;;  %v5961_v17 = vmax.f32 %v4794_v11, 0.0 }
  0xd6   : > { %v4088_v14 = vpop.f32.mrf.mxu0  ;;  %v618_v21 = vpop.f32.mrf.mxu1 }
  0xd7   : > { %6011 = vst [vmem:[#allocation3_spill] sm:$0xff] %v4797_v13  ;;  %v5960_v15 = vmax.f32 %v4797_v13, 0.0  ;;  %v4804_v18 = vadd.f32 %v4088_v14, %v4791_v9  ;;  %v4897_v0 = vadd.f32 %v4791_v9, %v618_v21 }
  0xd8   : > { %v548_v19 = vpop.f32.mrf.mxu0  ;;  %v4816_v24 = vpop.f32.mrf.mxu1 }
  0xd9   : > { %6012 = vst [vmem:[#allocation4_spill] sm:$0xff] %v4804_v18  ;;  %v4807_v20 = vadd.f32 %v4791_v9, %v548_v19  ;;  %4245 = vmatprep.mubr.msk.f32.mxu1 %vm1086_vm2, %v5960_v15  ;;  %v5959_v25 = vmax.f32 %v4804_v18, 0.0  ;;  %6024 = vst [vmem:[#allocation16_spill] sm:$0xff] %v4897_v0  ;;  %v5943_v8 = vmax.f32 %v4897_v0, 0.0  ;;  %v4926_v19 = vadd.f32 %v4800_v16, %v4791_v9 }
  0xda   : > { %v4091_v22 = vpop.f32.mrf.mxu0  ;;  %4246 = vmatmul.mubr.msk.f32.vlgmr.msra.gmra.mxu1 %vm1086_vm2, %v5961_v17  ;;  %v628_v29 = vpop.f32.mrf.mxu1 }
  0xdb   : > { %6013 = vst [vmem:[#allocation5_spill] sm:$0xff] %v4807_v20  ;;  %v5958_v23 = vmax.f32 %v4807_v20, 0.0  ;;  %v4820_v26 = vadd.f32 %v4091_v22, %v4791_v9  ;;  %v4919_v10 = vadd.f32 %v4791_v9, %v628_v29  ;;  %6028 = vst [vmem:[#allocation20_spill] sm:$0xff] %v4926_v19  ;;  %v5945_v29 = vmax.f32 %v4926_v19, 0.0 }
  0xdc   : > { %v558_v27 = vpop.f32.mrf.mxu0  ;;  %v4832_v32 = vpop.f32.mrf.mxu1 }
  0xdd   : > { %6014 = vst [vmem:[#allocation6_spill] sm:$0xff] %v4820_v26  ;;  %v4823_v28 = vadd.f32 %v4791_v9, %v558_v27  ;;  %4248 = vmatprep.mubr.msk.f32.mxu1 %vm1086_vm2, %v5958_v23  ;;  %v5957_v33 = vmax.f32 %v4820_v26, 0.0  ;;  %6027 = vst [vmem:[#allocation19_spill] sm:$0xff] %v4919_v10  ;;  %v5930_v22 = vmax.f32 %v4919_v10, 0.0 }
  0xde   : > { %v4094_v30 = vpop.f32.mrf.mxu0  ;;  %4249 = vmatmul.mubr.msk.f32.gmra.mxu1 %vm1086_vm2, %v5959_v25  ;;  %v638_v37 = vpop.f32.mrf.mxu1 }
  0xdf   : > { %6015 = vst [vmem:[#allocation7_spill] sm:$0xff] %v4823_v28  ;;  %v5956_v31 = vmax.f32 %v4823_v28, 0.0  ;;  %v4836_v34 = vadd.f32 %v4094_v30, %v4791_v9  ;;  %v4941_v27 = vadd.f32 %v4791_v9, %v638_v37  ;;  %v4946_v30 = vadd.f32 %v4816_v24, %v4791_v9 }
  0xe0   : > { %v568_v35 = vpop.f32.mrf.mxu0  ;;  %v4848_v40 = vpop.f32.mrf.mxu1 }
  0xe1   : > { %6016 = vst [vmem:[#allocation8_spill] sm:$0xff] %v4836_v34  ;;  %v4839_v36 = vadd.f32 %v4791_v9, %v568_v35  ;;  %4251 = vmatprep.mubr.msk.f32.mxu1 %vm1086_vm2, %v5956_v31  ;;  %v5955_v41 = vmax.f32 %v4836_v34, 0.0  ;;  %6029 = vst [vmem:[#allocation21_spill] sm:$0xff] %v4941_v27 }
  0xe2   : > { %v4097_v38 = vpop.f32.mrf.mxu0  ;;  %4252 = vmatmul.mubr.msk.f32.gmra.mxu1 %vm1086_vm2, %v5957_v33  ;;  %v648_v45 = vpop.f32.mrf.mxu1  ;;  %6030 = vst [vmem:[#allocation22_spill] sm:$0xff] %v4946_v30 }
  0xe3   : > { %6017 = vst [vmem:[#allocation9_spill] sm:$0xff] %v4839_v36  ;;  %v5954_v39 = vmax.f32 %v4839_v36, 0.0  ;;  %v4852_v42 = vadd.f32 %v4097_v38, %v4791_v9  ;;  %v4958_v37 = vadd.f32 %v4791_v9, %v648_v45 }
  0xe4   : > { %v578_v43 = vpop.f32.mrf.mxu0  ;;  %v4864_v48 = vpop.f32.mrf.mxu1 }
  0xe5   : > { %6018 = vst [vmem:[#allocation10_spill] sm:$0xff] %v4852_v42  ;;  %v4855_v44 = vadd.f32 %v4791_v9, %v578_v43  ;;  %4254 = vmatprep.mubr.msk.f32.mxu1 %vm1086_vm2, %v5954_v39  ;;  %v5953_v49 = vmax.f32 %v4852_v42, 0.0  ;;  %6031 = vst [vmem:[#allocation23_spill] sm:$0xff] %v4958_v37 }
  0xe6   : > { %v4100_v46 = vpop.f32.mrf.mxu0  ;;  %4255 = vmatmul.mubr.msk.f32.gmra.mxu1 %vm1086_vm2, %v5955_v41  ;;  %v658_v53 = vpop.f32.mrf.mxu1 }
  0xe7   : > { %6019 = vst [vmem:[#allocation11_spill] sm:$0xff] %v4855_v44  ;;  %v5952_v47 = vmax.f32 %v4855_v44, 0.0  ;;  %v4868_v50 = vadd.f32 %v4100_v46, %v4791_v9  ;;  %v5932_v46 = vmax.f32 %v4941_v27, 0.0 }
  0xe8   : > { %v588_v51 = vpop.f32.mrf.mxu0  ;;  %v4880_v56 = vpop.f32.mrf.mxu1 }
  0xe9   : > { %6020 = vst [vmem:[#allocation12_spill] sm:$0xff] %v4868_v50  ;;  %v4871_v52 = vadd.f32 %v4791_v9, %v588_v51  ;;  %4257 = vmatprep.mubr.msk.f32.mxu1 %vm1086_vm2, %v5952_v47  ;;  %v5951_v57 = vmax.f32 %v4868_v50, 0.0 }
  0xea   : > { %v4103_v54 = vpop.f32.mrf.mxu0  ;;  %4258 = vmatmul.mubr.msk.f32.gmra.mxu1 %vm1086_vm2, %v5953_v49  ;;  %v668_v61 = vpop.f32.mrf.mxu1 }
  0xeb   : > { %6021 = vst [vmem:[#allocation13_spill] sm:$0xff] %v4871_v52  ;;  %v5950_v55 = vmax.f32 %v4871_v52, 0.0  ;;  %v4884_v58 = vadd.f32 %v4103_v54, %v4791_v9  ;;  %v5931_v54 = vmax.f32 %v4946_v30, 0.0 }
  0xec   : > { %v598_v59 = vpop.f32.mrf.mxu0  ;;  %v4899_v1 = vpop.f32.mrf.mxu1 }
  0xed   : > { %6022 = vst [vmem:[#allocation14_spill] sm:$0xff] %v4884_v58  ;;  %v4887_v60 = vadd.f32 %v4791_v9, %v598_v59  ;;  %4260 = vmatprep.mubr.msk.f32.mxu1 %vm1086_vm2, %v5950_v55  ;;  %v5949_v2 = vmax.f32 %v4884_v58, 0.0  ;;  %v4963_v59 = vadd.f32 %v4832_v32, %v4791_v9  ;;  %v4976_v32 = vadd.f32 %v4791_v9, %v658_v53 }
  0xee   : > { %v4106_v62 = vpop.f32.mrf.mxu0  ;;  %4261 = vmatmul.mubr.msk.f32.gmra.mxu1 %vm1086_vm2, %v5951_v57  ;;  %v4911_v6 = vpop.f32.mrf.mxu1 }
  0xef   : > { %6023 = vst [vmem:[#allocation15_spill] sm:$0xff] %v4887_v60  ;;  %v5948_v63 = vmax.f32 %v4887_v60, 0.0  ;;  %v4903_v3 = vadd.f32 %v4106_v62, %v4791_v9  ;;  %6032 = vst [vmem:[#allocation24_spill] sm:$0xff] %v4963_v59 }
  0xf0   : > { %v608_v4 = vpop.f32.mrf.mxu0  ;;  %v4921_v12 = vpop.f32.mrf.mxu1  ;;  %6033 = vst [vmem:[#allocation25_spill] sm:$0xff] %v4976_v32 }
  0xf1   : > { %6025 = vst [vmem:[#allocation17_spill] sm:$0xff] %v4903_v3  ;;  %v4906_v5 = vadd.f32 %v4791_v9, %v608_v4  ;;  %4263 = vmatprep.mubr.msk.f32.mxu1 %vm1086_vm2, %v5948_v63  ;;  %v5947_v14 = vmax.f32 %v4903_v3, 0.0 }
  0xf2   : > { %4264 = vmatmul.mubr.msk.f32.gmra.mxu1 %vm1086_vm2, %v5949_v2  ;;  %v4931_v21 = vpop.f32.mrf.mxu1 }
  0xf3   : > { %6026 = vst [vmem:[#allocation18_spill] sm:$0xff] %v4906_v5  ;;  %v5946_v7 = vmax.f32 %v4906_v5, 0.0 }
  0xf4   : > { %v4135_v16 = vpop.f32.mrf.mxu1 }
  0xf5   : > { %4266 = vmatprep.mubr.msk.f32.mxu1 %vm1086_vm2, %v5946_v7  ;;  %v897_v35 = vadd.f32 %v4135_v16, %v4791_v9 }
  0xf6   : > { %4267 = vmatmul.mubr.msk.f32.gmra.mxu1 %vm1086_vm2, %v5947_v14  ;;  %v891_v38 = vpop.f32.mrf.mxu1 }
  0xf7   : > { %4269 = vmatprep.mubr.msk.f32.mxu1 %vm1086_vm2, %v5943_v8  ;;  %v892_v43 = vadd.f32 %v4791_v9, %v891_v38  ;;  %v1051_v24 = vmax.f32 %v897_v35, 0.0  ;;  %v5934_v35 = vmax.f32 %v4958_v37, 0.0 }
  0xf8   : > { %v4138_v51 = vpop.f32.mrf.mxu1 }
  0xf9   : > { %v1050_v62 = vmax.f32 %v892_v43, 0.0  ;;  %v907_v4 = vadd.f32 %v4138_v51, %v4791_v9  ;;  %v5933_v51 = vmax.f32 %v4963_v59, 0.0 }
  0xfa   : > { %4270 = vmatmul.mubr.msk.f32.gmra.mxu1 %vm1086_vm2, %v5945_v29  ;;  %v901_v16 = vpop.f32.mrf.mxu1 }
  0xfb   : > { %4272 = vmatprep.mubr.msk.f32.mxu1 %vm1086_vm2, %v5930_v22  ;;  %4189 = vmatprep.mubr.msk.f32.mxu0 %vm1086_vm2, %v1050_v62  ;;  %v902_v45 = vadd.f32 %v4791_v9, %v901_v16  ;;  %v1053_v38 = vmax.f32 %v907_v4, 0.0  ;;  %v4982_v62 = vadd.f32 %v4848_v40, %v4791_v9  ;;  %v4995_v40 = vadd.f32 %v4791_v9, %v668_v61 }
  0xfc   : > { %4190 = vmatmul.mubr.msk.f32.vlgmr.msra.gmra.mxu0 %vm1086_vm2, %v1051_v24  ;;  %v4141_v43 = vpop.f32.mrf.mxu1  ;;  %v5936_v24 = vmax.f32 %v4976_v32, 0.0 }
  0xfd   : > { %6034 = vst [vmem:[#allocation26_spill] sm:$0xff] %v4982_v62  ;;  %v1052_v16 = vmax.f32 %v902_v45, 0.0  ;;  %v917_v22 = vadd.f32 %v4141_v43, %v4791_v9  ;;  %6035 = vst [vmem:[#allocation27_spill] sm:$0xff] %v4995_v40  ;;  %v5935_v43 = vmax.f32 %v4982_v62, 0.0 }
  0xfe   : > { %4273 = vmatmul.mubr.msk.f32.gmra.mxu1 %vm1086_vm2, %v5931_v54  ;;  %v911_v54 = vpop.f32.mrf.mxu1 }
  0xff   : > { %4275 = vmatprep.mubr.msk.f32.mxu1 %vm1086_vm2, %v5932_v46  ;;  %4192 = vmatprep.mubr.msk.f32.mxu0 %vm1086_vm2, %v1052_v16  ;;  %v912_v53 = vadd.f32 %v4791_v9, %v911_v54  ;;  %v1055_v4 = vmax.f32 %v917_v22, 0.0  ;;  %v5001_v16 = vadd.f32 %v4864_v48, %v4791_v9  ;;  %v5938_v22 = vmax.f32 %v4995_v40, 0.0 }
 0x100   : > { %4193 = vmatmul.mubr.msk.f32.gmra.mxu0 %vm1086_vm2, %v1053_v38  ;;  %v4144_v45 = vpop.f32.mrf.mxu1  ;;  %v5015_v48 = vadd.f32 %v4791_v9, %v4911_v6 }
 0x101   : > { %6036 = vst [vmem:[#allocation28_spill] sm:$0xff] %v5001_v16  ;;  %v1054_v54 = vmax.f32 %v912_v53, 0.0  ;;  %v927_v46 = vadd.f32 %v4144_v45, %v4791_v9  ;;  %v5937_v45 = vmax.f32 %v5001_v16, 0.0 }
 0x102   : > { %4276 = vmatmul.mubr.msk.f32.gmra.mxu1 %vm1086_vm2, %v5933_v51  ;;  %v921_v51 = vpop.f32.mrf.mxu1  ;;  %6037 = vst [vmem:[#allocation29_spill] sm:$0xff] %v5015_v48 }
 0x103   : > { %4278 = vmatprep.mubr.msk.f32.mxu1 %vm1086_vm2, %v5934_v35  ;;  %4195 = vmatprep.mubr.msk.f32.mxu0 %vm1086_vm2, %v1054_v54  ;;  %v922_v61 = vadd.f32 %v4791_v9, %v921_v51  ;;  %v1057_v38 = vmax.f32 %v927_v46, 0.0  ;;  %v5021_v54 = vadd.f32 %v4880_v56, %v4791_v9  ;;  %v5939_v46 = vmax.f32 %v5015_v48, 0.0 }
 0x104   : > { %4196 = vmatmul.mubr.msk.f32.gmra.mxu0 %vm1086_vm2, %v1055_v4  ;;  %v4147_v53 = vpop.f32.mrf.mxu1  ;;  %v5035_v56 = vadd.f32 %v4791_v9, %v4931_v21 }
 0x105   : > { %6038 = vst [vmem:[#allocation30_spill] sm:$0xff] %v5021_v54  ;;  %v1056_v51 = vmax.f32 %v922_v61, 0.0  ;;  %v937_v35 = vadd.f32 %v4147_v53, %v4791_v9  ;;  %v5940_v53 = vmax.f32 %v5021_v54, 0.0 }
 0x106   : > { %4279 = vmatmul.mubr.msk.f32.gmra.mxu1 %vm1086_vm2, %v5935_v43  ;;  %v931_v43 = vpop.f32.mrf.mxu1  ;;  %6039 = vst [vmem:[#allocation31_spill] sm:$0xff] %v5035_v56 }
 0x107   : > { %4281 = vmatprep.mubr.msk.f32.mxu1 %vm1086_vm2, %v5936_v24  ;;  %4198 = vmatprep.mubr.msk.f32.mxu0 %vm1086_vm2, %v1056_v51  ;;  %v932_v6 = vadd.f32 %v4791_v9, %v931_v43  ;;  %v1059_v4 = vmax.f32 %v937_v35, 0.0  ;;  %v5041_v51 = vadd.f32 %v4899_v1, %v4791_v9  ;;  %v5941_v35 = vmax.f32 %v5035_v56, 0.0 }
 0x108   : > { %4199 = vmatmul.mubr.msk.f32.gmra.mxu0 %vm1086_vm2, %v1057_v38  ;;  %v4150_v61 = vpop.f32.mrf.mxu1 }
 0x109   : > { %6040 = vst [vmem:[#allocation32_spill] sm:$0xff] %v5041_v51  ;;  %v1058_v43 = vmax.f32 %v932_v6, 0.0  ;;  %v947_v24 = vadd.f32 %v4150_v61, %v4791_v9  ;;  %v5942_v6 = vmax.f32 %v5041_v51, 0.0  ;;  %v5057_v61 = vadd.f32 %v4921_v12, %v4791_v9 }
 0x10a   : > { %4282 = vmatmul.mubr.msk.f32.gmra.mxu1 %vm1086_vm2, %v5937_v45  ;;  %v941_v45 = vpop.f32.mrf.mxu1 }
 0x10b   : > { %4284 = vmatprep.mubr.msk.f32.mxu1 %vm1086_vm2, %v5938_v22  ;;  %v942_v21 = vadd.f32 %v4791_v9, %v941_v45  ;;  %4201 = vmatprep.mubr.msk.f32.mxu0 %vm1086_vm2, %v1058_v43  ;;  %v1061_v1 = vmax.f32 %v947_v24, 0.0  ;;  %6041 = vst [vmem:[#allocation33_spill] sm:$0xff] %v5057_v61  ;;  %v5944_v12 = vmax.f32 %v5057_v61, 0.0 }
 0x10c   : > { %v4153_v38 = vpop.f32.mrf.mxu1  ;;  %4202 = vmatmul.mubr.msk.f32.gmra.mxu0 %vm1086_vm2, %v1059_v4 }
 0x10d   : > { %v1060_v22 = vmax.f32 %v942_v21, 0.0  ;;  %v957_v45 = vadd.f32 %v4153_v38, %v4791_v9 }
 0x10e   : > { %4285 = vmatmul.mubr.msk.f32.gmra.mxu1 %vm1086_vm2, %v5940_v53  ;;  %v951_v43 = vpop.f32.mrf.mxu1 }
 0x10f   : > { %4287 = vmatprep.mubr.msk.f32.mxu1 %vm1086_vm2, %v5939_v46  ;;  %v952_v46 = vadd.f32 %v4791_v9, %v951_v43  ;;  %4204 = vmatprep.mubr.msk.f32.mxu0 %vm1086_vm2, %v1060_v22  ;;  %v1063_v24 = vmax.f32 %v957_v45, 0.0 }
 0x110   : > { %v4156_v4 = vpop.f32.mrf.mxu1  ;;  %4205 = vmatmul.mubr.msk.f32.gmra.mxu0 %vm1086_vm2, %v1061_v1 }
 0x111   : > { %v1062_v21 = vmax.f32 %v952_v46, 0.0  ;;  %v967_v38 = vadd.f32 %v4156_v4, %v4791_v9 }
 0x112   : > { %4288 = vmatmul.mubr.msk.f32.gmra.mxu1 %vm1086_vm2, %v5942_v6  ;;  %v961_v53 = vpop.f32.mrf.mxu1 }
 0x113   : > { %4290 = vmatprep.mubr.msk.f32.mxu1 %vm1086_vm2, %v5941_v35  ;;  %v962_v22 = vadd.f32 %v4791_v9, %v961_v53  ;;  %4207 = vmatprep.mubr.msk.f32.mxu0 %vm1086_vm2, %v1062_v21  ;;  %v1065_v43 = vmax.f32 %v967_v38, 0.0 }
 0x114   : > { %v4159_v35 = vpop.f32.mrf.mxu1  ;;  %4208 = vmatmul.mubr.msk.f32.gmra.mxu0 %vm1086_vm2, %v1063_v24 }
 0x115   : > { %v1064_v45 = vmax.f32 %v962_v22, 0.0  ;;  %v977_v1 = vadd.f32 %v4159_v35, %v4791_v9 }
 0x116   : > { %4291 = vmatmul.mubr.msk.f32.gmra.mxu1 %vm1086_vm2, %v5944_v12  ;;  %v971_v6 = vpop.f32.mrf.mxu1 }
 0x117   : > { %v972_v46 = vadd.f32 %v4791_v9, %v971_v6  ;;  %4210 = vmatprep.mubr.msk.f32.mxu0 %vm1086_vm2, %v1064_v45  ;;  %v1067_v4 = vmax.f32 %v977_v1, 0.0 }
 0x118   : > { %v4162_v8 = vpop.f32.mrf.mxu1  ;;  %4211 = vmatmul.mubr.msk.f32.gmra.mxu0 %vm1086_vm2, %v1065_v43 }
 0x119   : > { %v1066_v12 = vmax.f32 %v972_v46, 0.0  ;;  %v987_v53 = vadd.f32 %v4162_v8, %v4791_v9 }
 0x11a   : > { %v981_v21 = vpop.f32.mrf.mxu1 }
 0x11b   : > { %v982_v38 = vadd.f32 %v4791_v9, %v981_v21  ;;  %4213 = vmatprep.mubr.msk.f32.mxu0 %vm1086_vm2, %v1066_v12  ;;  %v1069_v24 = vmax.f32 %v987_v53, 0.0 }
 0x11c   : > { %v4165_v22 = vpop.f32.mrf.mxu1  ;;  %4214 = vmatmul.mubr.msk.f32.gmra.mxu0 %vm1086_vm2, %v1067_v4 }
 0x11d   : > { %v1068_v35 = vmax.f32 %v982_v38, 0.0  ;;  %v997_v6 = vadd.f32 %v4165_v22, %v4791_v9 }
 0x11e   : > { %v991_v45 = vpop.f32.mrf.mxu1 }
 0x11f   : > { %v992_v1 = vadd.f32 %v4791_v9, %v991_v45  ;;  %4216 = vmatprep.mubr.msk.f32.mxu0 %vm1086_vm2, %v1068_v35  ;;  %v1071_v43 = vmax.f32 %v997_v6, 0.0 }
 0x120   : > { %v4168_v46 = vpop.f32.mrf.mxu1  ;;  %4217 = vmatmul.mubr.msk.f32.gmra.mxu0 %vm1086_vm2, %v1069_v24 }
 0x121   : > { %v1070_v8 = vmax.f32 %v992_v1, 0.0  ;;  %v1007_v21 = vadd.f32 %v4168_v46, %v4791_v9 }
 0x122   : > { %v1001_v12 = vpop.f32.mrf.mxu1 }
 0x123   : > { %v1002_v53 = vadd.f32 %v4791_v9, %v1001_v12  ;;  %4219 = vmatprep.mubr.msk.f32.mxu0 %vm1086_vm2, %v1070_v8  ;;  %v1073_v4 = vmax.f32 %v1007_v21, 0.0 }
 0x124   : > { %v4171_v38 = vpop.f32.mrf.mxu1  ;;  %4220 = vmatmul.mubr.msk.f32.gmra.mxu0 %vm1086_vm2, %v1071_v43 }
 0x125   : > { %v1072_v22 = vmax.f32 %v1002_v53, 0.0  ;;  %v1017_v45 = vadd.f32 %v4171_v38, %v4791_v9 }
 0x126   : > { %v1011_v35 = vpop.f32.mrf.mxu1 }
 0x127   : > { %v1012_v6 = vadd.f32 %v4791_v9, %v1011_v35  ;;  %4222 = vmatprep.mubr.msk.f32.mxu0 %vm1086_vm2, %v1072_v22  ;;  %v1075_v24 = vmax.f32 %v1017_v45, 0.0 }
 0x128   : > { %v4174_v1 = vpop.f32.mrf.mxu1  ;;  %4223 = vmatmul.mubr.msk.f32.gmra.mxu0 %vm1086_vm2, %v1073_v4 }
 0x129   : > { %v1074_v46 = vmax.f32 %v1012_v6, 0.0  ;;  %v1027_v12 = vadd.f32 %v4174_v1, %v4791_v9 }
 0x12a   : > { %v1021_v8 = vpop.f32.mrf.mxu1 }
 0x12b   : > { %v1022_v21 = vadd.f32 %v4791_v9, %v1021_v8  ;;  %4225 = vmatprep.mubr.msk.f32.mxu0 %vm1086_vm2, %v1074_v46  ;;  %v1077_v43 = vmax.f32 %v1027_v12, 0.0 }
 0x12c   : > { %v4177_v53 = vpop.f32.mrf.mxu1  ;;  %4226 = vmatmul.mubr.msk.f32.gmra.mxu0 %vm1086_vm2, %v1075_v24 }
 0x12d   : > { %v1076_v38 = vmax.f32 %v1022_v21, 0.0  ;;  %v1037_v35 = vadd.f32 %v4177_v53, %v4791_v9 }
 0x12e   : > { %v1031_v22 = vpop.f32.mrf.mxu1 }
 0x12f   : > { %v1032_v45 = vadd.f32 %v4791_v9, %v1031_v22  ;;  %4228 = vmatprep.mubr.msk.f32.mxu0 %vm1086_vm2, %v1076_v38  ;;  %v1079_v4 = vmax.f32 %v1037_v35, 0.0 }
 0x130   : > { %v4180_v6 = vpop.f32.mrf.mxu1  ;;  %4229 = vmatmul.mubr.msk.f32.gmra.mxu0 %vm1086_vm2, %v1077_v43 }
 0x131   : > { %v1078_v1 = vmax.f32 %v1032_v45, 0.0  ;;  %v1047_v8 = vadd.f32 %v4180_v6, %v4791_v9  ;;  %v5962_v6 = vmov 0.0  }
 0x132   : > { %v1041_v46 = vpop.f32.mrf.mxu1  ;;  %2598 = vmatprep.subr.mxu1 %v5962_v6 }
 0x133   : > { %v1042_v12 = vadd.f32 %v4791_v9, %v1041_v46  ;;  %4231 = vmatprep.mubr.msk.f32.mxu0 %vm1086_vm2, %v1078_v1  ;;  %v1081_v24 = vmax.f32 %v1047_v8, 0.0 }
 0x134   : > { %4232 = vmatmul.mubr.msk.f32.gmra.mxu0 %vm1086_vm2, %v1079_v4 }
 0x135   : > { %v1080_v21 = vmax.f32 %v1042_v12, 0.0 }
 0x137   : > { %4234 = vmatprep.mubr.msk.f32.mxu0 %vm1086_vm2, %v1080_v21 }
 0x138   : > { %4235 = vmatmul.mubr.msk.f32.gmra.mxu0 %vm1086_vm2, %v1081_v24 }
 0x19a   : > { %v5111_v53 = vpop.f32.mrf.mxu1 }
 0x19b   : > { %2504 = vrot.lane.b32.xlu0 %v5111_v53, %s4562_s9 }
 0x19c   : > { %v5115_v43 = vpop.f32.mrf.mxu1 }
 0x19d   : > { %2502 = vrot.lane.b32.xlu1 %v5115_v43, %s4562_s9 }
 0x19e   : > { %v5119_v9 = vpop.f32.mrf.mxu1 }
 0x19f   : > { %2508 = vrot.lane.b32.xlu0 %v5119_v9, %s4562_s9 }
 0x1a0   : > { %v5123_v38 = vpop.f32.mrf.mxu1 }
 0x1a1   : > { %2506 = vrot.lane.b32.xlu1 %v5123_v38, %s4562_s9 }
 0x1a2   : > { %v5127_v35 = vpop.f32.mrf.mxu1 }
 0x1a3   : > { %2512 = vrot.lane.b32.xlu0 %v5127_v35, %s4562_s9 }
 0x1a4   : > { %v5131_v22 = vpop.f32.mrf.mxu1 }
 0x1a5   : > { %2510 = vrot.lane.b32.xlu1 %v5131_v22, %s4562_s9 }
 0x1a6   : > { %v5135_v45 = vpop.f32.mrf.mxu1 }
 0x1a7   : > { %2516 = vrot.lane.b32.xlu0 %v5135_v45, %s4562_s9 }
 0x1a8   : > { %v5139_v4 = vpop.f32.mrf.mxu1 }
 0x1a9   : > { %2514 = vrot.lane.b32.xlu1 %v5139_v4, %s4562_s9 }
 0x1aa   : > { %v4259_v1 = vpop.f32.mrf.mxu1 }
 0x1ab   : > { %2520 = vrot.lane.b32.xlu0 %v4259_v1, %s4562_s9 }
 0x1ac   : > { %v1646_v8 = vpop.f32.mrf.mxu1 }
 0x1ad   : > { %2518 = vrot.lane.b32.xlu1 %v1646_v8, %s4562_s9 }
 0x1ae   : > { %v4262_v46 = vpop.f32.mrf.mxu1 }
 0x1af   : > { %2524 = vrot.lane.b32.xlu0 %v4262_v46, %s4562_s9 }
 0x1b0   : > { %v1656_v12 = vpop.f32.mrf.mxu1 }
 0x1b1   : > { %2522 = vrot.lane.b32.xlu1 %v1656_v12, %s4562_s9 }
 0x1b2   : > { %v4265_v24 = vpop.f32.mrf.mxu1 }
 0x1b4   : > { %v1666_v21 = vpop.f32.mrf.mxu1 }
 0x1b5   : > { %2528 = vrot.lane.b32.xlu1 %v4265_v24, %s4562_s9 }
 0x1b6   : > { %v4268_v29 = vpop.f32.mrf.mxu1 }
 0x1b7   : > { %2532 = vrot.lane.b32.xlu0 %v4268_v29, %s4562_s9 }
 0x1b8   : > { %v1676_v7 = vpop.f32.mrf.mxu1 }
 0x1b9   : > { %2526 = vrot.lane.b32.xlu1 %v1666_v21, %s4562_s9 }
 0x1ba   : > { %v5151_v14 = vpop.f32.mrf.mxu1 }
 0x1bb   : > { %2530 = vrot.lane.b32.xlu0 %v1676_v7, %s4562_s9 }
 0x1bc   : > { %v5154_v63 = vpop.f32.mrf.mxu1  ;;  %v5157_v55 = vpop.f32.mrf.mxu0 }
 0x1be   : > { %v4274_v2 = vpop.f32.mrf.mxu1  ;;  %v1249_v47 = vpop.f32.mrf.mxu0 }
 0x1bf   : > { %2540 = vrot.lane.b32.xlu1 %v4274_v2, %s4562_s9  ;;  %v5161_v39 = vmul.f32 0.17677669, %v1249_v47 }
 0x1c0   : > { %v5159_v57 = vpop.f32.mrf.mxu1 }
 0x1c1   : > { %3981 = vmatprep.mubr.msk.f32.mxu0 %vm1086_vm2, %v5161_v39 }
 0x1c2   : > { %v4277_v49 = vpop.f32.mrf.mxu1 }
 0x1c3   : > { %2544 = vrot.lane.b32.xlu0 %v4277_v49, %s4562_s9 }
 0x1c4   : > { %v1706_v41 = vpop.f32.mrf.mxu1 }
 0x1c6   : > { %v4280_v31 = vpop.f32.mrf.mxu1 }
 0x1c7   : > { %2542 = vrot.lane.b32.xlu0 %v1706_v41, %s4562_s9  ;;  %2548 = vrot.lane.b32.xlu1 %v4280_v31, %s4562_s9 }
 0x1c8   : > { %v1716_v33 = vpop.f32.mrf.mxu1 }
 0x1ca   : > { %v4283_v23 = vpop.f32.mrf.mxu1 }
 0x1cb   : > { %2546 = vrot.lane.b32.xlu1 %v1716_v33, %s4562_s9  ;;  %2552 = vrot.lane.b32.xlu0 %v4283_v23, %s4562_s9 }
 0x1cc   : > { %v1726_v25 = vpop.f32.mrf.mxu1 }
 0x1ce   : > { %v4286_v47 = vpop.f32.mrf.mxu1 }
 0x1cf   : > { %2550 = vrot.lane.b32.xlu1 %v1726_v25, %s4562_s9 }
 0x1d0   : > { %v1736_v15 = vpop.f32.mrf.mxu1 }
 0x1d2   : > { %v4289_v17 = vpop.f32.mrf.mxu1 }
 0x1d3   : > { %2556 = vrot.lane.b32.xlu1 %v4286_v47, %s4562_s9  ;;  %2560 = vrot.lane.b32.xlu0 %v4289_v17, %s4562_s9 }
 0x1d4   : > { %v1746_v6 = vpop.f32.mrf.mxu1 }
 0x1d6   : > { %v4292_v56 = vpop.f32.mrf.mxu1 }
 0x1d7   : > { %2554 = vrot.lane.b32.xlu1 %v1736_v15, %s4562_s9  ;;  %3949 = vmatprep.subr.msk.mxu0 %vm1086_vm2, %v4292_v56 }
 0x1d8   : > { %v1756_v61 = vpop.f32.mrf.mxu1  ;;  %3950 = vmatpush3.xpose.msk.msra.mxu0 %vm1086_vm2, %v4268_v29 }
 0x1d9   : > { %3951 = vmatprep.subr.msk.mxu0 %vm1086_vm2, %v1756_v61 }
 0x1db   : > { %2558 = vrot.lane.b32.xlu1 %v1746_v6, %s4562_s9 }
 0x1dc   : > { %3952 = vmatpush3.xpose.msk.msra.mxu0 %vm1086_vm2, %v1676_v7 }
 0x1dd   : > { %3953 = vmatprep.subr.msk.mxu0 %vm1086_vm2, %v4289_v17 }
 0x1df   : > { %2564 = vrot.lane.b32.xlu1 %v4292_v56, %s4562_s9 }
 0x1e0   : > { %3954 = vmatpush3.xpose.msk.msra.mxu0 %vm1086_vm2, %v4265_v24 }
 0x1e1   : > { %3955 = vmatprep.subr.msk.mxu0 %vm1086_vm2, %v1746_v6 }
 0x1e3   : > { %2562 = vrot.lane.b32.xlu1 %v1756_v61, %s4562_s9 }
 0x1e4   : > { %3956 = vmatpush3.xpose.msk.msra.mxu0 %vm1086_vm2, %v1666_v21 }
 0x1e5   : > { %3957 = vmatprep.subr.msk.mxu0 %vm1086_vm2, %v4286_v47 }
 0x1e8   : > { %3958 = vmatpush3.xpose.msk.msra.mxu0 %vm1086_vm2, %v4262_v46 }
 0x1e9   : > { %3959 = vmatprep.subr.msk.mxu0 %vm1086_vm2, %v1736_v15 }
 0x1ec   : > { %3960 = vmatpush3.xpose.msk.msra.mxu0 %vm1086_vm2, %v1656_v12  ;;  %v6042_v12 = vmov 0.0  }
 0x1ed   : > { %3961 = vmatprep.subr.msk.mxu0 %vm1086_vm2, %v4283_v23 }
 0x1f0   : > { %3962 = vmatpush3.xpose.msk.msra.mxu0 %vm1086_vm2, %v4259_v1 }
 0x1f1   : > { %3963 = vmatprep.subr.msk.mxu0 %vm1086_vm2, %v1726_v25 }
 0x1f4   : > { %3964 = vmatpush3.xpose.msk.msra.mxu0 %vm1086_vm2, %v1646_v8 }
 0x1f5   : > { %3965 = vmatprep.subr.msk.mxu0 %vm1086_vm2, %v4280_v31  ;;  %v4194_v31 = vpop.f32.mrf.mxu0 }
 0x1f8   : > { %3966 = vmatpush3.xpose.msk.msra.mxu0 %vm1086_vm2, %v5135_v45 }
 0x1f9   : > { %3967 = vmatprep.subr.msk.mxu0 %vm1086_vm2, %v1716_v33 }
 0x1fc   : > { %3968 = vmatpush3.xpose.msk.msra.mxu0 %vm1086_vm2, %v5139_v4 }
 0x1fd   : > { %3969 = vmatprep.subr.msk.mxu0 %vm1086_vm2, %v4277_v49  ;;  %v1259_v49 = vpop.f32.mrf.mxu0 }
 0x1fe   : > { %v1410_v29 = vmul.f32 0.17677669, %v1259_v49 }
 0x1ff   : > { %v4197_v56 = vpop.f32.mrf.mxu0 }
 0x200   : > { %3970 = vmatpush3.xpose.msk.msra.mxu0 %vm1086_vm2, %v5127_v35  ;;  %v1413_v45 = vmul.f32 0.17677669, %v4197_v56 }
 0x201   : > { %3971 = vmatprep.subr.msk.mxu0 %vm1086_vm2, %v1706_v41  ;;  %v1409_v41 = vmul.f32 0.17677669, %v5157_v55  ;;  %v1269_v55 = vpop.f32.mrf.mxu0 }
 0x204   : > { %3972 = vmatpush3.xpose.msk.msra.mxu0 %vm1086_vm2, %v5131_v22 }
 0x205   : > { %3973 = vmatprep.subr.msk.mxu0 %vm1086_vm2, %v4274_v2 }
 0x208   : > { %3974 = vmatpush3.xpose.msk.msra.mxu0 %vm1086_vm2, %v5119_v9 }
 0x209   : > { %3975 = vmatprep.subr.msk.mxu0 %vm1086_vm2, %v5159_v57 }
 0x20c   : > { %3976 = vmatpush3.xpose.msk.msra.mxu0 %vm1086_vm2, %v5123_v38  ;;  %v4200_v38 = vpop.f32.mrf.mxu0 }
 0x20d   : > { %v5212_v15 = vpop.permute.xlu0 %2504  ;;  %3977 = vmatprep.subr.msk.mxu0 %vm1086_vm2, %v5151_v14  ;;  %v1415_v21 = vmul.f32 0.17677669, %v4200_v38 }
 0x20e   : > { %v1279_v4 = vpop.f32.mrf.mxu0 }
 0x20f   : > { %v5216_v17 = vpop.permute.xlu1 %2502  ;;  %v1414_v1 = vmul.f32 0.17677669, %v1279_v4 }
 0x210   : > { %3978 = vmatpush3.xpose.msk.msra.mxu0 %vm1086_vm2, %v5111_v53  ;;  %v1411_v53 = vmul.f32 0.17677669, %v4194_v31  ;;  %v4203_v46 = vpop.f32.mrf.mxu0 }
 0x211   : > { %v5220_v23 = vpop.permute.xlu0 %2508  ;;  %3979 = vmatprep.subr.msk.mxu0 %vm1086_vm2, %v5154_v63  ;;  %v1417_v56 = vmul.f32 0.17677669, %v4203_v46 }
 0x212   : > { %v1289_v47 = vpop.f32.mrf.mxu0 }
 0x213   : > { %v5224_v25 = vpop.permute.xlu1 %2506 }
 0x214   : > { %3980 = vmatpush3.xpose.msk.msra.mxu0 %vm1086_vm2, %v5115_v43  ;;  %v4206_v49 = vpop.f32.mrf.mxu0 }
 0x215   : > { %v5228_v33 = vpop.permute.xlu0 %2512 }
 0x217   : > { %v5231_v2 = vpop.permute.xlu1 %2510  ;;  %3982 = vmatmul.mubr.msk.f32.vlgmr.msra.gmra.mxu0 %vm1086_vm2, %v5161_v39  ;;  %v1412_v39 = vmul.f32 0.17677669, %v1269_v55 }
 0x218   : > { %3983 = vmatprep.mubr.msk.f32.mxu0 %vm1086_vm2, %v1409_v41 }
 0x219   : > { %v5236_v7 = vpop.permute.xlu0 %2516 }
 0x21b   : > { %v5238_v61 = vpop.permute.xlu1 %2514  ;;  %3984 = vmatmul.mubr.msk.f32.gmra.mxu0 %vm1086_vm2, %v1409_v41  ;;  %v1416_v41 = vmul.f32 0.17677669, %v1289_v47 }
 0x21c   : > { %3985 = vmatprep.mubr.msk.f32.mxu0 %vm1086_vm2, %v1410_v29 }
 0x21d   : > { %v2521_v43 = vpop.permute.xlu0 %2520 }
 0x21f   : > { %v2519_v9 = vpop.permute.xlu1 %2518  ;;  %3986 = vmatmul.mubr.msk.f32.gmra.mxu0 %vm1086_vm2, %v1410_v29 }
 0x220   : > { %3987 = vmatprep.mubr.msk.f32.mxu0 %vm1086_vm2, %v1411_v53 }
 0x221   : > { %v2525_v35 = vpop.permute.xlu0 %2524 }
 0x223   : > { %3988 = vmatmul.mubr.msk.f32.gmra.mxu0 %vm1086_vm2, %v1411_v53  ;;  %v2523_v22 = vpop.permute.xlu1 %2522  ;;  %v1299_v53 = vpop.f32.mrf.mxu0 }
 0x224   : > { %3989 = vmatprep.mubr.msk.f32.mxu0 %vm1086_vm2, %v1412_v39 }
 0x225   : > { %v4209_v38 = vpop.f32.mrf.mxu0 }
 0x227   : > { %3990 = vmatmul.mubr.msk.f32.gmra.mxu0 %vm1086_vm2, %v1412_v39  ;;  %v2529_v8 = vpop.permute.xlu1 %2528  ;;  %v1418_v39 = vmul.f32 0.17677669, %v1299_v53 }
 0x228   : > { %3991 = vmatprep.mubr.msk.f32.mxu0 %vm1086_vm2, %v1413_v45 }
 0x229   : > { %v2533_v6 = vpop.permute.xlu0 %2532 }
 0x22a   : > { %2599 = vmatpush1.msra.mxu1 %v2533_v6 }
 0x22b   : > { %3992 = vmatmul.mubr.msk.f32.gmra.mxu0 %vm1086_vm2, %v1413_v45  ;;  %2600 = vmatprep.subr.mxu1 %v6042_v12  ;;  %v2527_v31 = vpop.permute.xlu1 %2526 }
 0x22c   : > { %3993 = vmatprep.mubr.msk.f32.mxu0 %vm1086_vm2, %v1414_v1 }
 0x22d   : > { %v2531_v24 = vpop.permute.xlu0 %2530 }
 0x22e   : > { %2601 = vmatpush1.msra.mxu1 %v2531_v24 }
 0x22f   : > { %3994 = vmatmul.mubr.msk.f32.gmra.mxu0 %vm1086_vm2, %v1414_v1  ;;  %2602 = vmatprep.subr.mxu1 %v6042_v12 }
 0x230   : > { %3995 = vmatprep.mubr.msk.f32.mxu0 %vm1086_vm2, %v1415_v21  ;;  %2603 = vmatpush1.msra.mxu1 %v2529_v8 }
 0x231   : > { %2604 = vmatprep.subr.mxu1 %v6042_v12  ;;  %v5258_v29 = vpop.permute.xlu1 %2540 }
 0x232   : > { %2605 = vmatpush1.msra.mxu1 %v2527_v31 }
 0x233   : > { %3996 = vmatmul.mubr.msk.f32.gmra.mxu0 %vm1086_vm2, %v1415_v21  ;;  %2606 = vmatprep.subr.mxu1 %v6042_v12 }
 0x234   : > { %3997 = vmatprep.mubr.msk.f32.mxu0 %vm1086_vm2, %v1416_v41  ;;  %2607 = vmatpush1.msra.mxu1 %v2525_v35 }
 0x235   : > { %2608 = vmatprep.subr.mxu1 %v6042_v12  ;;  %v5289_v4 = vpop.permute.xlu0 %2544 }
 0x236   : > { %2609 = vmatpush1.msra.mxu1 %v2523_v22  ;;  %v1309_v22 = vpop.f32.mrf.mxu0 }
 0x237   : > { %3998 = vmatmul.mubr.msk.f32.gmra.mxu0 %vm1086_vm2, %v1416_v41  ;;  %2610 = vmatprep.subr.mxu1 %v6042_v12 }
 0x238   : > { %3999 = vmatprep.mubr.msk.f32.mxu0 %vm1086_vm2, %v1417_v56  ;;  %2611 = vmatpush1.msra.mxu1 %v2521_v43  ;;  %v1419_v43 = vmul.f32 0.17677669, %v4206_v49  ;;  %v4212_v45 = vpop.f32.mrf.mxu0 }
 0x239   : > { %2612 = vmatprep.subr.mxu1 %v6042_v12  ;;  %v5265_v55 = vpop.permute.xlu1 %2548  ;;  %v1423_v46 = vmul.f32 0.17677669, %v4212_v45 }
 0x23a   : > { %2613 = vmatpush1.msra.mxu1 %v2519_v9  ;;  %v1319_v6 = vpop.f32.mrf.mxu0 }
 0x23b   : > { %4000 = vmatmul.mubr.msk.f32.gmra.mxu0 %vm1086_vm2, %v1417_v56  ;;  %2614 = vmatprep.subr.mxu1 %v6042_v12 }
 0x23c   : > { %4001 = vmatprep.mubr.msk.f32.mxu0 %vm1086_vm2, %v1418_v39  ;;  %2615 = vmatpush1.msra.mxu1 %v5236_v7  ;;  %v1420_v7 = vmul.f32 0.17677669, %v1309_v22  ;;  %v4215_v1 = vpop.f32.mrf.mxu0 }
 0x23d   : > { %2616 = vmatprep.subr.mxu1 %v6042_v12  ;;  %v5272_v35 = vpop.permute.xlu1 %2546  ;;  %v1425_v41 = vmul.f32 0.17677669, %v4215_v1 }
 0x23e   : > { %2617 = vmatpush1.msra.mxu1 %v5238_v61  ;;  %v1329_v24 = vpop.f32.mrf.mxu0 }
 0x23f   : > { %4002 = vmatmul.mubr.msk.f32.gmra.mxu0 %vm1086_vm2, %v1418_v39  ;;  %2618 = vmatprep.subr.mxu1 %v6042_v12  ;;  %v1424_v21 = vmul.f32 0.17677669, %v1329_v24 }
 0x240   : > { %4003 = vmatprep.mubr.msk.f32.mxu0 %vm1086_vm2, %v1419_v43  ;;  %2619 = vmatpush1.msra.mxu1 %v5228_v33  ;;  %v1421_v33 = vmul.f32 0.17677669, %v4209_v38 }
 0x241   : > { %2620 = vmatprep.subr.mxu1 %v6042_v12  ;;  %v5280_v9 = vpop.permute.xlu1 %2550 }
 0x242   : > { %2621 = vmatpush1.msra.mxu1 %v5231_v2  ;;  %v1422_v2 = vmul.f32 0.17677669, %v1319_v6 }
 0x243   : > { %4004 = vmatmul.mubr.msk.f32.gmra.mxu0 %vm1086_vm2, %v1419_v43  ;;  %2622 = vmatprep.subr.mxu1 %v6042_v12 }
 0x244   : > { %4005 = vmatprep.mubr.msk.f32.mxu0 %vm1086_vm2, %v1420_v7  ;;  %2623 = vmatpush1.msra.mxu1 %v5220_v23 }
 0x245   : > { %2624 = vmatprep.subr.mxu1 %v6042_v12  ;;  %v2557_v61 = vpop.permute.xlu1 %2556 }
 0x246   : > { %2625 = vmatpush1.msra.mxu1 %v5224_v25  ;;  %v2543_v25 = vpop.permute.xlu0 %2542 }
 0x247   : > { %4006 = vmatmul.mubr.msk.f32.gmra.mxu0 %vm1086_vm2, %v1420_v7  ;;  %2626 = vmatprep.subr.mxu1 %v6042_v12 }
 0x248   : > { %4007 = vmatprep.mubr.msk.f32.mxu0 %vm1086_vm2, %v1421_v33  ;;  %2627 = vmatpush1.msra.mxu1 %v5212_v15 }
 0x249   : > { %2628 = vmatprep.subr.mxu1 %v6042_v12  ;;  %v2555_v23 = vpop.permute.xlu1 %2554 }
 0x24a   : > { %2629 = vmatpush1.msra.mxu1 %v5216_v17  ;;  %v2553_v47 = vpop.permute.xlu0 %2552  ;;  %v4218_v17 = vpop.f32.mrf.mxu0 }
 0x24b   : > { %4008 = vmatmul.mubr.msk.f32.gmra.mxu0 %vm1086_vm2, %v1421_v33  ;;  %2630 = vmatprep.subr.mxu1 %v6042_v12  ;;  %v1427_v38 = vmul.f32 0.17677669, %v4218_v17 }
 0x24c   : > { %4009 = vmatprep.mubr.msk.f32.mxu0 %vm1086_vm2, %v1422_v2  ;;  %v1339_v49 = vpop.f32.mrf.mxu0 }
 0x24d   : > { %v2559_v8 = vpop.permute.xlu1 %2558  ;;  %v1426_v53 = vmul.f32 0.17677669, %v1339_v49 }
 0x24e   : > { %v2561_v56 = vpop.permute.xlu0 %2560  ;;  %v4221_v39 = vpop.f32.mrf.mxu0 }
 0x24f   : > { %4010 = vmatmul.mubr.msk.f32.gmra.mxu0 %vm1086_vm2, %v1422_v2  ;;  %v1429_v45 = vmul.f32 0.17677669, %v4221_v39 }
 0x250   : > { %4011 = vmatprep.mubr.msk.f32.mxu0 %vm1086_vm2, %v1423_v46  ;;  %v1349_v43 = vpop.f32.mrf.mxu0 }
 0x251   : > { %v2565_v15 = vpop.permute.xlu1 %2564  ;;  %v1428_v22 = vmul.f32 0.17677669, %v1349_v43 }
 0x252   : > { %2631 = vmatpush2.msra.mxu1 %v2565_v15  ;;  %v4224_v7 = vpop.f32.mrf.mxu0 }
 0x253   : > { %4012 = vmatmul.mubr.msk.f32.gmra.mxu0 %vm1086_vm2, %v1423_v46  ;;  %2632 = vmatprep.subr.mxu1 %v6042_v12 }
 0x254   : > { %4013 = vmatprep.mubr.msk.f32.mxu0 %vm1086_vm2, %v1424_v21 }
 0x255   : > { %v2563_v31 = vpop.permute.xlu1 %2562 }
 0x256   : > { %2633 = vmatpush2.msra.mxu1 %v2563_v31 }
 0x257   : > { %4014 = vmatmul.mubr.msk.f32.gmra.mxu0 %vm1086_vm2, %v1424_v21  ;;  %2634 = vmatprep.subr.mxu1 %v6042_v12 }
 0x258   : > { %4015 = vmatprep.mubr.msk.f32.mxu0 %vm1086_vm2, %v1425_v41  ;;  %2635 = vmatpush2.msra.mxu1 %v2561_v56 }
 0x259   : > { %2636 = vmatprep.subr.mxu1 %v6042_v12 }
 0x25a   : > { %2637 = vmatpush2.msra.mxu1 %v2559_v8 }
 0x25b   : > { %4016 = vmatmul.mubr.msk.f32.gmra.mxu0 %vm1086_vm2, %v1425_v41  ;;  %2638 = vmatprep.subr.mxu1 %v6042_v12 }
 0x25c   : > { %4017 = vmatprep.mubr.msk.f32.mxu0 %vm1086_vm2, %v1426_v53  ;;  %2639 = vmatpush2.msra.mxu1 %v2557_v61  ;;  %v1359_v61 = vpop.f32.mrf.mxu0 }
 0x25d   : > { %2640 = vmatprep.subr.mxu1 %v6042_v12 }
 0x25e   : > { %2641 = vmatpush2.msra.mxu1 %v2555_v23  ;;  %v4227_v33 = vpop.f32.mrf.mxu0 }
 0x25f   : > { %4018 = vmatmul.mubr.msk.f32.gmra.mxu0 %vm1086_vm2, %v1426_v53  ;;  %2642 = vmatprep.subr.mxu1 %v6042_v12  ;;  %v1433_v23 = vmul.f32 0.17677669, %v4227_v33 }
 0x260   : > { %4019 = vmatprep.mubr.msk.f32.mxu0 %vm1086_vm2, %v1427_v38  ;;  %2643 = vmatpush2.msra.mxu1 %v2553_v47 }
 0x261   : > { %2644 = vmatprep.subr.mxu1 %v6042_v12 }
 0x262   : > { %2645 = vmatpush2.msra.mxu1 %v5280_v9  ;;  %v1430_v9 = vmul.f32 0.17677669, %v1359_v61 }
 0x263   : > { %4020 = vmatmul.mubr.msk.f32.gmra.mxu0 %vm1086_vm2, %v1427_v38  ;;  %2646 = vmatprep.subr.mxu1 %v6042_v12 }
 0x264   : > { %4021 = vmatprep.mubr.msk.f32.mxu0 %vm1086_vm2, %v1428_v22  ;;  %2647 = vmatpush2.msra.mxu1 %v5265_v55  ;;  %v1431_v55 = vmul.f32 0.17677669, %v4224_v7 }
 0x265   : > { %2648 = vmatprep.subr.mxu1 %v6042_v12 }
 0x266   : > { %2649 = vmatpush2.msra.mxu1 %v5272_v35  ;;  %v1369_v35 = vpop.f32.mrf.mxu0 }
 0x267   : > { %4022 = vmatmul.mubr.msk.f32.gmra.mxu0 %vm1086_vm2, %v1428_v22  ;;  %2650 = vmatprep.subr.mxu1 %v6042_v12 }
 0x268   : > { %4023 = vmatprep.mubr.msk.f32.mxu0 %vm1086_vm2, %v1429_v45  ;;  %2651 = vmatpush2.msra.mxu1 %v5289_v4  ;;  %v1432_v4 = vmul.f32 0.17677669, %v1369_v35  ;;  %v4230_v6 = vpop.f32.mrf.mxu0 }
 0x269   : > { %2652 = vmatprep.subr.mxu1 %v6042_v12 }
 0x26a   : > { %2653 = vmatpush2.msra.mxu1 %v2543_v25  ;;  %v1379_v2 = vpop.f32.mrf.mxu0  ;;  %v1435_v25 = vmul.f32 0.17677669, %v4230_v6 }
 0x26b   : > { %4024 = vmatmul.mubr.msk.f32.gmra.mxu0 %vm1086_vm2, %v1429_v45  ;;  %2654 = vmatprep.subr.mxu1 %v6042_v12 }
 0x26c   : > { %4025 = vmatprep.mubr.msk.f32.mxu0 %vm1086_vm2, %v1430_v9  ;;  %2655 = vmatpush2.msra.mxu1 %v5258_v29  ;;  %v1434_v29 = vmul.f32 0.17677669, %v1379_v2  ;;  %v4233_v1 = vpop.f32.mrf.mxu0 }
 0x26d   : > { %2656 = vmatprep.subr.mxu1 %v6042_v12  ;;  %v1437_v15 = vmul.f32 0.17677669, %v4233_v1 }
 0x26e   : > { %v1389_v8 = vpop.f32.mrf.mxu0 }
 0x26f   : > { %4026 = vmatmul.mubr.msk.f32.gmra.mxu0 %vm1086_vm2, %v1430_v9  ;;  %v1436_v46 = vmul.f32 0.17677669, %v1389_v8 }
 0x270   : > { %4027 = vmatprep.mubr.msk.f32.mxu0 %vm1086_vm2, %v1431_v55  ;;  %v4236_v24 = vpop.f32.mrf.mxu0 }
 0x271   : > { %v1439_v17 = vmul.f32 0.17677669, %v4236_v24 }
 0x272   : > { %v1399_v21 = vpop.f32.mrf.mxu0 }
 0x273   : > { %4028 = vmatmul.mubr.msk.f32.gmra.mxu0 %vm1086_vm2, %v1431_v55  ;;  %v1438_v47 = vmul.f32 0.17677669, %v1399_v21 }
 0x274   : > { %4029 = vmatprep.mubr.msk.f32.mxu0 %vm1086_vm2, %v1432_v4 }
 0x277   : > { %4030 = vmatmul.mubr.msk.f32.gmra.mxu0 %vm1086_vm2, %v1432_v4 }
 0x278   : > { %4031 = vmatprep.mubr.msk.f32.mxu0 %vm1086_vm2, %v1433_v23 }
 0x27b   : > { %4032 = vmatmul.mubr.msk.f32.gmra.mxu0 %vm1086_vm2, %v1433_v23 }
 0x27c   : > { %4033 = vmatprep.mubr.msk.f32.mxu0 %vm1086_vm2, %v1434_v29 }
 0x27f   : > { %4034 = vmatmul.mubr.msk.f32.gmra.mxu0 %vm1086_vm2, %v1434_v29 }
 0x280   : > { %4035 = vmatprep.mubr.msk.f32.mxu0 %vm1086_vm2, %v1435_v25 }
 0x283   : > { %4036 = vmatmul.mubr.msk.f32.gmra.mxu0 %vm1086_vm2, %v1435_v25 }
 0x284   : > { %4037 = vmatprep.mubr.msk.f32.mxu0 %vm1086_vm2, %v1436_v46 }
 0x287   : > { %4038 = vmatmul.mubr.msk.f32.gmra.mxu0 %vm1086_vm2, %v1436_v46 }
 0x288   : > { %4039 = vmatprep.mubr.msk.f32.mxu0 %vm1086_vm2, %v1437_v15 }
 0x28b   : > { %4040 = vmatmul.mubr.msk.f32.gmra.mxu0 %vm1086_vm2, %v1437_v15 }
 0x28c   : > { %4041 = vmatprep.mubr.msk.f32.mxu0 %vm1086_vm2, %v1438_v47 }
 0x28f   : > { %4042 = vmatmul.mubr.msk.f32.gmra.mxu0 %vm1086_vm2, %v1438_v47 }
 0x290   : > { %4043 = vmatprep.mubr.msk.f32.mxu0 %vm1086_vm2, %v1439_v17 }
 0x293   : > { %4044 = vmatmul.mubr.msk.f32.gmra.mxu0 %vm1086_vm2, %v1439_v17 }
 0x2d7   : > { %v5353_v31 = vpop.f32.mrf.mxu0 }
 0x2d9   : > { %v5355_v41 = vpop.f32.mrf.mxu0 }
 0x2da   : > { %v2214_v49 = vmax.f32 %v5353_v31, %v5355_v41 }
 0x2db   : > { %v5359_v56 = vpop.f32.mrf.mxu0 }
 0x2dc   : > { %2215 = vmax.xlane.f32.xlu0 %v2214_v49 }
 0x2dd   : > { %v5361_v53 = vpop.f32.mrf.mxu0 }
 0x2de   : > { %v2217_v39 = vmax.f32 %v5359_v56, %v5361_v53 }
 0x2df   : > { %v5365_v38 = vpop.f32.mrf.mxu0 }
 0x2e0   : > { %2218 = vmax.xlane.f32.xlu1 %v2217_v39 }
 0x2e1   : > { %v5367_v43 = vpop.f32.mrf.mxu0 }
 0x2e2   : > { %v2220_v22 = vmax.f32 %v5365_v38, %v5367_v43 }
 0x2e3   : > { %v5371_v7 = vpop.f32.mrf.mxu0 }
 0x2e4   : > { %2221 = vmax.xlane.f32.xlu0 %v2220_v22 }
 0x2e5   : > { %v5373_v45 = vpop.f32.mrf.mxu0 }
 0x2e6   : > { %v2223_v61 = vmax.f32 %v5371_v7, %v5373_v45 }
 0x2e7   : > { %v5377_v9 = vpop.f32.mrf.mxu0 }
 0x2e8   : > { %2224 = vmax.xlane.f32.xlu1 %v2223_v61 }
 0x2e9   : > { %v5379_v33 = vpop.f32.mrf.mxu0 }
 0x2ea   : > { %v2226_v55 = vmax.f32 %v5377_v9, %v5379_v33 }
 0x2eb   : > { %v5383_v35 = vpop.f32.mrf.mxu0 }
 0x2ec   : > { %2227 = vmax.xlane.f32.xlu0 %v2226_v55 }
 0x2ed   : > { %v5385_v4 = vpop.f32.mrf.mxu0 }
 0x2ee   : > { %v2229_v6 = vmax.f32 %v5383_v35, %v5385_v4 }
 0x2ef   : > { %v5389_v23 = vpop.f32.mrf.mxu0 }
 0x2f0   : > { %2230 = vmax.xlane.f32.xlu1 %v2229_v6 }
 0x2f1   : > { %v5391_v2 = vpop.f32.mrf.mxu0 }
 0x2f2   : > { %v2232_v29 = vmax.f32 %v5389_v23, %v5391_v2 }
 0x2f3   : > { %v5395_v1 = vpop.f32.mrf.mxu0 }
 0x2f4   : > { %2233 = vmax.xlane.f32.xlu0 %v2232_v29 }
 0x2f5   : > { %v5397_v25 = vpop.f32.mrf.mxu0 }
 0x2f6   : > { %v2235_v37 = vmax.f32 %v5395_v1, %v5397_v25 }
 0x2f7   : > { %v5399_v8 = vpop.f32.mrf.mxu0 }
 0x2f9   : > { %v5401_v46 = vpop.f32.mrf.mxu0 }
 0x2fa   : > { %v2238_v0 = vmax.f32 %v5399_v8, %v5401_v46 }
 0x2fb   : > { %v5403_v24 = vpop.f32.mrf.mxu0 }
 0x2fd   : > { %v5405_v15 = vpop.f32.mrf.mxu0 }
 0x2fe   : > { %v2241_v59 = vmax.f32 %v5403_v24, %v5405_v15 }
 0x2ff   : > { %v5407_v21 = vpop.f32.mrf.mxu0 }
 0x301   : > { %2538 = vrot.lane.b32.xlu1 %v5159_v57, %s4562_s9  ;;  %v5411_v47 = vpop.f32.mrf.mxu0 }
 0x302   : > { %v2244_v19 = vmax.f32 %v5407_v21, %v5411_v47 }
 0x303   : > { %v5413_v17 = vpop.f32.mrf.mxu0 }
 0x305   : > { %v5415_v49 = vpop.f32.mrf.mxu0 }
 0x306   : > { %v2247_v3 = vmax.f32 %v5413_v17, %v5415_v49 }
 0x307   : > { %v5417_v39 = vpop.f32.mrf.mxu0 }
 0x309   : > { %v5419_v22 = vpop.f32.mrf.mxu0 }
 0x30a   : > { %2536 = vrot.lane.b32.xlu0 %v5151_v14, %s4562_s9 }
 0x30b   : > { %v5423_v61 = vpop.f32.mrf.mxu0 }
 0x30d   : > { %v5425_v55 = vpop.f32.mrf.mxu0 }
 0x30e   : > { %2534 = vrot.lane.b32.xlu0 %v5154_v63, %s4562_s9 }
 0x30f   : > { %v5429_v57 = vpop.f32.mrf.mxu0 }
 0x311   : > { %v5431_v6 = vpop.f32.mrf.mxu0 }
 0x313   : > { %v5433_v29 = vpop.f32.mrf.mxu0 }
 0x315   : > { %v5435_v48 = vpop.f32.mrf.mxu0 }
 0x317   : > { %v5437_v51 = vpop.f32.mrf.mxu0 }
 0x319   : > { %v5439_v40 = vpop.f32.mrf.mxu0 }
 0x31b   : > { %v5441_v14 = vpop.f32.mrf.mxu0 }
 0x31d   : > { %v5443_v54 = vpop.f32.mrf.mxu0 }
 0x31f   : > { %v5445_v32 = vpop.f32.mrf.mxu0 }
 0x321   : > { %v5447_v16 = vpop.f32.mrf.mxu0 }
 0x323   : > { %v5449_v63 = vpop.f32.mrf.mxu0 }
 0x325   : > { %2236 = vmax.xlane.f32.xlu1 %v2235_v37  ;;  %v5453_v62 = vpop.f32.mrf.mxu0 }
 0x327   : > { %v5455_v27 = vpop.f32.mrf.mxu0 }
 0x329   : > { %2242 = vmax.xlane.f32.xlu1 %v2241_v59  ;;  %v5459_v10 = vpop.f32.mrf.mxu0  ;;  %v2262_v59 = vmax.f32 %v5437_v51, %v5439_v40 }
 0x32b   : > { %v5461_v30 = vpop.f32.mrf.mxu0 }
 0x32d   : > { %2239 = vmax.xlane.f32.xlu0 %v2238_v0  ;;  %2245 = vmax.xlane.f32.xlu1 %v2244_v19  ;;  %v5467_v37 = vpop.f32.mrf.mxu0  ;;  %v2250_v0 = vmax.f32 %v5417_v39, %v5419_v22  ;;  %v2268_v19 = vmax.f32 %v5445_v32, %v5447_v16 }
 0x32f   : > { %v5469_v5 = vpop.f32.mrf.mxu0 }
 0x331   : > { %2248 = vmax.xlane.f32.xlu1 %v2247_v3  ;;  %2263 = vmax.xlane.f32.xlu0 %v2262_v59  ;;  %v5475_v60 = vpop.f32.mrf.mxu0  ;;  %v2253_v3 = vmax.f32 %v5423_v61, %v5425_v55  ;;  %v2274_v59 = vmax.f32 %v5455_v27, %v5459_v10 }
 0x333   : > { %v5477_v58 = vpop.f32.mrf.mxu0 }
 0x335   : > { %2251 = vmax.xlane.f32.xlu1 %v2250_v0  ;;  %2269 = vmax.xlane.f32.xlu0 %v2268_v19  ;;  %v5483_v52 = vpop.f32.mrf.mxu0  ;;  %v2256_v0 = vmax.f32 %v5429_v57, %v5431_v6  ;;  %v2280_v19 = vmax.f32 %v5469_v5, %v5475_v60 }
 0x336   : > { %6043 = vst [vmem:[#allocation34_spill] sm:$0xff] %v5483_v52 }
 0x337   : > { %v5485_v50 = vpop.f32.mrf.mxu0 }
 0x339   : > { %2254 = vmax.xlane.f32.xlu1 %v2253_v3  ;;  %2275 = vmax.xlane.f32.xlu0 %v2274_v59  ;;  %v5491_v44 = vpop.f32.mrf.mxu0  ;;  %v2259_v3 = vmax.f32 %v5433_v29, %v5435_v48 }
 0x33a   : > { %v2286_v59 = vmax.f32 %v5485_v50, %v5491_v44 }
 0x33b   : > { %v5493_v42 = vpop.f32.mrf.mxu0 }
 0x33c   : > { %6044 = vst [vmem:[#allocation35_spill] sm:$0xff] %v5493_v42 }
 0x33d   : > { %2257 = vmax.xlane.f32.xlu1 %v2256_v0  ;;  %2281 = vmax.xlane.f32.xlu0 %v2280_v19  ;;  %v5499_v36 = vpop.f32.mrf.mxu0  ;;  %v2265_v0 = vmax.f32 %v5441_v14, %v5443_v54 }
 0x33e   : > { %6045 = vst [vmem:[#allocation36_spill] sm:$0xff] %v5499_v36 }
 0x33f   : > { %v5501_v34 = vpop.f32.mrf.mxu0 }
 0x340   : > { %6046 = vst [vmem:[#allocation37_spill] sm:$0xff] %v5501_v34 }
 0x341   : > { %2260 = vmax.xlane.f32.xlu1 %v2259_v3  ;;  %2287 = vmax.xlane.f32.xlu0 %v2286_v59  ;;  %v5507_v28 = vpop.f32.mrf.mxu0  ;;  %v2271_v3 = vmax.f32 %v5449_v63, %v5453_v62 }
 0x342   : > { %6047 = vst [vmem:[#allocation38_spill] sm:$0xff] %v5507_v28  ;;  %v2292_v26 = vmax.f32 %v5501_v34, %v5507_v28  ;;  %v2277_v28 = vmax.f32 %v5461_v30, %v5467_v37  ;;  %v2283_v34 = vmax.f32 %v5477_v58, %v5483_v52 }
 0x343   : > { %v5511_v20 = vpop.f32.mrf.mxu0 }
 0x344   : > { %6048 = vst [vmem:[#allocation39_spill] sm:$0xff] %v5511_v20 }
 0x345   : > { %2266 = vmax.xlane.f32.xlu1 %v2265_v0  ;;  %2293 = vmax.xlane.f32.xlu0 %v2292_v26  ;;  %v5515_v19 = vpop.f32.mrf.mxu0 }
 0x346   : > { %6049 = vst [vmem:[#allocation40_spill] sm:$0xff] %v5515_v19 }
 0x347   : > { %v5517_v18 = vpop.f32.mrf.mxu0 }
 0x348   : > { %6050 = vst [vmem:[#allocation41_spill] sm:$0xff] %v5517_v18 }
 0x349   : > { %2272 = vmax.xlane.f32.xlu1 %v2271_v3  ;;  %v5521_v59 = vpop.f32.mrf.mxu0 }
 0x34a   : > { %6051 = vst [vmem:[#allocation42_spill] sm:$0xff] %v5521_v59  ;;  %v2298_v13 = vmax.f32 %v5517_v18, %v5521_v59  ;;  %v2289_v18 = vmax.f32 %v5493_v42, %v5499_v36 }
 0x34b   : > { %v5525_v11 = vpop.f32.mrf.mxu0 }
 0x34c   : > { %6052 = vst [vmem:[#allocation43_spill] sm:$0xff] %v5525_v11  ;;  %2299 = vmax.xlane.f32.xlu0 %v2298_v13  ;;  %v2295_v13 = vmax.f32 %v5511_v20, %v5515_v19 }
 0x34d   : > { %2278 = vmax.xlane.f32.xlu1 %v2277_v28  ;;  %v5529_v26 = vpop.f32.mrf.mxu0 }
 0x34e   : > { %6053 = vst [vmem:[#allocation44_spill] sm:$0xff] %v5529_v26  ;;  %v2301_v52 = vmax.f32 %v5525_v11, %v5529_v26 }
 0x34f   : > { %v5531_v0 = vpop.f32.mrf.mxu0 }
 0x350   : > { %6054 = vst [vmem:[#allocation45_spill] sm:$0xff] %v5531_v0 }
 0x351   : > { %2284 = vmax.xlane.f32.xlu1 %v2283_v34  ;;  %v5535_v3 = vpop.f32.mrf.mxu0 }
 0x352   : > { %6055 = vst [vmem:[#allocation46_spill] sm:$0xff] %v5535_v3  ;;  %v2304_v59 = vmax.f32 %v5531_v0, %v5535_v3 }
 0x353   : > { %v5543_v28 = vpop.f32.mrf.mxu0 }
 0x354   : > { %2305 = vmax.xlane.f32.xlu0 %v2304_v59 }
 0x355   : > { %2290 = vmax.xlane.f32.xlu1 %v2289_v18  ;;  %v5547_v34 = vpop.f32.mrf.mxu0 }
 0x356   : > { %6056 = vst [vmem:[#allocation47_spill] sm:$0xff] %v5547_v34  ;;  %v2307_v3 = vmax.f32 %v5543_v28, %v5547_v34 }
 0x359   : > { %2296 = vmax.xlane.f32.xlu1 %v2295_v13 }
 0x35d   : > { %2302 = vmax.xlane.f32.xlu1 %v2301_v52 }
 0x361   : > { %2308 = vmax.xlane.f32.xlu1 %v2307_v3 }
 0x365   : > { %v2216_v0 = vpop.xlane.xlu0 %2215 }
 0x366   : > { %v2310_v59 = vsub.f32 %v5353_v31, %v2216_v0  ;;  %v2311_v18 = vsub.f32 %v5355_v41, %v2216_v0 }
 0x368   : > { %v2374_v36 = vmul.f32 1.442695, %v2310_v59  ;;  %v2376_v19 = vmul.f32 1.442695, %v2311_v18 }
 0x369   : > { %v2219_v20 = vpop.xlane.xlu1 %2218 }
 0x36a   : > { %4362 = vpow2.f32 %v2374_v36  ;;  %v2312_v13 = vsub.f32 %v5359_v56, %v2219_v20  ;;  %v2313_v26 = vsub.f32 %v5361_v53, %v2219_v20 }
 0x36b   : > { %4364 = vpow2.f32 %v2376_v19 }
 0x36c   : > { %v2378_v11 = vmul.f32 1.442695, %v2312_v13  ;;  %v2380_v52 = vmul.f32 1.442695, %v2313_v26 }
 0x36d   : > { %v2222_v42 = vpop.xlane.xlu0 %2221 }
 0x36e   : > { %4366 = vpow2.f32 %v2378_v11  ;;  %v2314_v3 = vsub.f32 %v5365_v38, %v2222_v42  ;;  %v2315_v34 = vsub.f32 %v5367_v43, %v2222_v42 }
 0x36f   : > { %4368 = vpow2.f32 %v2380_v52 }
 0x370   : > { %v2382_v31 = vmul.f32 1.442695, %v2314_v3  ;;  %v2384_v41 = vmul.f32 1.442695, %v2315_v34 }
 0x371   : > { %v2225_v0 = vpop.xlane.xlu1 %2224 }
 0x372   : > { %4370 = vpow2.f32 %v2382_v31  ;;  %v2316_v36 = vsub.f32 %v5371_v7, %v2225_v0  ;;  %v2317_v56 = vsub.f32 %v5373_v45, %v2225_v0 }
 0x373   : > { %4372 = vpow2.f32 %v2384_v41 }
 0x374   : > { %v2386_v20 = vmul.f32 1.442695, %v2316_v36  ;;  %v2388_v53 = vmul.f32 1.442695, %v2317_v56 }
 0x375   : > { %v2228_v19 = vpop.xlane.xlu0 %2227 }
 0x376   : > { %4374 = vpow2.f32 %v2386_v20  ;;  %v2318_v11 = vsub.f32 %v5377_v9, %v2228_v19  ;;  %v2319_v38 = vsub.f32 %v5379_v33, %v2228_v19 }
 0x377   : > { %v4363_v26 = vpop.eup %4362  ;;  %4376 = vpow2.f32 %v2388_v53 }
 0x378   : > { %v4365_v42 = vpop.eup %4364  ;;  %v2390_v43 = vmul.f32 1.442695, %v2318_v11  ;;  %v2392_v34 = vmul.f32 1.442695, %v2319_v38 }
 0x379   : > { %2662 = vmatprep.mubr.f32.mxu1 %v4365_v42  ;;  %v2231_v59 = vpop.xlane.xlu1 %2230  ;;  %v2823_v18 = vadd.f32 %v4365_v42, %v4363_v26 }
 0x37a   : > { %4378 = vpow2.f32 %v2390_v43  ;;  %v2320_v7 = vsub.f32 %v5383_v35, %v2231_v59  ;;  %v2321_v45 = vsub.f32 %v5385_v4, %v2231_v59 }
 0x37b   : > { %v4367_v13 = vpop.eup %4366  ;;  %4380 = vpow2.f32 %v2392_v34  ;;  %2824 = vadd.xlane.f32.xlu0 %v2823_v18 }
 0x37c   : > { %v4369_v52 = vpop.eup %4368  ;;  %v2394_v9 = vmul.f32 1.442695, %v2320_v7  ;;  %v2396_v3 = vmul.f32 1.442695, %v2321_v45 }
 0x37d   : > { %v2539_v33 = vpop.permute.xlu1 %2538  ;;  %v2234_v31 = vpop.xlane.xlu0 %2233  ;;  %v2826_v41 = vadd.f32 %v4369_v52, %v4367_v13 }
 0x37e   : > { %4382 = vpow2.f32 %v2394_v9  ;;  %v2322_v0 = vsub.f32 %v5389_v23, %v2234_v31  ;;  %v2323_v36 = vsub.f32 %v5391_v2, %v2234_v31  ;;  %2657 = vmatpush2.msra.mxu1 %v2539_v33 }
 0x37f   : > { %v4371_v56 = vpop.eup %4370  ;;  %4384 = vpow2.f32 %v2396_v3  ;;  %2827 = vadd.xlane.f32.xlu1 %v2826_v41  ;;  %2658 = vmatprep.subr.mxu1 %v6042_v12 }
 0x380   : > { %v4373_v35 = vpop.eup %4372  ;;  %v2398_v4 = vmul.f32 1.442695, %v2322_v0  ;;  %v2400_v20 = vmul.f32 1.442695, %v2323_v36 }
 0x381   : > { %v2537_v53 = vpop.permute.xlu0 %2536  ;;  %v2829_v19 = vadd.f32 %v4373_v35, %v4371_v56 }
 0x382   : > { %4386 = vpow2.f32 %v2398_v4  ;;  %2659 = vmatpush2.msra.mxu1 %v2537_v53 }
 0x383   : > { %v4375_v11 = vpop.eup %4374  ;;  %4388 = vpow2.f32 %v2400_v20  ;;  %2830 = vadd.xlane.f32.xlu0 %v2829_v19  ;;  %2660 = vmatprep.subr.mxu1 %v6042_v12 }
 0x384   : > { %v4377_v23 = vpop.eup %4376 }
 0x385   : > { %v2535_v2 = vpop.permute.xlu0 %2534  ;;  %v2832_v38 = vadd.f32 %v4377_v23, %v4375_v11 }
 0x386   : > { %2661 = vmatpush2.msra.mxu1 %v2535_v2 }
 0x387   : > { %v4379_v42 = vpop.eup %4378  ;;  %2833 = vadd.xlane.f32.xlu1 %v2832_v38  ;;  %2663 = vmatmul.mubr.f32.vlgmr.msra.gmra.mxu1 %v4363_v26  ;;  %v2986_v26 = vld [vmem:[%s5928_s6 + $0x18] sm:$0xff] }
 0x388   : > { %v4381_v43 = vpop.eup %4380  ;;  %2667 = vmatprep.mubr.f32.mxu1 %v4369_v52  ;;  %4293 = vmatprep.subr.mxu0 %v2986_v26 }
 0x389   : > { %v2835_v34 = vadd.f32 %v4381_v43, %v4379_v42  ;;  %4294 = vmatpush3.msra.mxu0 %v2986_v26 }
 0x38b   : > { %v4383_v59 = vpop.eup %4382  ;;  %2836 = vadd.xlane.f32.xlu0 %v2835_v34  ;;  %2668 = vmatmul.mubr.f32.gmra.mxu1 %v4367_v13 }
 0x38c   : > { %v4385_v18 = vpop.eup %4384  ;;  %2672 = vmatprep.mubr.f32.mxu1 %v4373_v35 }
 0x38d   : > { %v2838_v7 = vadd.f32 %v4385_v18, %v4383_v59 }
 0x38f   : > { %v4387_v45 = vpop.eup %4386  ;;  %2839 = vadd.xlane.f32.xlu1 %v2838_v7  ;;  %2673 = vmatmul.mubr.f32.gmra.mxu1 %v4371_v56 }
 0x390   : > { %v4389_v12 = vpop.eup %4388  ;;  %2677 = vmatprep.mubr.f32.mxu1 %v4377_v23 }
 0x391   : > { %v2841_v9 = vadd.f32 %v4389_v12, %v4387_v45 }
 0x393   : > { %2842 = vadd.xlane.f32.xlu0 %v2841_v9  ;;  %2678 = vmatmul.mubr.f32.gmra.mxu1 %v4375_v11 }
 0x394   : > { %2682 = vmatprep.mubr.f32.mxu1 %v4381_v43 }
 0x397   : > { %2683 = vmatmul.mubr.f32.gmra.mxu1 %v4379_v42 }
 0x398   : > { %2687 = vmatprep.mubr.f32.mxu1 %v4385_v18 }
 0x39b   : > { %2688 = vmatmul.mubr.f32.gmra.mxu1 %v4383_v59 }
 0x39c   : > { %2692 = vmatprep.mubr.f32.mxu1 %v4389_v12 }
 0x39f   : > { %2693 = vmatmul.mubr.f32.gmra.mxu1 %v4387_v45 }
 0x3ae   : > { %v2237_v13 = vpop.xlane.xlu1 %2236 }
 0x3af   : > { %v2324_v52 = vsub.f32 %v5395_v1, %v2237_v13  ;;  %v2325_v3 = vsub.f32 %v5397_v25, %v2237_v13 }
 0x3b1   : > { %v2402_v33 = vmul.f32 1.442695, %v2324_v52  ;;  %v2404_v31 = vmul.f32 1.442695, %v2325_v3 }
 0x3b2   : > { %v2243_v41 = vpop.xlane.xlu1 %2242 }
 0x3b3   : > { %4390 = vpow2.f32 %v2402_v33  ;;  %v2328_v0 = vsub.f32 %v5403_v24, %v2243_v41  ;;  %v2329_v36 = vsub.f32 %v5405_v15, %v2243_v41 }
 0x3b4   : > { %4392 = vpow2.f32 %v2404_v31 }
 0x3b5   : > { %v2410_v56 = vmul.f32 1.442695, %v2328_v0  ;;  %v2412_v35 = vmul.f32 1.442695, %v2329_v36 }
 0x3b6   : > { %v2240_v4 = vpop.xlane.xlu0 %2239  ;;  %v2246_v20 = vpop.xlane.xlu1 %2245 }
 0x3b7   : > { %4394 = vpow2.f32 %v2410_v56  ;;  %v2326_v53 = vsub.f32 %v5399_v8, %v2240_v4  ;;  %v2327_v1 = vsub.f32 %v5401_v46, %v2240_v4  ;;  %v2330_v25 = vsub.f32 %v5407_v21, %v2246_v20 }
 0x3b8   : > { %4396 = vpow2.f32 %v2412_v35  ;;  %v2331_v19 = vsub.f32 %v5411_v47, %v2246_v20 }
 0x3b9   : > { %v2406_v11 = vmul.f32 1.442695, %v2326_v53  ;;  %v2408_v23 = vmul.f32 1.442695, %v2327_v1  ;;  %v2414_v24 = vmul.f32 1.442695, %v2330_v25 }
 0x3ba   : > { %v2416_v2 = vmul.f32 1.442695, %v2331_v19  ;;  %v2249_v15 = vpop.xlane.xlu1 %2248  ;;  %v2264_v38 = vpop.xlane.xlu0 %2263 }
 0x3bb   : > { %4398 = vpow2.f32 %v2406_v11  ;;  %v2332_v42 = vsub.f32 %v5413_v17, %v2249_v15  ;;  %v2333_v43 = vsub.f32 %v5415_v49, %v2249_v15  ;;  %v2342_v45 = vsub.f32 %v5437_v51, %v2264_v38  ;;  %v2984_v11 = vld [vmem:[%s5928_s6 + $0x8] sm:$0xff] }
 0x3bc   : > { %4400 = vpow2.f32 %v2408_v23  ;;  %v2343_v49 = vsub.f32 %v5439_v40, %v2264_v38  ;;  %v2983_v38 = vld [vmem:[%s5928_s6] sm:$0xff] }
 0x3bd   : > { %4402 = vpow2.f32 %v2414_v24  ;;  %v2418_v8 = vmul.f32 1.442695, %v2332_v42  ;;  %v2420_v46 = vmul.f32 1.442695, %v2333_v43  ;;  %v2438_v51 = vmul.f32 1.442695, %v2342_v45 }
 0x3be   : > { %4404 = vpow2.f32 %v2416_v2  ;;  %v2252_v21 = vpop.xlane.xlu1 %2251  ;;  %v2270_v34 = vpop.xlane.xlu0 %2269  ;;  %v2440_v41 = vmul.f32 1.442695, %v2343_v49 }
 0x3bf   : > { %4406 = vpow2.f32 %v2418_v8  ;;  %v2334_v47 = vsub.f32 %v5417_v39, %v2252_v21  ;;  %v2335_v59 = vsub.f32 %v5419_v22, %v2252_v21  ;;  %v2346_v33 = vsub.f32 %v5445_v32, %v2270_v34  ;;  %v2985_v32 = vld [vmem:[%s5928_s6 + $0x10] sm:$0xff] }
 0x3c0   : > { %v4391_v18 = vpop.eup %4390  ;;  %4408 = vpow2.f32 %v2420_v46  ;;  %v2347_v0 = vsub.f32 %v5447_v16, %v2270_v34  ;;  %4295 = vmatprep.subr.mxu0 %v2985_v32 }
 0x3c1   : > { %v4393_v7 = vpop.eup %4392  ;;  %v2422_v17 = vmul.f32 1.442695, %v2334_v47  ;;  %v2424_v12 = vmul.f32 1.442695, %v2335_v59  ;;  %v2446_v53 = vmul.f32 1.442695, %v2346_v33  ;;  %4296 = vmatpush3.msra.mxu0 %v2985_v32 }
 0x3c2   : > { %2697 = vmatprep.mubr.f32.mxu1 %v4393_v7  ;;  %v2255_v9 = vpop.xlane.xlu1 %2254  ;;  %v5584_v26 = vpop.xlane.xlu0 %2275  ;;  %v2844_v13 = vadd.f32 %v4393_v7, %v4391_v18  ;;  %4297 = vmatprep.subr.mxu0 %v2984_v11 }
 0x3c3   : > { %4410 = vpow2.f32 %v2422_v17  ;;  %2698 = vmatmul.mubr.f32.gmra.mxu1 %v4391_v18  ;;  %v2336_v39 = vsub.f32 %v5423_v61, %v2255_v9  ;;  %v2337_v22 = vsub.f32 %v5425_v55, %v2255_v9  ;;  %v2350_v43 = vsub.f32 %v5455_v27, %v5584_v26  ;;  %4298 = vmatpush3.msra.mxu0 %v2984_v11  ;;  %v6060_v11 = vld [vmem:[#allocation34_spill] sm:$0xff] }
 0x3c4   : > { %v4395_v52 = vpop.eup %4394  ;;  %4412 = vpow2.f32 %v2424_v12  ;;  %2845 = vadd.xlane.f32.xlu1 %v2844_v13  ;;  %4299 = vmatprep.subr.mxu0 %v2983_v38 }
 0x3c5   : > { %v4397_v3 = vpop.eup %4396  ;;  %v2426_v31 = vmul.f32 1.442695, %v2336_v39  ;;  %v2428_v40 = vmul.f32 1.442695, %v2337_v22  ;;  %4300 = vmatpush3.msra.mxu0 %v2983_v38  ;;  %v2454_v45 = vmul.f32 1.442695, %v2350_v43 }
 0x3c6   : > { %v2258_v36 = vpop.xlane.xlu1 %2257  ;;  %v2850_v56 = vadd.f32 %v4397_v3, %v4395_v52  ;;  %v5592_v4 = vpop.xlane.xlu0 %2281 }
 0x3c7   : > { %4414 = vpow2.f32 %v2426_v31  ;;  %v2338_v35 = vsub.f32 %v5429_v57, %v2258_v36  ;;  %v2339_v61 = vsub.f32 %v5431_v6, %v2258_v36  ;;  %v2448_v57 = vmul.f32 1.442695, %v2347_v0 }
 0x3c8   : > { %v4399_v55 = vpop.eup %4398  ;;  %4416 = vpow2.f32 %v2428_v40  ;;  %2851 = vadd.xlane.f32.xlu1 %v2850_v56  ;;  %v2355_v9 = vsub.f32 %v5475_v60, %v5592_v4 }
 0x3c9   : > { %v4401_v20 = vpop.eup %4400  ;;  %4418 = vpow2.f32 %v2438_v51  ;;  %v2430_v16 = vmul.f32 1.442695, %v2338_v35  ;;  %v2432_v1 = vmul.f32 1.442695, %v2339_v61 }
 0x3ca   : > { %v4403_v25 = vpop.eup %4402  ;;  %4420 = vpow2.f32 %v2440_v41  ;;  %2702 = vmatprep.mubr.f32.mxu1 %v4401_v20  ;;  %v2261_v6 = vpop.xlane.xlu1 %2260  ;;  %v2847_v19 = vadd.f32 %v4401_v20, %v4399_v55 }
 0x3cb   : > { %v4405_v23 = vpop.eup %4404  ;;  %4422 = vpow2.f32 %v2430_v16  ;;  %2703 = vmatmul.mubr.f32.gmra.mxu1 %v4399_v55  ;;  %v2340_v24 = vsub.f32 %v5433_v29, %v2261_v6  ;;  %v2341_v2 = vsub.f32 %v5435_v48, %v2261_v6  ;;  %v2351_v48 = vsub.f32 %v5459_v10, %v5584_v26  ;;  %v5609_v29 = vpop.xlane.xlu0 %2287  ;;  %v6057_v55 = vld [vmem:[#allocation37_spill] sm:$0xff]  ;;  %v6058_v16 = vld [vmem:[#allocation38_spill] sm:$0xff] }
 0x3cc   : > { %v4407_v15 = vpop.eup %4406  ;;  %4424 = vpow2.f32 %v2432_v1  ;;  %2707 = vmatprep.mubr.f32.mxu1 %v4397_v3  ;;  %2848 = vadd.xlane.f32.xlu0 %v2847_v19  ;;  %v2853_v34 = vadd.f32 %v4405_v23, %v4403_v25  ;;  %v2354_v10 = vsub.f32 %v5469_v5, %v5592_v4  ;;  %v2359_v31 = vsub.f32 %v5491_v44, %v5609_v29 }
 0x3cd   : > { %v4409_v42 = vpop.eup %4408  ;;  %4426 = vpow2.f32 %v2446_v53  ;;  %v2434_v8 = vmul.f32 1.442695, %v2340_v24  ;;  %v2436_v46 = vmul.f32 1.442695, %v2341_v2  ;;  %v2456_v49 = vmul.f32 1.442695, %v2351_v48 }
 0x3ce   : > { %4428 = vpow2.f32 %v2448_v57  ;;  %v2267_v21 = vpop.xlane.xlu1 %2266  ;;  %v2856_v47 = vadd.f32 %v4409_v42, %v4407_v15  ;;  %v2462_v3 = vmul.f32 1.442695, %v2354_v10  ;;  %v2472_v53 = vmul.f32 1.442695, %v2359_v31  ;;  %v6059_v57 = vld [vmem:[#allocation41_spill] sm:$0xff] }
 0x3cf   : > { %4430 = vpow2.f32 %v2434_v8  ;;  %2708 = vmatmul.mubr.f32.gmra.mxu1 %v4395_v52  ;;  %v2344_v59 = vsub.f32 %v5441_v14, %v2267_v21  ;;  %v2345_v18 = vsub.f32 %v5443_v54, %v2267_v21  ;;  %v2358_v54 = vsub.f32 %v5485_v50, %v5609_v29  ;;  %v2294_v5 = vpop.xlane.xlu0 %2293 }
 0x3d0   : > { %v4411_v27 = vpop.eup %4410  ;;  %4432 = vpow2.f32 %v2436_v46  ;;  %2712 = vmatprep.mubr.f32.mxu1 %v4405_v23  ;;  %2854 = vadd.xlane.f32.xlu0 %v2853_v34  ;;  %v2464_v50 = vmul.f32 1.442695, %v2355_v9  ;;  %v2362_v44 = vsub.f32 %v6057_v55, %v2294_v5  ;;  %v2363_v1 = vsub.f32 %v6058_v16, %v2294_v5  ;;  %v6061_v46 = vld [vmem:[#allocation42_spill] sm:$0xff] }
 0x3d1   : > { %v4413_v7 = vpop.eup %4412  ;;  %v2442_v17 = vmul.f32 1.442695, %v2344_v59  ;;  %v2444_v12 = vmul.f32 1.442695, %v2345_v18  ;;  %2857 = vadd.xlane.f32.xlu1 %v2856_v47  ;;  %v2470_v41 = vmul.f32 1.442695, %v2358_v54 }
 0x3d2   : > { %v2273_v14 = vpop.xlane.xlu1 %2272  ;;  %v2859_v26 = vadd.f32 %v4413_v7, %v4411_v27  ;;  %v2478_v38 = vmul.f32 1.442695, %v2362_v44  ;;  %v2480_v8 = vmul.f32 1.442695, %v2363_v1  ;;  %v6062_v47 = vld [vmem:[#allocation35_spill] sm:$0xff]  ;;  %v6063_v18 = vld [vmem:[#allocation36_spill] sm:$0xff] }
 0x3d3   : > { %4434 = vpow2.f32 %v2442_v17  ;;  %2713 = vmatmul.mubr.f32.gmra.mxu1 %v4403_v25  ;;  %v2348_v13 = vsub.f32 %v5449_v63, %v2273_v14  ;;  %v2349_v39 = vsub.f32 %v5453_v62, %v2273_v14  ;;  %v6064_v17 = vld [vmem:[#allocation45_spill] sm:$0xff]  ;;  %v6065_v54 = vld [vmem:[#allocation46_spill] sm:$0xff]  ;;  %v6068_v44 = vld [vmem:[#allocation43_spill] sm:$0xff] }
 0x3d4   : > { %v4415_v22 = vpop.eup %4414  ;;  %4436 = vpow2.f32 %v2444_v12  ;;  %2717 = vmatprep.mubr.f32.mxu1 %v4409_v42  ;;  %2860 = vadd.xlane.f32.xlu0 %v2859_v26 }
 0x3d5   : > { %v4417_v52 = vpop.eup %4416  ;;  %4438 = vpow2.f32 %v2454_v45  ;;  %v2450_v60 = vmul.f32 1.442695, %v2348_v13  ;;  %v2452_v51 = vmul.f32 1.442695, %v2349_v39  ;;  %v2300_v35 = vpop.xlane.xlu0 %2299 }
 0x3d6   : > { %v5621_v33 = vpop.eup %4418  ;;  %4440 = vpow2.f32 %v2456_v49  ;;  %v2279_v63 = vpop.xlane.xlu1 %2278  ;;  %v2862_v40 = vadd.f32 %v4417_v52, %v4415_v22  ;;  %v2366_v6 = vsub.f32 %v6059_v57, %v2300_v35  ;;  %v2367_v48 = vsub.f32 %v6061_v46, %v2300_v35 }
 0x3d7   : > { %v5625_v62 = vpop.eup %4420  ;;  %4442 = vpow2.f32 %v2450_v60  ;;  %2718 = vmatmul.mubr.f32.gmra.mxu1 %v4407_v15  ;;  %v2352_v0 = vsub.f32 %v5461_v30, %v2279_v63  ;;  %v2353_v36 = vsub.f32 %v5467_v37, %v2279_v63  ;;  %v6067_v60 = vld [vmem:[#allocation40_spill] sm:$0xff] }
 0x3d8   : > { %v4423_v56 = vpop.eup %4422  ;;  %4444 = vpow2.f32 %v2452_v51  ;;  %2722 = vmatprep.mubr.f32.mxu1 %v4413_v7  ;;  %2863 = vadd.xlane.f32.xlu1 %v2862_v40  ;;  %v2871_v2 = vadd.f32 %v5625_v62, %v5621_v33  ;;  %v2486_v34 = vmul.f32 1.442695, %v2366_v6  ;;  %v2488_v26 = vmul.f32 1.442695, %v2367_v48 }
 0x3d9   : > { %v4425_v61 = vpop.eup %4424  ;;  %4446 = vpow2.f32 %v2462_v3  ;;  %v2458_v4 = vmul.f32 1.442695, %v2352_v0  ;;  %v2460_v32 = vmul.f32 1.442695, %v2353_v36 }
 0x3da   : > { %v5630_v20 = vpop.eup %4426  ;;  %4448 = vpow2.f32 %v2464_v50  ;;  %v2285_v30 = vpop.xlane.xlu1 %2284  ;;  %v2865_v25 = vadd.f32 %v4425_v61, %v4423_v56 }
 0x3db   : > { %v5633_v37 = vpop.eup %4428  ;;  %4450 = vpow2.f32 %v2470_v41  ;;  %2723 = vmatmul.mubr.f32.gmra.mxu1 %v4411_v27  ;;  %v2356_v19 = vsub.f32 %v5477_v58, %v2285_v30  ;;  %v2357_v23 = vsub.f32 %v6060_v11, %v2285_v30 }
 0x3dc   : > { %v4431_v24 = vpop.eup %4430  ;;  %4452 = vpow2.f32 %v2458_v4  ;;  %2727 = vmatprep.mubr.f32.mxu1 %v4417_v52  ;;  %2866 = vadd.xlane.f32.xlu0 %v2865_v25  ;;  %v2877_v45 = vadd.f32 %v5633_v37, %v5630_v20  ;;  %v6066_v52 = vld [vmem:[#allocation39_spill] sm:$0xff] }
 0x3dd   : > { %v4433_v15 = vpop.eup %4432  ;;  %4454 = vpow2.f32 %v2460_v32  ;;  %v2466_v42 = vmul.f32 1.442695, %v2356_v19  ;;  %v2468_v43 = vmul.f32 1.442695, %v2357_v23  ;;  %v2306_v29 = vpop.xlane.xlu0 %2305  ;;  %v6069_v32 = vld [vmem:[#allocation44_spill] sm:$0xff] }
 0x3de   : > { %4456 = vpow2.f32 %v2472_v53  ;;  %v2291_v58 = vpop.xlane.xlu1 %2290  ;;  %v2868_v21 = vadd.f32 %v4433_v15, %v4431_v24  ;;  %v2370_v12 = vsub.f32 %v6064_v17, %v2306_v29  ;;  %v2371_v13 = vsub.f32 %v6065_v54, %v2306_v29 }
 0x3df   : > { %4458 = vpow2.f32 %v2466_v42  ;;  %2728 = vmatmul.mubr.f32.gmra.mxu1 %v4415_v22  ;;  %v2360_v59 = vsub.f32 %v6062_v47, %v2291_v58  ;;  %v2361_v27 = vsub.f32 %v6063_v18, %v2291_v58 }
 0x3e0   : > { %v5643_v7 = vpop.eup %4434  ;;  %4460 = vpow2.f32 %v2468_v43  ;;  %2732 = vmatprep.mubr.f32.mxu1 %v4425_v61  ;;  %2872 = vadd.xlane.f32.xlu0 %v2871_v2  ;;  %v2494_v63 = vmul.f32 1.442695, %v2370_v12  ;;  %v2496_v36 = vmul.f32 1.442695, %v2371_v13 }
 0x3e1   : > { %v4437_v10 = vpop.eup %4436  ;;  %4462 = vpow2.f32 %v2478_v38  ;;  %v2474_v49 = vmul.f32 1.442695, %v2360_v59  ;;  %v2476_v9 = vmul.f32 1.442695, %v2361_v27  ;;  %2869 = vadd.xlane.f32.xlu1 %v2868_v21 }
 0x3e2   : > { %v5648_v14 = vpop.eup %4438  ;;  %4464 = vpow2.f32 %v2480_v8  ;;  %v2297_v39 = vpop.xlane.xlu1 %2296  ;;  %v2874_v22 = vadd.f32 %v4437_v10, %v5643_v7 }
 0x3e3   : > { %v5652_v5 = vpop.eup %4440  ;;  %4466 = vpow2.f32 %v2486_v34  ;;  %2733 = vmatmul.mubr.f32.gmra.mxu1 %v4423_v56  ;;  %v2364_v3 = vsub.f32 %v6066_v52, %v2297_v39  ;;  %v2365_v51 = vsub.f32 %v6067_v60, %v2297_v39 }
 0x3e4   : > { %v5656_v50 = vpop.eup %4442  ;;  %4468 = vpow2.f32 %v2474_v49  ;;  %2737 = vmatprep.mubr.f32.mxu1 %v4433_v15  ;;  %2878 = vadd.xlane.f32.xlu0 %v2877_v45  ;;  %v2883_v35 = vadd.f32 %v5652_v5, %v5648_v14 }
 0x3e5   : > { %v4445_v31 = vpop.eup %4444  ;;  %4470 = vpow2.f32 %v2476_v9  ;;  %v2482_v40 = vmul.f32 1.442695, %v2364_v3  ;;  %v2484_v41 = vmul.f32 1.442695, %v2365_v51  ;;  %2875 = vadd.xlane.f32.xlu1 %v2874_v22 }
 0x3e6   : > { %v5658_v0 = vpop.eup %4446  ;;  %4472 = vpow2.f32 %v2488_v26  ;;  %v2303_v56 = vpop.xlane.xlu1 %2302  ;;  %v2880_v61 = vadd.f32 %v4445_v31, %v5656_v50 }
 0x3e7   : > { %v5663_v55 = vpop.eup %4448  ;;  %4474 = vpow2.f32 %v2482_v40  ;;  %2738 = vmatmul.mubr.f32.gmra.mxu1 %v4431_v24  ;;  %v2368_v4 = vsub.f32 %v6068_v44, %v2303_v56  ;;  %v2369_v53 = vsub.f32 %v6069_v32, %v2303_v56 }
 0x3e8   : > { %v5667_v16 = vpop.eup %4450  ;;  %4476 = vpow2.f32 %v2484_v41  ;;  %2742 = vmatprep.mubr.f32.mxu1 %v5625_v62  ;;  %2884 = vadd.xlane.f32.xlu0 %v2883_v35  ;;  %v2889_v19 = vadd.f32 %v5663_v55, %v5658_v0  ;;  %v6070_v62 = vld [vmem:[#allocation47_spill] sm:$0xff] }
 0x3e9   : > { %v5670_v1 = vpop.eup %4452  ;;  %4478 = vpow2.f32 %v2494_v63  ;;  %v2490_v30 = vmul.f32 1.442695, %v2368_v4  ;;  %v2492_v25 = vmul.f32 1.442695, %v2369_v53  ;;  %2881 = vadd.xlane.f32.xlu1 %v2880_v61 }
 0x3ea   : > { %v4455_v57 = vpop.eup %4454  ;;  %4480 = vpow2.f32 %v2496_v36  ;;  %v2309_v6 = vpop.xlane.xlu1 %2308 }
 0x3eb   : > { %v4457_v11 = vpop.eup %4456  ;;  %4482 = vpow2.f32 %v2490_v30  ;;  %2743 = vmatmul.mubr.f32.gmra.mxu1 %v5621_v33  ;;  %v2372_v23 = vsub.f32 %v5543_v28, %v2309_v6  ;;  %v2373_v24 = vsub.f32 %v6070_v62, %v2309_v6  ;;  %v2886_v2 = vadd.f32 %v4455_v57, %v5670_v1 }
 0x3ec   : > { %v4459_v15 = vpop.eup %4458  ;;  %4484 = vpow2.f32 %v2492_v25  ;;  %2747 = vmatprep.mubr.f32.mxu1 %v4437_v10  ;;  %2890 = vadd.xlane.f32.xlu0 %v2889_v19  ;;  %v2895_v46 = vadd.f32 %v4457_v11, %v5667_v16 }
 0x3ed   : > { %v4461_v38 = vpop.eup %4460  ;;  %v2498_v42 = vmul.f32 1.442695, %v2372_v23  ;;  %v2500_v43 = vmul.f32 1.442695, %v2373_v24  ;;  %2887 = vadd.xlane.f32.xlu1 %v2886_v2 }
 0x3ee   : > { %v4463_v8 = vpop.eup %4462  ;;  %v2892_v48 = vadd.f32 %v4461_v38, %v4459_v15 }
 0x3ef   : > { %v4465_v29 = vpop.eup %4464  ;;  %4486 = vpow2.f32 %v2498_v42  ;;  %2748 = vmatmul.mubr.f32.gmra.mxu1 %v5643_v7 }
 0x3f0   : > { %v4467_v28 = vpop.eup %4466  ;;  %4488 = vpow2.f32 %v2500_v43  ;;  %2752 = vmatprep.mubr.f32.mxu1 %v5633_v37  ;;  %2896 = vadd.xlane.f32.xlu0 %v2895_v46  ;;  %v2901_v21 = vadd.f32 %v4465_v29, %v4463_v8 }
 0x3f1   : > { %v4469_v33 = vpop.eup %4468  ;;  %2893 = vadd.xlane.f32.xlu1 %v2892_v48 }
 0x3f2   : > { %v4471_v58 = vpop.eup %4470 }
 0x3f3   : > { %v4473_v34 = vpop.eup %4472  ;;  %2753 = vmatmul.mubr.f32.gmra.mxu1 %v5630_v20  ;;  %v2898_v47 = vadd.f32 %v4471_v58, %v4469_v33 }
 0x3f4   : > { %v4475_v59 = vpop.eup %4474  ;;  %2757 = vmatprep.mubr.f32.mxu1 %v4445_v31  ;;  %2902 = vadd.xlane.f32.xlu0 %v2901_v21  ;;  %v2907_v7 = vadd.f32 %v4473_v34, %v4467_v28 }
 0x3f5   : > { %v4477_v18 = vpop.eup %4476  ;;  %2899 = vadd.xlane.f32.xlu1 %v2898_v47 }
 0x3f6   : > { %v4479_v27 = vpop.eup %4478  ;;  %v2904_v45 = vadd.f32 %v4477_v18, %v4475_v59 }
 0x3f7   : > { %v4481_v10 = vpop.eup %4480  ;;  %2758 = vmatmul.mubr.f32.gmra.mxu1 %v5656_v50 }
 0x3f8   : > { %v4483_v37 = vpop.eup %4482  ;;  %2762 = vmatprep.mubr.f32.mxu1 %v5652_v5  ;;  %2908 = vadd.xlane.f32.xlu0 %v2907_v7  ;;  %v2913_v12 = vadd.f32 %v4481_v10, %v4479_v27 }
 0x3f9   : > { %v4485_v17 = vpop.eup %4484  ;;  %2905 = vadd.xlane.f32.xlu1 %v2904_v45 }
 0x3fa   : > { %v2910_v20 = vadd.f32 %v4485_v17, %v4483_v37 }
 0x3fb   : > { %2763 = vmatmul.mubr.f32.gmra.mxu1 %v5648_v14 }
 0x3fc   : > { %v4487_v49 = vpop.eup %4486  ;;  %2767 = vmatprep.mubr.f32.mxu1 %v4455_v57  ;;  %2914 = vadd.xlane.f32.xlu0 %v2913_v12 }
 0x3fd   : > { %v4489_v9 = vpop.eup %4488  ;;  %2911 = vadd.xlane.f32.xlu1 %v2910_v20 }
 0x3fe   : > { %v2916_v26 = vadd.f32 %v4489_v9, %v4487_v49 }
 0x3ff   : > { %2768 = vmatmul.mubr.f32.gmra.mxu1 %v5670_v1 }
 0x400   : > { %2772 = vmatprep.mubr.f32.mxu1 %v5663_v55 }
 0x401   : > { %2917 = vadd.xlane.f32.xlu1 %v2916_v26 }
 0x403   : > { %2773 = vmatmul.mubr.f32.gmra.mxu1 %v5658_v0 }
 0x404   : > { %2777 = vmatprep.mubr.f32.mxu1 %v4461_v38  ;;  %v2825_v14 = vpop.xlane.xlu0 %2824 }
 0x405   : > { %4490 = vrcp.f32 %v2825_v14 }
 0x407   : > { %2778 = vmatmul.mubr.f32.gmra.mxu1 %v4459_v15 }
 0x408   : > { %2782 = vmatprep.mubr.f32.mxu1 %v4457_v11  ;;  %v2828_v54 = vpop.xlane.xlu1 %2827 }
 0x409   : > { %4492 = vrcp.f32 %v2828_v54 }
 0x40b   : > { %2783 = vmatmul.mubr.f32.gmra.mxu1 %v5667_v16 }
 0x40c   : > { %2787 = vmatprep.mubr.f32.mxu1 %v4471_v58  ;;  %v2831_v13 = vpop.xlane.xlu0 %2830 }
 0x40d   : > { %4494 = vrcp.f32 %v2831_v13 }
 0x40f   : > { %2788 = vmatmul.mubr.f32.gmra.mxu1 %v4469_v33 }
 0x410   : > { %2792 = vmatprep.mubr.f32.mxu1 %v4465_v29  ;;  %v2834_v39 = vpop.xlane.xlu1 %2833 }
 0x411   : > { %4496 = vrcp.f32 %v2834_v39 }
 0x412   : > { %v4491_v22 = vpop.eup %4490 }
 0x413   : > { %2793 = vmatmul.mubr.f32.gmra.mxu1 %v4463_v8 }
 0x414   : > { %2797 = vmatprep.mubr.f32.mxu1 %v4477_v18  ;;  %v2837_v5 = vpop.xlane.xlu0 %2836 }
 0x415   : > { %4498 = vrcp.f32 %v2837_v5 }
 0x416   : > { %v4493_v51 = vpop.eup %4492 }
 0x417   : > { %2798 = vmatmul.mubr.f32.gmra.mxu1 %v4475_v59 }
 0x418   : > { %2802 = vmatprep.mubr.f32.mxu1 %v4473_v34  ;;  %v2840_v50 = vpop.xlane.xlu1 %2839 }
 0x419   : > { %4500 = vrcp.f32 %v2840_v50 }
 0x41a   : > { %v4495_v41 = vpop.eup %4494 }
 0x41b   : > { %2803 = vmatmul.mubr.f32.gmra.mxu1 %v4467_v28 }
 0x41c   : > { %2807 = vmatprep.mubr.f32.mxu1 %v4485_v17  ;;  %v2843_v0 = vpop.xlane.xlu0 %2842 }
 0x41d   : > { %4502 = vrcp.f32 %v2843_v0 }
 0x41e   : > { %v4497_v61 = vpop.eup %4496 }
 0x41f   : > { %2808 = vmatmul.mubr.f32.gmra.mxu1 %v4483_v37 }
 0x420   : > { %2812 = vmatprep.mubr.f32.mxu1 %v4481_v10 }
 0x422   : > { %v4499_v32 = vpop.eup %4498 }
 0x423   : > { %2813 = vmatmul.mubr.f32.gmra.mxu1 %v4479_v27 }
 0x424   : > { %2817 = vmatprep.mubr.f32.mxu1 %v4489_v9 }
 0x426   : > { %v4501_v30 = vpop.eup %4500 }
 0x427   : > { %2818 = vmatmul.mubr.f32.gmra.mxu1 %v4487_v49 }
 0x42a   : > { %v4503_v19 = vpop.eup %4502 }
 0x447   : > { %v2664_v52 = vpop.f32.mrf.mxu1 }
 0x448   : > { %v2951_v3 = vmul.f32 %v4491_v22, %v2664_v52 }
 0x449   : > { %v2666_v60 = vpop.f32.mrf.mxu1 }
 0x44a   : > { %4301 = vmatprep.mubr.msk.f32.mxu0 %vm1086_vm2, %v2951_v3 }
 0x44b   : > { %v2669_v31 = vpop.f32.mrf.mxu1 }
 0x44c   : > { %v2952_v63 = vmul.f32 %v4493_v51, %v2669_v31 }
 0x44d   : > { %v2671_v40 = vpop.f32.mrf.mxu1  ;;  %v2846_v24 = vpop.xlane.xlu1 %2845 }
 0x44e   : > { %4302 = vmatmul.mubr.msk.f32.vlgmr.msra.gmra.mxu0 %vm1086_vm2, %v2952_v63  ;;  %4504 = vrcp.f32 %v2846_v24 }
 0x44f   : > { %v2674_v36 = vpop.f32.mrf.mxu1 }
 0x450   : > { %v2953_v56 = vmul.f32 %v4495_v41, %v2674_v36 }
 0x451   : > { %v2676_v35 = vpop.f32.mrf.mxu1  ;;  %v2852_v15 = vpop.xlane.xlu1 %2851 }
 0x452   : > { %4304 = vmatprep.mubr.msk.f32.mxu0 %vm1086_vm2, %v2953_v56 }
 0x453   : > { %v2679_v55 = vpop.f32.mrf.mxu1 }
 0x454   : > { %v2954_v44 = vmul.f32 %v4497_v61, %v2679_v55 }
 0x455   : > { %v2681_v4 = vpop.f32.mrf.mxu1  ;;  %v2849_v2 = vpop.xlane.xlu0 %2848 }
 0x456   : > { %4305 = vmatmul.mubr.msk.f32.gmra.mxu0 %vm1086_vm2, %v2954_v44  ;;  %4506 = vrcp.f32 %v2849_v2 }
 0x457   : > { %v2684_v53 = vpop.f32.mrf.mxu1  ;;  %4508 = vrcp.f32 %v2852_v15 }
 0x458   : > { %v2955_v16 = vmul.f32 %v4499_v32, %v2684_v53 }
 0x459   : > { %v2686_v1 = vpop.f32.mrf.mxu1  ;;  %v2855_v42 = vpop.xlane.xlu0 %2854 }
 0x45a   : > { %4307 = vmatprep.mubr.msk.f32.mxu0 %vm1086_vm2, %v2955_v16  ;;  %4510 = vrcp.f32 %v2855_v42  ;;  %v2858_v48 = vpop.xlane.xlu1 %2857 }
 0x45b   : > { %v2689_v25 = vpop.f32.mrf.mxu1  ;;  %v4505_v38 = vpop.eup %4504  ;;  %4512 = vrcp.f32 %v2858_v48 }
 0x45c   : > { %v2956_v57 = vmul.f32 %v4501_v30, %v2689_v25 }
 0x45d   : > { %v2691_v6 = vpop.f32.mrf.mxu1  ;;  %v2861_v28 = vpop.xlane.xlu0 %2860 }
 0x45e   : > { %4308 = vmatmul.mubr.msk.f32.gmra.mxu0 %vm1086_vm2, %v2956_v57  ;;  %4514 = vrcp.f32 %v2861_v28 }
 0x45f   : > { %v2694_v11 = vpop.f32.mrf.mxu1 }
 0x460   : > { %v2957_v23 = vmul.f32 %v4503_v19, %v2694_v11 }
 0x461   : > { %v2696_v62 = vpop.f32.mrf.mxu1  ;;  %v2864_v47 = vpop.xlane.xlu1 %2863 }
 0x462   : > { %4310 = vmatprep.mubr.msk.f32.mxu0 %vm1086_vm2, %v2957_v23  ;;  %4516 = vrcp.f32 %v2864_v47 }
 0x463   : > { %v4507_v29 = vpop.eup %4506 }
 0x464   : > { %v4509_v34 = vpop.eup %4508 }
 0x465   : > { %v2867_v45 = vpop.xlane.xlu0 %2866 }
 0x466   : > { %4518 = vrcp.f32 %v2867_v45 }
 0x467   : > { %v4511_v7 = vpop.eup %4510 }
 0x468   : > { %v4513_v12 = vpop.eup %4512 }
 0x469   : > { %v2873_v54 = vpop.xlane.xlu0 %2872 }
 0x46a   : > { %v2870_v20 = vpop.xlane.xlu1 %2869 }
 0x46b   : > { %4520 = vrcp.f32 %v2870_v20  ;;  %v4515_v14 = vpop.eup %4514 }
 0x46c   : > { %4522 = vrcp.f32 %v2873_v54 }
 0x46d   : > { %v2879_v31 = vpop.xlane.xlu0 %2878 }
 0x46e   : > { %v2876_v52 = vpop.xlane.xlu1 %2875 }
 0x46f   : > { %v4517_v5 = vpop.eup %4516  ;;  %4524 = vrcp.f32 %v2876_v52 }
 0x470   : > { %4526 = vrcp.f32 %v2879_v31 }
 0x471   : > { %v2885_v44 = vpop.xlane.xlu0 %2884 }
 0x472   : > { %v2882_v36 = vpop.xlane.xlu1 %2881 }
 0x473   : > { %v4519_v50 = vpop.eup %4518  ;;  %4528 = vrcp.f32 %v2882_v36 }
 0x474   : > { %4530 = vrcp.f32 %v2885_v44 }
 0x475   : > { %v2891_v19 = vpop.xlane.xlu0 %2890 }
 0x476   : > { %v2888_v1 = vpop.xlane.xlu1 %2887 }
 0x477   : > { %4532 = vrcp.f32 %v2888_v1 }
 0x478   : > { %v4521_v0 = vpop.eup %4520  ;;  %4534 = vrcp.f32 %v2891_v19 }
 0x479   : > { %v4523_v55 = vpop.eup %4522 }
 0x47a   : > { %v2894_v2 = vpop.xlane.xlu1 %2893 }
 0x47b   : > { %4536 = vrcp.f32 %v2894_v2 }
 0x47c   : > { %v4525_v16 = vpop.eup %4524 }
 0x47d   : > { %v4527_v6 = vpop.eup %4526 }
 0x480   : > { %v4529_v24 = vpop.eup %4528 }
 0x483   : > { %v2699_v43 = vpop.f32.mrf.mxu1 }
 0x484   : > { %v2958_v8 = vmul.f32 %v4505_v38, %v2699_v43  ;;  %v4531_v43 = vpop.eup %4530 }
 0x485   : > { %v2701_v46 = vpop.f32.mrf.mxu1  ;;  %v4533_v28 = vpop.eup %4532 }
 0x486   : > { %4311 = vmatmul.mubr.msk.f32.gmra.mxu0 %vm1086_vm2, %v2958_v8  ;;  %v2897_v8 = vpop.xlane.xlu0 %2896  ;;  %v4535_v47 = vpop.eup %4534 }
 0x487   : > { %4538 = vrcp.f32 %v2897_v8 }
 0x488   : > { %v4537_v45 = vpop.eup %4536 }
 0x48b   : > { %v2704_v33 = vpop.f32.mrf.mxu1 }
 0x48c   : > { %v2959_v58 = vmul.f32 %v4507_v29, %v2704_v33  ;;  %v2900_v33 = vpop.xlane.xlu1 %2899 }
 0x48d   : > { %v2706_v21 = vpop.f32.mrf.mxu1  ;;  %4540 = vrcp.f32 %v2900_v33 }
 0x48e   : > { %4313 = vmatprep.mubr.msk.f32.mxu0 %vm1086_vm2, %v2959_v58 }
 0x48f   : > { %v2709_v59 = vpop.f32.mrf.mxu1 }
 0x490   : > { %v2960_v18 = vmul.f32 %v4509_v34, %v2709_v59  ;;  %v2903_v59 = vpop.xlane.xlu0 %2902 }
 0x491   : > { %v2711_v27 = vpop.f32.mrf.mxu1  ;;  %4542 = vrcp.f32 %v2903_v59 }
 0x492   : > { %4314 = vmatmul.mubr.msk.f32.gmra.mxu0 %vm1086_vm2, %v2960_v18 }
 0x493   : > { %v2714_v10 = vpop.f32.mrf.mxu1 }
 0x494   : > { %v2961_v37 = vmul.f32 %v4511_v7, %v2714_v10  ;;  %v2906_v10 = vpop.xlane.xlu1 %2905  ;;  %v4539_v20 = vpop.eup %4538 }
 0x495   : > { %v2716_v17 = vpop.f32.mrf.mxu1  ;;  %4544 = vrcp.f32 %v2906_v10 }
 0x496   : > { %4316 = vmatprep.mubr.msk.f32.mxu0 %vm1086_vm2, %v2961_v37 }
 0x497   : > { %v2719_v49 = vpop.f32.mrf.mxu1 }
 0x498   : > { %v2962_v9 = vmul.f32 %v4513_v12, %v2719_v49  ;;  %v2909_v49 = vpop.xlane.xlu0 %2908 }
 0x499   : > { %v2721_v26 = vpop.f32.mrf.mxu1  ;;  %4546 = vrcp.f32 %v2909_v49 }
 0x49a   : > { %4317 = vmatmul.mubr.msk.f32.gmra.mxu0 %vm1086_vm2, %v2962_v9  ;;  %v4541_v54 = vpop.eup %4540 }
 0x49b   : > { %v2724_v13 = vpop.f32.mrf.mxu1 }
 0x49c   : > { %v2963_v39 = vmul.f32 %v4515_v14, %v2724_v13  ;;  %v2912_v13 = vpop.xlane.xlu1 %2911 }
 0x49d   : > { %v2726_v22 = vpop.f32.mrf.mxu1  ;;  %4548 = vrcp.f32 %v2912_v13 }
 0x49e   : > { %4319 = vmatprep.mubr.msk.f32.mxu0 %vm1086_vm2, %v2963_v39  ;;  %v4543_v52 = vpop.eup %4542 }
 0x49f   : > { %v2729_v3 = vpop.f32.mrf.mxu1 }
 0x4a0   : > { %v2964_v60 = vmul.f32 %v4517_v5, %v2729_v3  ;;  %v2915_v3 = vpop.xlane.xlu0 %2914 }
 0x4a1   : > { %v2731_v51 = vpop.f32.mrf.mxu1  ;;  %4550 = vrcp.f32 %v2915_v3 }
 0x4a2   : > { %4320 = vmatmul.mubr.msk.f32.gmra.mxu0 %vm1086_vm2, %v2964_v60  ;;  %v4545_v31 = vpop.eup %4544 }
 0x4a3   : > { %v2734_v63 = vpop.f32.mrf.mxu1 }
 0x4a4   : > { %v2965_v40 = vmul.f32 %v4519_v50, %v2734_v63  ;;  %v2918_v63 = vpop.xlane.xlu1 %2917 }
 0x4a5   : > { %v2736_v41 = vpop.f32.mrf.mxu1  ;;  %4552 = vrcp.f32 %v2918_v63 }
 0x4a6   : > { %4322 = vmatprep.mubr.msk.f32.mxu0 %vm1086_vm2, %v2965_v40  ;;  %v4547_v36 = vpop.eup %4546 }
 0x4a7   : > { %v2739_v56 = vpop.f32.mrf.mxu1 }
 0x4a8   : > { %v2966_v35 = vmul.f32 %v4521_v0, %v2739_v56 }
 0x4a9   : > { %v2741_v61 = vpop.f32.mrf.mxu1 }
 0x4aa   : > { %4323 = vmatmul.mubr.msk.f32.gmra.mxu0 %vm1086_vm2, %v2966_v35 }
 0x4ab   : > { %v2744_v4 = vpop.f32.mrf.mxu1 }
 0x4ac   : > { %v2967_v32 = vmul.f32 %v4523_v55, %v2744_v4  ;;  %v4549_v55 = vpop.eup %4548 }
 0x4ad   : > { %v2746_v53 = vpop.f32.mrf.mxu1 }
 0x4ae   : > { %4325 = vmatprep.mubr.msk.f32.mxu0 %vm1086_vm2, %v2967_v32  ;;  %v4551_v53 = vpop.eup %4550 }
 0x4af   : > { %v2749_v30 = vpop.f32.mrf.mxu1 }
 0x4b0   : > { %v2968_v25 = vmul.f32 %v4525_v16, %v2749_v30 }
 0x4b1   : > { %v2751_v57 = vpop.f32.mrf.mxu1 }
 0x4b2   : > { %4326 = vmatmul.mubr.msk.f32.gmra.mxu0 %vm1086_vm2, %v2968_v25  ;;  %v4553_v25 = vpop.eup %4552 }
 0x4b3   : > { %v2754_v11 = vpop.f32.mrf.mxu1 }
 0x4b4   : > { %v2969_v23 = vmul.f32 %v4527_v6, %v2754_v11 }
 0x4b5   : > { %v2756_v62 = vpop.f32.mrf.mxu1 }
 0x4b6   : > { %4328 = vmatprep.mubr.msk.f32.mxu0 %vm1086_vm2, %v2969_v23 }
 0x4b7   : > { %v2759_v15 = vpop.f32.mrf.mxu1 }
 0x4b8   : > { %v2970_v38 = vmul.f32 %v4529_v24, %v2759_v15 }
 0x4b9   : > { %v2761_v42 = vpop.f32.mrf.mxu1 }
 0x4ba   : > { %4329 = vmatmul.mubr.msk.f32.gmra.mxu0 %vm1086_vm2, %v2970_v38 }
 0x4bb   : > { %v2764_v46 = vpop.f32.mrf.mxu1 }
 0x4bc   : > { %v2971_v48 = vmul.f32 %v4531_v43, %v2764_v46 }
 0x4bd   : > { %v2766_v29 = vpop.f32.mrf.mxu1 }
 0x4be   : > { %4331 = vmatprep.mubr.msk.f32.mxu0 %vm1086_vm2, %v2971_v48 }
 0x4bf   : > { %v2769_v58 = vpop.f32.mrf.mxu1 }
 0x4c0   : > { %v2972_v21 = vmul.f32 %v4533_v28, %v2769_v58 }
 0x4c1   : > { %v2771_v34 = vpop.f32.mrf.mxu1 }
 0x4c2   : > { %4332 = vmatmul.mubr.msk.f32.gmra.mxu0 %vm1086_vm2, %v2972_v21 }
 0x4c3   : > { %v2774_v18 = vpop.f32.mrf.mxu1 }
 0x4c4   : > { %v2973_v27 = vmul.f32 %v4535_v47, %v2774_v18 }
 0x4c5   : > { %v2776_v7 = vpop.f32.mrf.mxu1 }
 0x4c6   : > { %4334 = vmatprep.mubr.msk.f32.mxu0 %vm1086_vm2, %v2973_v27  ;;  %v6071_v7 = vld [vmem:[#allocation2_spill] sm:$0xff] }
 0x4c7   : > { %v2779_v37 = vpop.f32.mrf.mxu1 }
 0x4c8   : > { %v2974_v17 = vmul.f32 %v4537_v45, %v2779_v37  ;;  %v6072_v45 = vmax.f32 %v6071_v7, 0.0 }
 0x4c9   : > { %v2781_v12 = vpop.f32.mrf.mxu1 }
 0x4ca   : > { %4335 = vmatmul.mubr.msk.f32.gmra.mxu0 %vm1086_vm2, %v2974_v17  ;;  %v6073_v17 = vld [vmem:[#allocation3_spill] sm:$0xff] }
 0x4cb   : > { %v2784_v9 = vpop.f32.mrf.mxu1  ;;  %v6074_v12 = vmax.f32 %v6073_v17, 0.0 }
 0x4cc   : > { %v2975_v26 = vmul.f32 %v4539_v20, %v2784_v9 }
 0x4cd   : > { %v2786_v14 = vpop.f32.mrf.mxu1 }
 0x4ce   : > { %4337 = vmatprep.mubr.msk.f32.mxu0 %vm1086_vm2, %v2975_v26  ;;  %v6075_v14 = vld [vmem:[#allocation4_spill] sm:$0xff] }
 0x4cf   : > { %v2789_v39 = vpop.f32.mrf.mxu1 }
 0x4d0   : > { %v2976_v22 = vmul.f32 %v4541_v54, %v2789_v39  ;;  %v6076_v54 = vmax.f32 %v6075_v14, 0.0 }
 0x4d1   : > { %v2791_v5 = vpop.f32.mrf.mxu1 }
 0x4d2   : > { %4338 = vmatmul.mubr.msk.f32.gmra.mxu0 %vm1086_vm2, %v2976_v22  ;;  %v6077_v5 = vld [vmem:[#allocation5_spill] sm:$0xff] }
 0x4d3   : > { %v2794_v60 = vpop.f32.mrf.mxu1 }
 0x4d4   : > { %v2977_v51 = vmul.f32 %v4543_v52, %v2794_v60  ;;  %v6078_v52 = vmax.f32 %v6077_v5, 0.0  ;;  %v6105_v5 = vld [vmem:[#allocation16_spill] sm:$0xff] }
 0x4d5   : > { %v2796_v50 = vpop.f32.mrf.mxu1 }
 0x4d6   : > { %4340 = vmatprep.mubr.msk.f32.mxu0 %vm1086_vm2, %v2977_v51  ;;  %v6079_v50 = vld [vmem:[#allocation6_spill] sm:$0xff] }
 0x4d7   : > { %v2799_v40 = vpop.f32.mrf.mxu1 }
 0x4d8   : > { %v2978_v41 = vmul.f32 %v4545_v31, %v2799_v40  ;;  %v6080_v31 = vmax.f32 %v6079_v50, 0.0 }
 0x4d9   : > { %v2801_v0 = vpop.f32.mrf.mxu1 }
 0x4da   : > { %4341 = vmatmul.mubr.msk.f32.gmra.mxu0 %vm1086_vm2, %v2978_v41  ;;  %v6081_v41 = vld [vmem:[#allocation7_spill] sm:$0xff] }
 0x4db   : > { %v2804_v56 = vpop.f32.mrf.mxu1  ;;  %v6082_v0 = vmax.f32 %v6081_v41, 0.0 }
 0x4dc   : > { %v2979_v35 = vmul.f32 %v4547_v36, %v2804_v56 }
 0x4dd   : > { %v2806_v61 = vpop.f32.mrf.mxu1 }
 0x4de   : > { %4343 = vmatprep.mubr.msk.f32.mxu0 %vm1086_vm2, %v2979_v35 }
 0x4df   : > { %v2809_v44 = vpop.f32.mrf.mxu1 }
 0x4e0   : > { %v2980_v4 = vmul.f32 %v4549_v55, %v2809_v44 }
 0x4e1   : > { %v2811_v32 = vpop.f32.mrf.mxu1 }
 0x4e2   : > { %4344 = vmatmul.mubr.msk.f32.gmra.mxu0 %vm1086_vm2, %v2980_v4 }
 0x4e3   : > { %v2814_v16 = vpop.f32.mrf.mxu1 }
 0x4e4   : > { %v2981_v1 = vmul.f32 %v4551_v53, %v2814_v16  ;;  %v6083_v16 = vld [vmem:[#allocation8_spill] sm:$0xff] }
 0x4e5   : > { %v2816_v30 = vpop.f32.mrf.mxu1 }
 0x4e6   : > { %4346 = vmatprep.mubr.msk.f32.mxu0 %vm1086_vm2, %v2981_v1  ;;  %v6084_v1 = vmax.f32 %v6083_v16, 0.0  ;;  %v6115_v16 = vld [vmem:[#allocation26_spill] sm:$0xff] }
 0x4e7   : > { %v2819_v57 = vpop.f32.mrf.mxu1 }
 0x4e8   : > { %v2982_v6 = vmul.f32 %v4553_v25, %v2819_v57  ;;  %v6085_v57 = vld [vmem:[#allocation9_spill] sm:$0xff] }
 0x4e9   : > { %v2821_v19 = vpop.f32.mrf.mxu1 }
 0x4ea   : > { %4347 = vmatmul.mubr.msk.f32.gmra.mxu0 %vm1086_vm2, %v2982_v6  ;;  %v6086_v6 = vmax.f32 %v6085_v57, 0.0  ;;  %v6117_v57 = vld [vmem:[#allocation23_spill] sm:$0xff] }
 0x50e   : > { %v4303_v11 = vpop.f32.mrf.mxu0 }
 0x50f   : > { %3342 = vrot.lane.b32.xlu1 %v4303_v11, %s4564_s18 }
 0x510   : > { %v3149_v23 = vpop.f32.mrf.mxu0 }
 0x511   : > { %3340 = vrot.lane.b32.xlu0 %v3149_v23, %s4564_s18  ;;  %v6087_v23 = vld [vmem:[#allocation10_spill] sm:$0xff] }
 0x516   : > { %v4306_v62 = vpop.f32.mrf.mxu0 }
 0x517   : > { %3346 = vrot.lane.b32.xlu1 %v4306_v62, %s4564_s18  ;;  %v6088_v62 = vmax.f32 %v6087_v23, 0.0  ;;  %v6119_v23 = vld [vmem:[#allocation28_spill] sm:$0xff] }
 0x518   : > { %v3159_v24 = vpop.f32.mrf.mxu0 }
 0x51b   : > { %3344 = vrot.lane.b32.xlu1 %v3159_v24, %s4564_s18 }
 0x51e   : > { %v4309_v2 = vpop.f32.mrf.mxu0 }
 0x51f   : > { %3350 = vrot.lane.b32.xlu1 %v4309_v2, %s4564_s18 }
 0x520   : > { %v3169_v15 = vpop.f32.mrf.mxu0 }
 0x521   : > { %3348 = vrot.lane.b32.xlu0 %v3169_v15, %s4564_s18  ;;  %v6089_v15 = vld [vmem:[#allocation11_spill] sm:$0xff] }
 0x546   : > { %v4312_v38 = vpop.f32.mrf.mxu0 }
 0x547   : > { %3354 = vrot.lane.b32.xlu1 %v4312_v38, %s4564_s18  ;;  %v6090_v38 = vmax.f32 %v6089_v15, 0.0  ;;  %v6121_v15 = vld [vmem:[#allocation25_spill] sm:$0xff] }
 0x548   : > { %v3179_v42 = vpop.f32.mrf.mxu0 }
 0x549   : > { %3352 = vrot.lane.b32.xlu0 %v3179_v42, %s4564_s18 }
 0x552   : > { %v4315_v43 = vpop.f32.mrf.mxu0 }
 0x553   : > { %3358 = vrot.lane.b32.xlu1 %v4315_v43, %s4564_s18 }
 0x554   : > { %v3189_v8 = vpop.f32.mrf.mxu0 }
 0x555   : > { %3356 = vrot.lane.b32.xlu0 %v3189_v8, %s4564_s18  ;;  %v6091_v8 = vld [vmem:[#allocation12_spill] sm:$0xff] }
 0x55a   : > { %v4318_v46 = vpop.f32.mrf.mxu0 }
 0x55b   : > { %3362 = vrot.lane.b32.xlu1 %v4318_v46, %s4564_s18  ;;  %v6092_v46 = vmax.f32 %v6091_v8, 0.0  ;;  %v6123_v8 = vld [vmem:[#allocation30_spill] sm:$0xff] }
 0x55c   : > { %v3199_v48 = vpop.f32.mrf.mxu0 }
 0x55d   : > { %3360 = vrot.lane.b32.xlu0 %v3199_v48, %s4564_s18 }
 0x562   : > { %v4321_v29 = vpop.f32.mrf.mxu0 }
 0x563   : > { %3366 = vrot.lane.b32.xlu1 %v4321_v29, %s4564_s18 }
 0x564   : > { %v3209_v28 = vpop.f32.mrf.mxu0 }
 0x565   : > { %3364 = vrot.lane.b32.xlu0 %v3209_v28, %s4564_s18  ;;  %v6093_v28 = vld [vmem:[#allocation13_spill] sm:$0xff] }
 0x56a   : > { %v4324_v33 = vpop.f32.mrf.mxu0 }
 0x56b   : > { %3370 = vrot.lane.b32.xlu1 %v4324_v33, %s4564_s18  ;;  %v6094_v33 = vmax.f32 %v6093_v28, 0.0  ;;  %v6125_v28 = vld [vmem:[#allocation27_spill] sm:$0xff] }
 0x56c   : > { %v3219_v58 = vpop.f32.mrf.mxu0 }
 0x56d   : > { %3368 = vrot.lane.b32.xlu0 %v3219_v58, %s4564_s18 }
 0x572   : > { %v4327_v21 = vpop.f32.mrf.mxu0 }
 0x573   : > { %3374 = vrot.lane.b32.xlu1 %v4327_v21, %s4564_s18 }
 0x574   : > { %v3229_v34 = vpop.f32.mrf.mxu0 }
 0x575   : > { %3372 = vrot.lane.b32.xlu0 %v3229_v34, %s4564_s18  ;;  %v6095_v34 = vld [vmem:[#allocation14_spill] sm:$0xff] }
 0x57a   : > { %v4330_v47 = vpop.f32.mrf.mxu0 }
 0x57b   : > { %3378 = vrot.lane.b32.xlu1 %v4330_v47, %s4564_s18  ;;  %v6096_v47 = vmax.f32 %v6095_v34, 0.0  ;;  %v6127_v34 = vld [vmem:[#allocation32_spill] sm:$0xff] }
 0x57c   : > { %v3239_v59 = vpop.f32.mrf.mxu0 }
 0x57d   : > { %3376 = vrot.lane.b32.xlu0 %v3239_v59, %s4564_s18 }
 0x581   : > { %v3343_v18 = vpop.permute.xlu1 %3342 }
 0x582   : > { %v4333_v27 = vpop.f32.mrf.mxu0  ;;  %v3437_v10 = vsel %vm1086_vm2, %v6072_v45, %v3343_v18 }
 0x583   : > { %3470 = vst.msk [vmem:[%s5745_s21 + $0x8] sm:$0xff] %vm3468_vm3, %v3437_v10  ;;  %3382 = vrot.lane.b32.xlu1 %v4333_v27, %s4564_s18  ;;  %v3341_v37 = vpop.permute.xlu0 %3340  ;;  %v6097_v27 = vld [vmem:[#allocation15_spill] sm:$0xff] }
 0x584   : > { %v3436_v20 = vsel %vm1086_vm2, %v6074_v12, %v3341_v37  ;;  %v3249_v49 = vpop.f32.mrf.mxu0  ;;  %v6098_v7 = vmax.f32 %v6097_v27, 0.0  ;;  %v6099_v37 = vld [vmem:[#allocation17_spill] sm:$0xff] }
 0x585   : > { %3469 = vst.msk [vmem:[%s5745_s21] sm:$0xff] %vm3468_vm3, %v3436_v20  ;;  %3380 = vrot.lane.b32.xlu0 %v3249_v49, %s4564_s18  ;;  %v6100_v17 = vmax.f32 %v6099_v37, 0.0  ;;  %v6101_v49 = vld [vmem:[#allocation18_spill] sm:$0xff]  ;;  %v6129_v27 = vld [vmem:[#allocation29_spill] sm:$0xff] }
 0x586   : > { %v6131_v37 = vld [vmem:[#allocation33_spill] sm:$0xff] }
 0x589   : > { %v3347_v9 = vpop.permute.xlu1 %3346 }
 0x58a   : > { %v4336_v26 = vpop.f32.mrf.mxu0  ;;  %v3439_v13 = vsel %vm1086_vm2, %v6076_v54, %v3347_v9  ;;  %v6102_v9 = vmax.f32 %v6101_v49, 0.0  ;;  %v6103_v54 = vld [vmem:[#allocation20_spill] sm:$0xff]  ;;  %v6133_v49 = vld [vmem:[#allocation31_spill] sm:$0xff] }
 0x58b   : > { %3472 = vst.msk [vmem:[%s5745_s21 + $0x18] sm:$0xff] %vm3468_vm3, %v3439_v13  ;;  %3386 = vrot.lane.b32.xlu1 %v4336_v26, %s4564_s18  ;;  %v6104_v13 = vmax.f32 %v6103_v54, 0.0 }
 0x58c   : > { %v3259_v39 = vpop.f32.mrf.mxu0 }
 0x58d   : > { %3384 = vrot.lane.b32.xlu0 %v3259_v39, %s4564_s18  ;;  %v3345_v22 = vpop.permute.xlu1 %3344 }
 0x58e   : > { %v3438_v3 = vsel %vm1086_vm2, %v6078_v52, %v3345_v22  ;;  %v6106_v52 = vmax.f32 %v6105_v5, 0.0 }
 0x58f   : > { %3471 = vst.msk [vmem:[%s5745_s21 + $0x10] sm:$0xff] %vm3468_vm3, %v3438_v3 }
 0x591   : > { %v3351_v60 = vpop.permute.xlu1 %3350 }
 0x592   : > { %v4339_v51 = vpop.f32.mrf.mxu0  ;;  %v3441_v63 = vsel %vm1086_vm2, %v6080_v31, %v3351_v60 }
 0x593   : > { %3474 = vst.msk [vmem:[%s5745_s21 + $0x28] sm:$0xff] %vm3468_vm3, %v3441_v63  ;;  %3390 = vrot.lane.b32.xlu1 %v4339_v51, %s4564_s18  ;;  %v3349_v40 = vpop.permute.xlu0 %3348  ;;  %v6107_v51 = vld [vmem:[#allocation22_spill] sm:$0xff] }
 0x594   : > { %v3440_v36 = vsel %vm1086_vm2, %v6082_v0, %v3349_v40  ;;  %v3269_v56 = vpop.f32.mrf.mxu0  ;;  %v6108_v50 = vmax.f32 %v6107_v51, 0.0  ;;  %v6109_v40 = vld [vmem:[#allocation19_spill] sm:$0xff] }
 0x595   : > { %3473 = vst.msk [vmem:[%s5745_s21 + $0x20] sm:$0xff] %vm3468_vm3, %v3440_v36  ;;  %3388 = vrot.lane.b32.xlu0 %v3269_v56, %s4564_s18  ;;  %v6110_v41 = vmax.f32 %v6109_v40, 0.0  ;;  %v6111_v56 = vld [vmem:[#allocation24_spill] sm:$0xff] }
 0x59a   : > { %v4342_v35 = vpop.f32.mrf.mxu0 }
 0x59b   : > { %3394 = vrot.lane.b32.xlu1 %v4342_v35, %s4564_s18  ;;  %v6112_v35 = vmax.f32 %v6111_v56, 0.0 }
 0x59c   : > { %v3279_v61 = vpop.f32.mrf.mxu0 }
 0x59d   : > { %3392 = vrot.lane.b32.xlu0 %v3279_v61, %s4564_s18 }
 0x5a2   : > { %v4345_v55 = vpop.f32.mrf.mxu0 }
 0x5a3   : > { %3398 = vrot.lane.b32.xlu1 %v4345_v55, %s4564_s18 }
 0x5a4   : > { %v3289_v44 = vpop.f32.mrf.mxu0 }
 0x5a5   : > { %3396 = vrot.lane.b32.xlu0 %v3289_v44, %s4564_s18  ;;  %v6113_v44 = vld [vmem:[#allocation21_spill] sm:$0xff] }
 0x5aa   : > { %v4348_v4 = vpop.f32.mrf.mxu0 }
 0x5ab   : > { %3402 = vrot.lane.b32.xlu1 %v4348_v4, %s4564_s18  ;;  %v6114_v4 = vmax.f32 %v6113_v44, 0.0 }
 0x5ac   : > { %v3299_v32 = vpop.f32.mrf.mxu0 }
 0x5ad   : > { %3400 = vrot.lane.b32.xlu0 %v3299_v32, %s4564_s18 }
 0x5b9   : > { %v3355_v53 = vpop.permute.xlu1 %3354 }
 0x5ba   : > { %v3443_v30 = vsel %vm1086_vm2, %v6084_v1, %v3355_v53  ;;  %v6116_v1 = vmax.f32 %v6115_v16, 0.0 }
 0x5bb   : > { %3476 = vst.msk [vmem:[%s5745_s21 + $0x38] sm:$0xff] %vm3468_vm3, %v3443_v30  ;;  %v3353_v25 = vpop.permute.xlu0 %3352 }
 0x5bc   : > { %v3442_v19 = vsel %vm1086_vm2, %v6086_v6, %v3353_v25  ;;  %v6118_v6 = vmax.f32 %v6117_v57, 0.0 }
 0x5bd   : > { %3475 = vst.msk [vmem:[%s5745_s21 + $0x30] sm:$0xff] %vm3468_vm3, %v3442_v19 }
 0x5c5   : > { %v3359_v11 = vpop.permute.xlu1 %3358 }
 0x5c6   : > { %v3445_v24 = vsel %vm1086_vm2, %v6088_v62, %v3359_v11  ;;  %v6120_v62 = vmax.f32 %v6119_v23, 0.0 }
 0x5c7   : > { %3478 = vst.msk [vmem:[%s5745_s21 + $0x48] sm:$0xff] %vm3468_vm3, %v3445_v24  ;;  %v3357_v2 = vpop.permute.xlu0 %3356 }
 0x5c8   : > { %v3444_v42 = vsel %vm1086_vm2, %v6090_v38, %v3357_v2  ;;  %v6122_v38 = vmax.f32 %v6121_v15, 0.0 }
 0x5c9   : > { %3477 = vst.msk [vmem:[%s5745_s21 + $0x40] sm:$0xff] %vm3468_vm3, %v3444_v42 }
 0x5cd   : > { %v3363_v43 = vpop.permute.xlu1 %3362 }
 0x5ce   : > { %v3447_v48 = vsel %vm1086_vm2, %v6092_v46, %v3363_v43  ;;  %v6124_v46 = vmax.f32 %v6123_v8, 0.0 }
 0x5cf   : > { %3480 = vst.msk [vmem:[%s5745_s21 + $0x58] sm:$0xff] %vm3468_vm3, %v3447_v48  ;;  %v3361_v29 = vpop.permute.xlu0 %3360 }
 0x5d0   : > { %v3446_v58 = vsel %vm1086_vm2, %v6094_v33, %v3361_v29  ;;  %v6126_v33 = vmax.f32 %v6125_v28, 0.0 }
 0x5d1   : > { %3479 = vst.msk [vmem:[%s5745_s21 + $0x50] sm:$0xff] %vm3468_vm3, %v3446_v58 }
 0x5d5   : > { %v3367_v21 = vpop.permute.xlu1 %3366 }
 0x5d6   : > { %v3449_v59 = vsel %vm1086_vm2, %v6096_v47, %v3367_v21  ;;  %v6128_v47 = vmax.f32 %v6127_v34, 0.0 }
 0x5d7   : > { %3482 = vst.msk [vmem:[%s5745_s21 + $0x68] sm:$0xff] %vm3468_vm3, %v3449_v59  ;;  %v3365_v18 = vpop.permute.xlu0 %3364 }
 0x5d8   : > { %v3448_v45 = vsel %vm1086_vm2, %v6098_v7, %v3365_v18  ;;  %v6130_v7 = vmax.f32 %v6129_v27, 0.0 }
 0x5d9   : > { %3481 = vst.msk [vmem:[%s5745_s21 + $0x60] sm:$0xff] %vm3468_vm3, %v3448_v45 }
 0x5dd   : > { %v3371_v10 = vpop.permute.xlu1 %3370 }
 0x5de   : > { %v3451_v12 = vsel %vm1086_vm2, %v6100_v17, %v3371_v10  ;;  %v6132_v17 = vmax.f32 %v6131_v37, 0.0 }
 0x5df   : > { %3484 = vst.msk [vmem:[%s5745_s21 + $0x78] sm:$0xff] %vm3468_vm3, %v3451_v12  ;;  %v3369_v20 = vpop.permute.xlu0 %3368 }
 0x5e0   : > { %v3450_v26 = vsel %vm1086_vm2, %v6102_v9, %v3369_v20  ;;  %v6134_v9 = vmax.f32 %v6133_v49, 0.0 }
 0x5e1   : > { %3483 = vst.msk [vmem:[%s5745_s21 + $0x70] sm:$0xff] %vm3468_vm3, %v3450_v26 }
 0x5e5   : > { %v3375_v14 = vpop.permute.xlu1 %3374 }
 0x5e6   : > { %v3453_v39 = vsel %vm1086_vm2, %v6104_v13, %v3375_v14 }
 0x5e7   : > { %3486 = vst.msk [vmem:[%s5745_s21 + $0x88] sm:$0xff] %vm3468_vm3, %v3453_v39  ;;  %v3373_v22 = vpop.permute.xlu0 %3372 }
 0x5e8   : > { %v3452_v3 = vsel %vm1086_vm2, %v6106_v52, %v3373_v22 }
 0x5e9   : > { %3485 = vst.msk [vmem:[%s5745_s21 + $0x80] sm:$0xff] %vm3468_vm3, %v3452_v3 }
 0x5ed   : > { %v3379_v60 = vpop.permute.xlu1 %3378 }
 0x5ee   : > { %v3455_v31 = vsel %vm1086_vm2, %v6108_v50, %v3379_v60 }
 0x5ef   : > { %3488 = vst.msk [vmem:[%s5745_s21 + $0x98] sm:$0xff] %vm3468_vm3, %v3455_v31  ;;  %v3377_v63 = vpop.permute.xlu0 %3376 }
 0x5f0   : > { %v3454_v0 = vsel %vm1086_vm2, %v6110_v41, %v3377_v63 }
 0x5f1   : > { %3487 = vst.msk [vmem:[%s5745_s21 + $0x90] sm:$0xff] %vm3468_vm3, %v3454_v0 }
 0x5f5   : > { %v3383_v36 = vpop.permute.xlu1 %3382 }
 0x5f6   : > { %v3457_v61 = vsel %vm1086_vm2, %v6112_v35, %v3383_v36 }
 0x5f7   : > { %3490 = vst.msk [vmem:[%s5745_s21 + $0xa8] sm:$0xff] %vm3468_vm3, %v3457_v61  ;;  %v3381_v55 = vpop.permute.xlu0 %3380 }
 0x5f8   : > { %v3456_v32 = vsel %vm1086_vm2, %v6114_v4, %v3381_v55 }
 0x5f9   : > { %3489 = vst.msk [vmem:[%s5745_s21 + $0xa0] sm:$0xff] %vm3468_vm3, %v3456_v32 }
 0x5fd   : > { %v3387_v53 = vpop.permute.xlu1 %3386 }
 0x5fe   : > { %v3459_v30 = vsel %vm1086_vm2, %v6116_v1, %v3387_v53 }
 0x5ff   : > { %3492 = vst.msk [vmem:[%s5745_s21 + $0xb8] sm:$0xff] %vm3468_vm3, %v3459_v30  ;;  %v3385_v25 = vpop.permute.xlu0 %3384 }
 0x600   : > { %v3458_v19 = vsel %vm1086_vm2, %v6118_v6, %v3385_v25 }
 0x601   : > { %3491 = vst.msk [vmem:[%s5745_s21 + $0xb0] sm:$0xff] %vm3468_vm3, %v3458_v19 }
 0x605   : > { %v3391_v11 = vpop.permute.xlu1 %3390 }
 0x606   : > { %v3461_v24 = vsel %vm1086_vm2, %v6120_v62, %v3391_v11 }
 0x607   : > { %3494 = vst.msk [vmem:[%s5745_s21 + $0xc8] sm:$0xff] %vm3468_vm3, %v3461_v24  ;;  %v3389_v2 = vpop.permute.xlu0 %3388 }
 0x608   : > { %v3460_v42 = vsel %vm1086_vm2, %v6122_v38, %v3389_v2 }
 0x609   : > { %3493 = vst.msk [vmem:[%s5745_s21 + $0xc0] sm:$0xff] %vm3468_vm3, %v3460_v42 }
 0x60d   : > { %v3395_v43 = vpop.permute.xlu1 %3394 }
 0x60e   : > { %v3463_v48 = vsel %vm1086_vm2, %v6124_v46, %v3395_v43 }
 0x60f   : > { %3496 = vst.msk [vmem:[%s5745_s21 + $0xd8] sm:$0xff] %vm3468_vm3, %v3463_v48  ;;  %v3393_v29 = vpop.permute.xlu0 %3392 }
 0x610   : > { %v3462_v58 = vsel %vm1086_vm2, %v6126_v33, %v3393_v29 }
 0x611   : > { %3495 = vst.msk [vmem:[%s5745_s21 + $0xd0] sm:$0xff] %vm3468_vm3, %v3462_v58 }
 0x615   : > { %v3399_v21 = vpop.permute.xlu1 %3398 }
 0x616   : > { %v3465_v59 = vsel %vm1086_vm2, %v6128_v47, %v3399_v21 }
 0x617   : > { %3498 = vst.msk [vmem:[%s5745_s21 + $0xe8] sm:$0xff] %vm3468_vm3, %v3465_v59  ;;  %v3397_v18 = vpop.permute.xlu0 %3396 }
 0x618   : > { %v3464_v45 = vsel %vm1086_vm2, %v6130_v7, %v3397_v18 }
 0x619   : > { %3497 = vst.msk [vmem:[%s5745_s21 + $0xe0] sm:$0xff] %vm3468_vm3, %v3464_v45 }
 0x61d   : > { %v3403_v10 = vpop.permute.xlu1 %3402 }
 0x61e   : > { %v3467_v12 = vsel %vm1086_vm2, %v6132_v17, %v3403_v10 }
 0x61f   : > { %3500 = vst.msk [vmem:[%s5745_s21 + $0xf8] sm:$0xff] %vm3468_vm3, %v3467_v12  ;;  %v3401_v20 = vpop.permute.xlu0 %3400 }
 0x620   : > { %v3466_v26 = vsel %vm1086_vm2, %v6134_v9, %v3401_v20 }
 0x621   : > { %3499 = vst.msk [vmem:[%s5745_s21 + $0xf0] sm:$0xff] %vm3468_vm3, %v3466_v26 }
 0x622 PF: > { %s17_s24 = sadd.s32 1, %s4560_s24  }
 0x623   : > { %p14_p4 = scmp.ge.s32.totalorder %s17_s24, 4  }
 0x625   :  { %16 = sbr.rel (!%p14_p4) target bundleno = 1 (0x1), region = 81 }

</bundles_post_ra>
